<compile_context>
chip_gen: v7x
topology: tpu7x:2x2x1
jax: 0.10.0
libtpu: 0.0.40
codegen_flags: <defaults>
</compile_context>

<pallas_src>
import functools

import jax
import jax.numpy as jnp
from jax import lax
from jax.experimental import pallas as pl
from jax.experimental.pallas import tpu as pltpu

_NUM_BRANCHES = 3
_PER_BRANCH = 14          # patches + 13 parameter tensors per branch


# --------------------------------------------------------------------------
# in-kernel helpers
# --------------------------------------------------------------------------
def _ln_last(x, w, b, eps=1e-5):
    """LayerNorm over the last dim (matches nn.LayerNorm(C), eps=1e-5)."""
    mu = jnp.mean(x, axis=-1, keepdims=True)
    var = jnp.mean((x - mu) ** 2, axis=-1, keepdims=True)
    return (x - mu) * lax.rsqrt(var + eps) * w + b


def _gelu(x):
    # TODO(synk): PyTorch nn.GELU() default is the exact erf-GELU; using the
    # tanh approximation since erf is not guaranteed to lower in Mosaic.
    return jax.nn.gelu(x, approximate=True)


# --------------------------------------------------------------------------
# per-branch math (pure function of loaded values; one batch element)
# --------------------------------------------------------------------------
def _branch(patches, wconv, lnm_w, lnm_b,
            wp0t, bp0, wp1t, bp1, wc0, bc0, wc1, bc1,
            ln2d_w, ln2d_b, lno_w, lno_b, wscore):
    f32 = jnp.float32
    bf16 = jnp.bfloat16

    # Conv2d(Cin, C, kernel_size=k, stride=k, bias=False) == patch matmul.
    y = jnp.dot(patches, wconv, preferred_element_type=f32)              # (S, C)

    # ---- MixerBlock (num_blocks == 1) ------------------------------------
    # Token-mixing MLP: the S-contraction uses pre-transposed weights so the
    # activation keeps its (S, C) layout — no in-kernel transposes.
    z = _ln_last(y, lnm_w, lnm_b)
    h = jnp.dot(wp0t, z.astype(bf16), preferred_element_type=f32) + bp0  # (2S, C)
    h = _gelu(h)
    h = jnp.dot(wp1t, h.astype(bf16), preferred_element_type=f32) + bp1  # (S, C)
    y = y + h

    # Channel-mixing MLP.  The reference MixerBlock reuses ONE LayerNorm
    # instance (self.LN) for both pre-norms, so lnm_* is shared here too.
    z = _ln_last(y, lnm_w, lnm_b)
    h = jnp.dot(z.astype(bf16), wc0, preferred_element_type=f32) + bc0   # (S, 2C)
    h = _gelu(h)
    h = jnp.dot(h.astype(bf16), wc1, preferred_element_type=f32) + bc1   # (S, C)
    y = y + h

    # nn.LayerNorm([Patch_size, Channel_size]): joint norm over both dims.
    n = jnp.float32(y.shape[0] * y.shape[1])
    mu = jnp.sum(jnp.sum(y, axis=1, keepdims=True), axis=0, keepdims=True) / n
    d = y - mu
    var = jnp.sum(jnp.sum(d * d, axis=1, keepdims=True), axis=0, keepdims=True) / n
    y = d * lax.rsqrt(var + 1e-5) * ln2d_w + ln2d_b

    # Outer nn.LayerNorm(hidden_size).
    y = _ln_last(y, lno_w, lno_b)

    # score -> softmax over tokens -> attention-weighted pooling.
    e = jnp.sum(jnp.tanh(y) * wscore, axis=-1, keepdims=True)            # (S, 1)
    e = e - jnp.max(e, axis=0, keepdims=True)
    p = jnp.exp(e)
    inv = pl.reciprocal(jnp.sum(p, axis=0, keepdims=True), approx=True)  # EUP
    alpha = p * inv
    return jnp.sum(alpha * y, axis=0, keepdims=True)                     # (1, C)


# --------------------------------------------------------------------------
# fused kernel: 3 branches + SelectAttention, one batch element per grid step
# --------------------------------------------------------------------------
def _fused_kernel(*refs):
    out_ref = refs[-1]
    in_refs = refs[:-1]

    lno_w_ref, lno_b_ref, wscore_ref, wsel_ref, bsel_ref = \
        in_refs[_NUM_BRANCHES * _PER_BRANCH:]
    lno_w = lno_w_ref[...]
    lno_b = lno_b_ref[...]
    wscore = wscore_ref[...]

    C = out_ref.shape[-1]
    acc = bsel_ref[...]                                                  # (1, C)

    for i in range(_NUM_BRANCHES):
        (patches_ref, wconv_ref, lnm_w_ref, lnm_b_ref,
         wp0t_ref, bp0_ref, wp1t_ref, bp1_ref,
         wc0_ref, bc0_ref, wc1_ref, bc1_ref,
         ln2d_w_ref, ln2d_b_ref) = in_refs[i * _PER_BRANCH:(i + 1) * _PER_BRANCH]

        pooled = _branch(
            patches_ref[0],                                              # (S, K)
            wconv_ref[...],
            lnm_w_ref[...], lnm_b_ref[...],
            wp0t_ref[...], bp0_ref[...],
            wp1t_ref[...], bp1_ref[...],
            wc0_ref[...], bc0_ref[...],
            wc1_ref[...], bc1_ref[...],
            ln2d_w_ref[...], ln2d_b_ref[...],
            lno_w, lno_b, wscore)                                        # (1, C)

        # SelectAttention Linear(3C -> C) fused as three per-branch slabs
        # (avoids an in-kernel concat along lanes).
        acc = acc + jnp.dot(pooled.astype(jnp.bfloat16),
                            wsel_ref[i * C:(i + 1) * C, :],
                            preferred_element_type=jnp.float32)

    # NOTE: for production hidden sizes, pad C to a multiple of 128 for an
    # unmasked lane-dense store; at these shapes the output is tiny.
    out_ref[...] = acc[None].astype(out_ref.dtype)                       # (1,1,C)


# --------------------------------------------------------------------------
# glue (pooling / im2col layout preprocessing in plain JAX — fused by XLA)
# --------------------------------------------------------------------------
def _maxpool_2x2_s21_p01(x):
    # nn.MaxPool2d(kernel_size=2, stride=(2, 1), padding=(0, 1)) on NCHW
    return lax.reduce_window(
        x, -jnp.inf, lax.max,
        window_dimensions=(1, 1, 2, 2),
        window_strides=(1, 1, 2, 1),
        padding=((0, 0), (0, 0), (0, 0), (1, 1)))


def _extract_patches(x, kh, kw):
    # im2col for Conv2d with stride == kernel_size, no padding (NCHW input)
    B, Cin, H, W = x.shape
    OH = (H - kh) // kh + 1
    OW = (W - kw) // kw + 1
    x = x[:, :, :OH * kh, :OW * kw]
    x = x.reshape(B, Cin, OH, kh, OW, kw)
    x = jnp.transpose(x, (0, 2, 4, 1, 3, 5))        # (B, OH, OW, Cin, kh, kw)
    return x.reshape(B, OH * OW, Cin * kh * kw)     # (B, S, K)


def _const_spec(arr):
    zero = (0,) * arr.ndim
    return pl.BlockSpec(arr.shape, lambda b, _z=zero: _z)


def multi_mlp_forward(x, params, kernel_sizes):
    bf16 = jnp.bfloat16
    xp = _maxpool_2x2_s21_p01(x)                    # (B, Cin, H', W')
    sp = params["shared"]
    B = x.shape[0]
    C = sp["lno_w"].shape[-1]

    args, in_specs = [], []
    for i, (kh, kw) in enumerate(kernel_sizes):
        bp = params["branches"][i]
        patches = _extract_patches(xp, kh, kw).astype(bf16)   # (B, S, K)
        S, K = patches.shape[1], patches.shape[2]
        group = [
            patches,
            bp["wconv"].astype(bf16),
            bp["lnm_w"], bp["lnm_b"],
            bp["wp0t"].astype(bf16), bp["bp0"],
            bp["wp1t"].astype(bf16), bp["bp1"],
            bp["wc0"].astype(bf16), bp["bc0"],
            bp["wc1"].astype(bf16), bp["bc1"],
            bp["ln2d_w"], bp["ln2d_b"],
        ]
        specs = [pl.BlockSpec((1, S, K), lambda b: (b, 0, 0))]
        specs += [_const_spec(a) for a in group[1:]]
        args += group
        in_specs += specs

    shared_group = [sp["lno_w"], sp["lno_b"], sp["wscore"],
                    sp["wsel"].astype(bf16), sp["bsel"]]
    args += shared_group
    in_specs += [_const_spec(a) for a in shared_group]

    out = pl.pallas_call(
        _fused_kernel,
        out_shape=jax.ShapeDtypeStruct((B, 1, C), jnp.float32),
        grid=(B,),
        in_specs=in_specs,
        out_specs=pl.BlockSpec((1, 1, C), lambda b: (b, 0, 0)),
        compiler_params=pltpu.CompilerParams(
            dimension_semantics=("parallel",),
            vmem_limit_bytes=32 * 1024 * 1024),
    )(*args)
    return out[:, 0, :]                             # (B, C)


# --------------------------------------------------------------------------
# deterministic synthetic parameters (shapes follow Multi_MLP.__init__)
# --------------------------------------------------------------------------
def make_params(key, input_size, hidden_size, pooled_W, kernel_sizes):
    C = hidden_size
    keys = iter(jax.random.split(key, 64))

    def rnd(shape, fan_in):
        return (jax.random.normal(next(keys), shape, dtype=jnp.float32)
                / jnp.sqrt(jnp.float32(fan_in)))

    shared = dict(
        lno_w=jnp.ones((1, C), jnp.float32),        # outer LayerNorm(hidden)
        lno_b=jnp.zeros((1, C), jnp.float32),
        wscore=rnd((1, C), C),                      # score: Linear(hidden,1,bias=False)
        wsel=rnd((3 * C, C), 3 * C),                # SelectAttention: Linear(3C, C)
        bsel=rnd((1, C), 3 * C),
    )
    branches = []
    for (kh, kw) in kernel_sizes:
        S = pooled_W // kw                          # Patch_size = floor((W+1)/kw)
        K = input_size * kh * kw
        branches.append(dict(
            wconv=rnd((K, C), K),                   # Conv2d weight, im2col layout
            lnm_w=jnp.ones((1, C), jnp.float32),
            lnm_b=jnp.zeros((1, C), jnp.float32),
            # token-mixing weights stored pre-transposed (torch Linear layout)
            wp0t=rnd((2 * S, S), S), bp0=rnd((2 * S, 1), S),
            wp1t=rnd((S, 2 * S), 2 * S), bp1=rnd((S, 1), 2 * S),
            # channel-mixing weights stored (in, out)
            wc0=rnd((C, 2 * C), C), bc0=rnd((1, 2 * C), C),
            wc1=rnd((2 * C, C), 2 * C), bc1=rnd((1, C), 2 * C),
            ln2d_w=jnp.ones((S, C), jnp.float32),   # LayerNorm([S, C])
            ln2d_b=jnp.zeros((S, C), jnp.float32),
        ))
    return dict(shared=shared, branches=branches)


if __name__ == "__main__":
    # small shapes consistent with the module (iterable=1, num_blocks=1)
    B, Cin, H, W = 2, 4, 8, 11          # input_size=4, input_H=8, input_W=11
    hidden = 32
    kernel_sizes = ((4, 1), (4, 2), (4, 4))
    pooled_W = W + 1                    # MaxPool2d width output

    key = jax.random.PRNGKey(0)
    kx, kp = jax.random.split(key)
    x = jax.random.normal(kx, (B, Cin, H, W), dtype=jnp.float32)
    params = make_params(kp, Cin, hidden, pooled_W, kernel_sizes)

    fwd = jax.jit(functools.partial(multi_mlp_forward, kernel_sizes=kernel_sizes))
    out = jax.block_until_ready(fwd(x, params))

    assert out.shape == (B, hidden), out.shape
    assert bool(jnp.all(jnp.isfinite(out)))
    print("KERNEL_OK")
</pallas_src>

<mosaic_0001>
module attributes {stable_mosaic.version = 11 : i64} {
  func.func @_fused_kernel(%arg0: i32, %arg1: memref<1x12x16xbf16, #tpu.memory_space<vmem>>, %arg2: memref<16x32xbf16, #tpu.memory_space<vmem>>, %arg3: memref<1x32xf32, #tpu.memory_space<vmem>>, %arg4: memref<1x32xf32, #tpu.memory_space<vmem>>, %arg5: memref<24x12xbf16, #tpu.memory_space<vmem>>, %arg6: memref<24x1xf32, #tpu.memory_space<vmem>>, %arg7: memref<12x24xbf16, #tpu.memory_space<vmem>>, %arg8: memref<12x1xf32, #tpu.memory_space<vmem>>, %arg9: memref<32x64xbf16, #tpu.memory_space<vmem>>, %arg10: memref<1x64xf32, #tpu.memory_space<vmem>>, %arg11: memref<64x32xbf16, #tpu.memory_space<vmem>>, %arg12: memref<1x32xf32, #tpu.memory_space<vmem>>, %arg13: memref<12x32xf32, #tpu.memory_space<vmem>>, %arg14: memref<12x32xf32, #tpu.memory_space<vmem>>, %arg15: memref<1x6x32xbf16, #tpu.memory_space<vmem>>, %arg16: memref<32x32xbf16, #tpu.memory_space<vmem>>, %arg17: memref<1x32xf32, #tpu.memory_space<vmem>>, %arg18: memref<1x32xf32, #tpu.memory_space<vmem>>, %arg19: memref<12x6xbf16, #tpu.memory_space<vmem>>, %arg20: memref<12x1xf32, #tpu.memory_space<vmem>>, %arg21: memref<6x12xbf16, #tpu.memory_space<vmem>>, %arg22: memref<6x1xf32, #tpu.memory_space<vmem>>, %arg23: memref<32x64xbf16, #tpu.memory_space<vmem>>, %arg24: memref<1x64xf32, #tpu.memory_space<vmem>>, %arg25: memref<64x32xbf16, #tpu.memory_space<vmem>>, %arg26: memref<1x32xf32, #tpu.memory_space<vmem>>, %arg27: memref<6x32xf32, #tpu.memory_space<vmem>>, %arg28: memref<6x32xf32, #tpu.memory_space<vmem>>, %arg29: memref<1x3x64xbf16, #tpu.memory_space<vmem>>, %arg30: memref<64x32xbf16, #tpu.memory_space<vmem>>, %arg31: memref<1x32xf32, #tpu.memory_space<vmem>>, %arg32: memref<1x32xf32, #tpu.memory_space<vmem>>, %arg33: memref<6x3xbf16, #tpu.memory_space<vmem>>, %arg34: memref<6x1xf32, #tpu.memory_space<vmem>>, %arg35: memref<3x6xbf16, #tpu.memory_space<vmem>>, %arg36: memref<3x1xf32, #tpu.memory_space<vmem>>, %arg37: memref<32x64xbf16, #tpu.memory_space<vmem>>, %arg38: memref<1x64xf32, #tpu.memory_space<vmem>>, %arg39: memref<64x32xbf16, #tpu.memory_space<vmem>>, %arg40: memref<1x32xf32, #tpu.memory_space<vmem>>, %arg41: memref<3x32xf32, #tpu.memory_space<vmem>>, %arg42: memref<3x32xf32, #tpu.memory_space<vmem>>, %arg43: memref<1x32xf32, #tpu.memory_space<vmem>>, %arg44: memref<1x32xf32, #tpu.memory_space<vmem>>, %arg45: memref<1x32xf32, #tpu.memory_space<vmem>>, %arg46: memref<96x32xbf16, #tpu.memory_space<vmem>>, %arg47: memref<1x32xf32, #tpu.memory_space<vmem>>, %arg48: memref<1x1x32xf32, #tpu.memory_space<vmem>>) attributes {dimension_semantics = [#tpu.dimension_semantics<parallel>], iteration_bounds = array<i64: 2>, scalar_prefetch = 0 : i64, scratch_operands = 0 : i64, tpu.core_type = #tpu.core_type<tc>, window_params = [{transform_indices = @transform_0, window_bounds = array<i64: 1, 12, 16>}, {pipeline_mode = #tpu.pipeline_mode<synchronous>, transform_indices = @transform_1, window_bounds = array<i64: 16, 32>}, {pipeline_mode = #tpu.pipeline_mode<synchronous>, transform_indices = @transform_2, window_bounds = array<i64: 1, 32>}, {pipeline_mode = #tpu.pipeline_mode<synchronous>, transform_indices = @transform_3, window_bounds = array<i64: 1, 32>}, {pipeline_mode = #tpu.pipeline_mode<synchronous>, transform_indices = @transform_4, window_bounds = array<i64: 24, 12>}, {pipeline_mode = #tpu.pipeline_mode<synchronous>, transform_indices = @transform_5, window_bounds = array<i64: 24, 1>}, {pipeline_mode = #tpu.pipeline_mode<synchronous>, transform_indices = @transform_6, window_bounds = array<i64: 12, 24>}, {pipeline_mode = #tpu.pipeline_mode<synchronous>, transform_indices = @transform_7, window_bounds = array<i64: 12, 1>}, {pipeline_mode = #tpu.pipeline_mode<synchronous>, transform_indices = @transform_8, window_bounds = array<i64: 32, 64>}, {pipeline_mode = #tpu.pipeline_mode<synchronous>, transform_indices = @transform_9, window_bounds = array<i64: 1, 64>}, {pipeline_mode = #tpu.pipeline_mode<synchronous>, transform_indices = @transform_10, window_bounds = array<i64: 64, 32>}, {pipeline_mode = #tpu.pipeline_mode<synchronous>, transform_indices = @transform_11, window_bounds = array<i64: 1, 32>}, {pipeline_mode = #tpu.pipeline_mode<synchronous>, transform_indices = @transform_12, window_bounds = array<i64: 12, 32>}, {pipeline_mode = #tpu.pipeline_mode<synchronous>, transform_indices = @transform_13, window_bounds = array<i64: 12, 32>}, {transform_indices = @transform_14, window_bounds = array<i64: 1, 6, 32>}, {pipeline_mode = #tpu.pipeline_mode<synchronous>, transform_indices = @transform_15, window_bounds = array<i64: 32, 32>}, {pipeline_mode = #tpu.pipeline_mode<synchronous>, transform_indices = @transform_16, window_bounds = array<i64: 1, 32>}, {pipeline_mode = #tpu.pipeline_mode<synchronous>, transform_indices = @transform_17, window_bounds = array<i64: 1, 32>}, {pipeline_mode = #tpu.pipeline_mode<synchronous>, transform_indices = @transform_18, window_bounds = array<i64: 12, 6>}, {pipeline_mode = #tpu.pipeline_mode<synchronous>, transform_indices = @transform_19, window_bounds = array<i64: 12, 1>}, {pipeline_mode = #tpu.pipeline_mode<synchronous>, transform_indices = @transform_20, window_bounds = array<i64: 6, 12>}, {pipeline_mode = #tpu.pipeline_mode<synchronous>, transform_indices = @transform_21, window_bounds = array<i64: 6, 1>}, {pipeline_mode = #tpu.pipeline_mode<synchronous>, transform_indices = @transform_22, window_bounds = array<i64: 32, 64>}, {pipeline_mode = #tpu.pipeline_mode<synchronous>, transform_indices = @transform_23, window_bounds = array<i64: 1, 64>}, {pipeline_mode = #tpu.pipeline_mode<synchronous>, transform_indices = @transform_24, window_bounds = array<i64: 64, 32>}, {pipeline_mode = #tpu.pipeline_mode<synchronous>, transform_indices = @transform_25, window_bounds = array<i64: 1, 32>}, {pipeline_mode = #tpu.pipeline_mode<synchronous>, transform_indices = @transform_26, window_bounds = array<i64: 6, 32>}, {pipeline_mode = #tpu.pipeline_mode<synchronous>, transform_indices = @transform_27, window_bounds = array<i64: 6, 32>}, {transform_indices = @transform_28, window_bounds = array<i64: 1, 3, 64>}, {pipeline_mode = #tpu.pipeline_mode<synchronous>, transform_indices = @transform_29, window_bounds = array<i64: 64, 32>}, {pipeline_mode = #tpu.pipeline_mode<synchronous>, transform_indices = @transform_30, window_bounds = array<i64: 1, 32>}, {pipeline_mode = #tpu.pipeline_mode<synchronous>, transform_indices = @transform_31, window_bounds = array<i64: 1, 32>}, {pipeline_mode = #tpu.pipeline_mode<synchronous>, transform_indices = @transform_32, window_bounds = array<i64: 6, 3>}, {pipeline_mode = #tpu.pipeline_mode<synchronous>, transform_indices = @transform_33, window_bounds = array<i64: 6, 1>}, {pipeline_mode = #tpu.pipeline_mode<synchronous>, transform_indices = @transform_34, window_bounds = array<i64: 3, 6>}, {pipeline_mode = #tpu.pipeline_mode<synchronous>, transform_indices = @transform_35, window_bounds = array<i64: 3, 1>}, {pipeline_mode = #tpu.pipeline_mode<synchronous>, transform_indices = @transform_36, window_bounds = array<i64: 32, 64>}, {pipeline_mode = #tpu.pipeline_mode<synchronous>, transform_indices = @transform_37, window_bounds = array<i64: 1, 64>}, {pipeline_mode = #tpu.pipeline_mode<synchronous>, transform_indices = @transform_38, window_bounds = array<i64: 64, 32>}, {pipeline_mode = #tpu.pipeline_mode<synchronous>, transform_indices = @transform_39, window_bounds = array<i64: 1, 32>}, {pipeline_mode = #tpu.pipeline_mode<synchronous>, transform_indices = @transform_40, window_bounds = array<i64: 3, 32>}, {pipeline_mode = #tpu.pipeline_mode<synchronous>, transform_indices = @transform_41, window_bounds = array<i64: 3, 32>}, {pipeline_mode = #tpu.pipeline_mode<synchronous>, transform_indices = @transform_42, window_bounds = array<i64: 1, 32>}, {pipeline_mode = #tpu.pipeline_mode<synchronous>, transform_indices = @transform_43, window_bounds = array<i64: 1, 32>}, {pipeline_mode = #tpu.pipeline_mode<synchronous>, transform_indices = @transform_44, window_bounds = array<i64: 1, 32>}, {pipeline_mode = #tpu.pipeline_mode<synchronous>, transform_indices = @transform_45, window_bounds = array<i64: 96, 32>}, {pipeline_mode = #tpu.pipeline_mode<synchronous>, transform_indices = @transform_46, window_bounds = array<i64: 1, 32>}, {transform_indices = @transform_47, window_bounds = array<i64: 1, 1, 32>}]} {
    %c0 = arith.constant 0 : index
    %c0_0 = arith.constant 0 : index
    %0 = vector.load %arg43[%c0, %c0_0] : memref<1x32xf32, #tpu.memory_space<vmem>>, vector<1x32xf32>
    %c0_1 = arith.constant 0 : index
    %c0_2 = arith.constant 0 : index
    %1 = vector.load %arg44[%c0_1, %c0_2] : memref<1x32xf32, #tpu.memory_space<vmem>>, vector<1x32xf32>
    %c0_3 = arith.constant 0 : index
    %c0_4 = arith.constant 0 : index
    %2 = vector.load %arg45[%c0_3, %c0_4] : memref<1x32xf32, #tpu.memory_space<vmem>>, vector<1x32xf32>
    %c0_5 = arith.constant 0 : index
    %c0_6 = arith.constant 0 : index
    %3 = vector.load %arg47[%c0_5, %c0_6] : memref<1x32xf32, #tpu.memory_space<vmem>>, vector<1x32xf32>
    %c0_7 = arith.constant 0 : index
    %c0_8 = arith.constant 0 : index
    %c0_9 = arith.constant 0 : index
    %4 = vector.load %arg1[%c0_7, %c0_8, %c0_9] : memref<1x12x16xbf16, #tpu.memory_space<vmem>>, vector<1x12x16xbf16>
    %5 = vector.shape_cast %4 : vector<1x12x16xbf16> to vector<12x16xbf16>
    %c0_10 = arith.constant 0 : index
    %c0_11 = arith.constant 0 : index
    %6 = vector.load %arg2[%c0_10, %c0_11] : memref<16x32xbf16, #tpu.memory_space<vmem>>, vector<16x32xbf16>
    %c0_12 = arith.constant 0 : index
    %c0_13 = arith.constant 0 : index
    %7 = vector.load %arg3[%c0_12, %c0_13] : memref<1x32xf32, #tpu.memory_space<vmem>>, vector<1x32xf32>
    %c0_14 = arith.constant 0 : index
    %c0_15 = arith.constant 0 : index
    %8 = vector.load %arg4[%c0_14, %c0_15] : memref<1x32xf32, #tpu.memory_space<vmem>>, vector<1x32xf32>
    %c0_16 = arith.constant 0 : index
    %c0_17 = arith.constant 0 : index
    %9 = vector.load %arg5[%c0_16, %c0_17] : memref<24x12xbf16, #tpu.memory_space<vmem>>, vector<24x12xbf16>
    %c0_18 = arith.constant 0 : index
    %c0_19 = arith.constant 0 : index
    %10 = vector.load %arg6[%c0_18, %c0_19] : memref<24x1xf32, #tpu.memory_space<vmem>>, vector<24x1xf32>
    %c0_20 = arith.constant 0 : index
    %c0_21 = arith.constant 0 : index
    %11 = vector.load %arg7[%c0_20, %c0_21] : memref<12x24xbf16, #tpu.memory_space<vmem>>, vector<12x24xbf16>
    %c0_22 = arith.constant 0 : index
    %c0_23 = arith.constant 0 : index
    %12 = vector.load %arg8[%c0_22, %c0_23] : memref<12x1xf32, #tpu.memory_space<vmem>>, vector<12x1xf32>
    %c0_24 = arith.constant 0 : index
    %c0_25 = arith.constant 0 : index
    %13 = vector.load %arg9[%c0_24, %c0_25] : memref<32x64xbf16, #tpu.memory_space<vmem>>, vector<32x64xbf16>
    %c0_26 = arith.constant 0 : index
    %c0_27 = arith.constant 0 : index
    %14 = vector.load %arg10[%c0_26, %c0_27] : memref<1x64xf32, #tpu.memory_space<vmem>>, vector<1x64xf32>
    %c0_28 = arith.constant 0 : index
    %c0_29 = arith.constant 0 : index
    %15 = vector.load %arg11[%c0_28, %c0_29] : memref<64x32xbf16, #tpu.memory_space<vmem>>, vector<64x32xbf16>
    %c0_30 = arith.constant 0 : index
    %c0_31 = arith.constant 0 : index
    %16 = vector.load %arg12[%c0_30, %c0_31] : memref<1x32xf32, #tpu.memory_space<vmem>>, vector<1x32xf32>
    %c0_32 = arith.constant 0 : index
    %c0_33 = arith.constant 0 : index
    %17 = vector.load %arg13[%c0_32, %c0_33] : memref<12x32xf32, #tpu.memory_space<vmem>>, vector<12x32xf32>
    %c0_34 = arith.constant 0 : index
    %c0_35 = arith.constant 0 : index
    %18 = vector.load %arg14[%c0_34, %c0_35] : memref<12x32xf32, #tpu.memory_space<vmem>>, vector<12x32xf32>
    %cst = arith.constant dense<0.000000e+00> : vector<12x32xf32>
    %19 = tpu.matmul %5, %6, %cst {dimension_numbers = #tpu.dot_dimension_numbers<[1], [0], [0], [1], [0, 0, 1, 1], [], []>} : vector<12x16xbf16>, vector<16x32xbf16>, vector<12x32xf32> -> vector<12x32xf32>
    %cst_36 = arith.constant dense<0.000000e+00> : vector<12xf32>
    %20 = vector.multi_reduction <add>, %19, %cst_36 [1] : vector<12x32xf32> to vector<12xf32>
    %21 = vector.shape_cast %20 : vector<12xf32> to vector<12x1xf32>
    %cst_37 = arith.constant 3.200000e+01 : f32
    %22 = vector.broadcast %cst_37 : f32 to vector<12x1xf32>
    %23 = arith.divf %21, %22 : vector<12x1xf32>
    %24 = vector.broadcast %23 : vector<12x1xf32> to vector<12x32xf32>
    %25 = arith.subf %19, %24 : vector<12x32xf32>
    %26 = arith.mulf %25, %25 : vector<12x32xf32>
    %cst_38 = arith.constant dense<0.000000e+00> : vector<12xf32>
    %27 = vector.multi_reduction <add>, %26, %cst_38 [1] : vector<12x32xf32> to vector<12xf32>
    %28 = vector.shape_cast %27 : vector<12xf32> to vector<12x1xf32>
    %cst_39 = arith.constant 3.200000e+01 : f32
    %29 = vector.broadcast %cst_39 : f32 to vector<12x1xf32>
    %30 = arith.divf %28, %29 : vector<12x1xf32>
    %31 = vector.broadcast %23 : vector<12x1xf32> to vector<12x32xf32>
    %32 = arith.subf %19, %31 : vector<12x32xf32>
    %cst_40 = arith.constant 9.99999974E-6 : f32
    %33 = vector.broadcast %cst_40 : f32 to vector<12x1xf32>
    %34 = arith.addf %30, %33 : vector<12x1xf32>
    %35 = math.rsqrt %34 : vector<12x1xf32>
    %36 = vector.broadcast %35 : vector<12x1xf32> to vector<12x32xf32>
    %37 = arith.mulf %32, %36 : vector<12x32xf32>
    %38 = vector.broadcast %7 : vector<1x32xf32> to vector<12x32xf32>
    %39 = arith.mulf %37, %38 : vector<12x32xf32>
    %40 = vector.broadcast %8 : vector<1x32xf32> to vector<12x32xf32>
    %41 = arith.addf %39, %40 : vector<12x32xf32>
    %42 = arith.truncf %41 : vector<12x32xf32> to vector<12x32xbf16>
    %cst_41 = arith.constant dense<0.000000e+00> : vector<24x32xf32>
    %43 = tpu.matmul %9, %42, %cst_41 {dimension_numbers = #tpu.dot_dimension_numbers<[1], [0], [0], [1], [0, 0, 1, 1], [], []>} : vector<24x12xbf16>, vector<12x32xbf16>, vector<24x32xf32> -> vector<24x32xf32>
    %44 = vector.broadcast %10 : vector<24x1xf32> to vector<24x32xf32>
    %45 = arith.addf %43, %44 : vector<24x32xf32>
    %46 = arith.mulf %45, %45 : vector<24x32xf32>
    %47 = arith.mulf %45, %46 : vector<24x32xf32>
    %cst_42 = arith.constant 4.471500e-02 : f32
    %48 = vector.broadcast %cst_42 : f32 to vector<24x32xf32>
    %49 = arith.mulf %48, %47 : vector<24x32xf32>
    %50 = arith.addf %45, %49 : vector<24x32xf32>
    %cst_43 = arith.constant 0.797884583 : f32
    %51 = vector.broadcast %cst_43 : f32 to vector<24x32xf32>
    %52 = arith.mulf %51, %50 : vector<24x32xf32>
    %53 = math.tanh %52 : vector<24x32xf32>
    %cst_44 = arith.constant 1.000000e+00 : f32
    %54 = vector.broadcast %cst_44 : f32 to vector<24x32xf32>
    %55 = arith.addf %54, %53 : vector<24x32xf32>
    %cst_45 = arith.constant 5.000000e-01 : f32
    %56 = vector.broadcast %cst_45 : f32 to vector<24x32xf32>
    %57 = arith.mulf %56, %55 : vector<24x32xf32>
    %58 = arith.mulf %45, %57 : vector<24x32xf32>
    %59 = arith.truncf %58 : vector<24x32xf32> to vector<24x32xbf16>
    %cst_46 = arith.constant dense<0.000000e+00> : vector<12x32xf32>
    %60 = tpu.matmul %11, %59, %cst_46 {dimension_numbers = #tpu.dot_dimension_numbers<[1], [0], [0], [1], [0, 0, 1, 1], [], []>} : vector<12x24xbf16>, vector<24x32xbf16>, vector<12x32xf32> -> vector<12x32xf32>
    %61 = vector.broadcast %12 : vector<12x1xf32> to vector<12x32xf32>
    %62 = arith.addf %60, %61 : vector<12x32xf32>
    %63 = arith.addf %19, %62 : vector<12x32xf32>
    %cst_47 = arith.constant dense<0.000000e+00> : vector<12xf32>
    %64 = vector.multi_reduction <add>, %63, %cst_47 [1] : vector<12x32xf32> to vector<12xf32>
    %65 = vector.shape_cast %64 : vector<12xf32> to vector<12x1xf32>
    %cst_48 = arith.constant 3.200000e+01 : f32
    %66 = vector.broadcast %cst_48 : f32 to vector<12x1xf32>
    %67 = arith.divf %65, %66 : vector<12x1xf32>
    %68 = vector.broadcast %67 : vector<12x1xf32> to vector<12x32xf32>
    %69 = arith.subf %63, %68 : vector<12x32xf32>
    %70 = arith.mulf %69, %69 : vector<12x32xf32>
    %cst_49 = arith.constant dense<0.000000e+00> : vector<12xf32>
    %71 = vector.multi_reduction <add>, %70, %cst_49 [1] : vector<12x32xf32> to vector<12xf32>
    %72 = vector.shape_cast %71 : vector<12xf32> to vector<12x1xf32>
    %cst_50 = arith.constant 3.200000e+01 : f32
    %73 = vector.broadcast %cst_50 : f32 to vector<12x1xf32>
    %74 = arith.divf %72, %73 : vector<12x1xf32>
    %75 = vector.broadcast %67 : vector<12x1xf32> to vector<12x32xf32>
    %76 = arith.subf %63, %75 : vector<12x32xf32>
    %cst_51 = arith.constant 9.99999974E-6 : f32
    %77 = vector.broadcast %cst_51 : f32 to vector<12x1xf32>
    %78 = arith.addf %74, %77 : vector<12x1xf32>
    %79 = math.rsqrt %78 : vector<12x1xf32>
    %80 = vector.broadcast %79 : vector<12x1xf32> to vector<12x32xf32>
    %81 = arith.mulf %76, %80 : vector<12x32xf32>
    %82 = vector.broadcast %7 : vector<1x32xf32> to vector<12x32xf32>
    %83 = arith.mulf %81, %82 : vector<12x32xf32>
    %84 = vector.broadcast %8 : vector<1x32xf32> to vector<12x32xf32>
    %85 = arith.addf %83, %84 : vector<12x32xf32>
    %86 = arith.truncf %85 : vector<12x32xf32> to vector<12x32xbf16>
    %cst_52 = arith.constant dense<0.000000e+00> : vector<12x64xf32>
    %87 = tpu.matmul %86, %13, %cst_52 {dimension_numbers = #tpu.dot_dimension_numbers<[1], [0], [0], [1], [0, 0, 1, 1], [], []>} : vector<12x32xbf16>, vector<32x64xbf16>, vector<12x64xf32> -> vector<12x64xf32>
    %88 = vector.broadcast %14 : vector<1x64xf32> to vector<12x64xf32>
    %89 = arith.addf %87, %88 : vector<12x64xf32>
    %90 = arith.mulf %89, %89 : vector<12x64xf32>
    %91 = arith.mulf %89, %90 : vector<12x64xf32>
    %cst_53 = arith.constant 4.471500e-02 : f32
    %92 = vector.broadcast %cst_53 : f32 to vector<12x64xf32>
    %93 = arith.mulf %92, %91 : vector<12x64xf32>
    %94 = arith.addf %89, %93 : vector<12x64xf32>
    %cst_54 = arith.constant 0.797884583 : f32
    %95 = vector.broadcast %cst_54 : f32 to vector<12x64xf32>
    %96 = arith.mulf %95, %94 : vector<12x64xf32>
    %97 = math.tanh %96 : vector<12x64xf32>
    %cst_55 = arith.constant 1.000000e+00 : f32
    %98 = vector.broadcast %cst_55 : f32 to vector<12x64xf32>
    %99 = arith.addf %98, %97 : vector<12x64xf32>
    %cst_56 = arith.constant 5.000000e-01 : f32
    %100 = vector.broadcast %cst_56 : f32 to vector<12x64xf32>
    %101 = arith.mulf %100, %99 : vector<12x64xf32>
    %102 = arith.mulf %89, %101 : vector<12x64xf32>
    %103 = arith.truncf %102 : vector<12x64xf32> to vector<12x64xbf16>
    %cst_57 = arith.constant dense<0.000000e+00> : vector<12x32xf32>
    %104 = tpu.matmul %103, %15, %cst_57 {dimension_numbers = #tpu.dot_dimension_numbers<[1], [0], [0], [1], [0, 0, 1, 1], [], []>} : vector<12x64xbf16>, vector<64x32xbf16>, vector<12x32xf32> -> vector<12x32xf32>
    %105 = vector.broadcast %16 : vector<1x32xf32> to vector<12x32xf32>
    %106 = arith.addf %104, %105 : vector<12x32xf32>
    %107 = arith.addf %63, %106 : vector<12x32xf32>
    %cst_58 = arith.constant dense<0.000000e+00> : vector<12xf32>
    %108 = vector.multi_reduction <add>, %107, %cst_58 [1] : vector<12x32xf32> to vector<12xf32>
    %109 = vector.shape_cast %108 : vector<12xf32> to vector<12x1xf32>
    %cst_59 = arith.constant dense<0.000000e+00> : vector<1xf32>
    %110 = vector.multi_reduction <add>, %109, %cst_59 [0] : vector<12x1xf32> to vector<1xf32>
    %111 = vector.shape_cast %110 : vector<1xf32> to vector<1x1xf32>
    %cst_60 = arith.constant 3.840000e+02 : f32
    %112 = vector.broadcast %cst_60 : f32 to vector<1x1xf32>
    %113 = arith.divf %111, %112 : vector<1x1xf32>
    %114 = vector.broadcast %113 : vector<1x1xf32> to vector<12x32xf32>
    %115 = arith.subf %107, %114 : vector<12x32xf32>
    %116 = arith.mulf %115, %115 : vector<12x32xf32>
    %cst_61 = arith.constant dense<0.000000e+00> : vector<12xf32>
    %117 = vector.multi_reduction <add>, %116, %cst_61 [1] : vector<12x32xf32> to vector<12xf32>
    %118 = vector.shape_cast %117 : vector<12xf32> to vector<12x1xf32>
    %cst_62 = arith.constant dense<0.000000e+00> : vector<1xf32>
    %119 = vector.multi_reduction <add>, %118, %cst_62 [0] : vector<12x1xf32> to vector<1xf32>
    %120 = vector.shape_cast %119 : vector<1xf32> to vector<1x1xf32>
    %cst_63 = arith.constant 3.840000e+02 : f32
    %121 = vector.broadcast %cst_63 : f32 to vector<1x1xf32>
    %122 = arith.divf %120, %121 : vector<1x1xf32>
    %cst_64 = arith.constant 9.99999974E-6 : f32
    %123 = vector.broadcast %cst_64 : f32 to vector<1x1xf32>
    %124 = arith.addf %122, %123 : vector<1x1xf32>
    %125 = math.rsqrt %124 : vector<1x1xf32>
    %126 = vector.broadcast %125 : vector<1x1xf32> to vector<12x32xf32>
    %127 = arith.mulf %115, %126 : vector<12x32xf32>
    %128 = arith.mulf %127, %17 : vector<12x32xf32>
    %129 = arith.addf %128, %18 : vector<12x32xf32>
    %cst_65 = arith.constant dense<0.000000e+00> : vector<12xf32>
    %130 = vector.multi_reduction <add>, %129, %cst_65 [1] : vector<12x32xf32> to vector<12xf32>
    %131 = vector.shape_cast %130 : vector<12xf32> to vector<12x1xf32>
    %cst_66 = arith.constant 3.200000e+01 : f32
    %132 = vector.broadcast %cst_66 : f32 to vector<12x1xf32>
    %133 = arith.divf %131, %132 : vector<12x1xf32>
    %134 = vector.broadcast %133 : vector<12x1xf32> to vector<12x32xf32>
    %135 = arith.subf %129, %134 : vector<12x32xf32>
    %136 = arith.mulf %135, %135 : vector<12x32xf32>
    %cst_67 = arith.constant dense<0.000000e+00> : vector<12xf32>
    %137 = vector.multi_reduction <add>, %136, %cst_67 [1] : vector<12x32xf32> to vector<12xf32>
    %138 = vector.shape_cast %137 : vector<12xf32> to vector<12x1xf32>
    %cst_68 = arith.constant 3.200000e+01 : f32
    %139 = vector.broadcast %cst_68 : f32 to vector<12x1xf32>
    %140 = arith.divf %138, %139 : vector<12x1xf32>
    %141 = vector.broadcast %133 : vector<12x1xf32> to vector<12x32xf32>
    %142 = arith.subf %129, %141 : vector<12x32xf32>
    %cst_69 = arith.constant 9.99999974E-6 : f32
    %143 = vector.broadcast %cst_69 : f32 to vector<12x1xf32>
    %144 = arith.addf %140, %143 : vector<12x1xf32>
    %145 = math.rsqrt %144 : vector<12x1xf32>
    %146 = vector.broadcast %145 : vector<12x1xf32> to vector<12x32xf32>
    %147 = arith.mulf %142, %146 : vector<12x32xf32>
    %148 = vector.broadcast %0 : vector<1x32xf32> to vector<12x32xf32>
    %149 = arith.mulf %147, %148 : vector<12x32xf32>
    %150 = vector.broadcast %1 : vector<1x32xf32> to vector<12x32xf32>
    %151 = arith.addf %149, %150 : vector<12x32xf32>
    %152 = math.tanh %151 : vector<12x32xf32>
    %153 = vector.broadcast %2 : vector<1x32xf32> to vector<12x32xf32>
    %154 = arith.mulf %152, %153 : vector<12x32xf32>
    %cst_70 = arith.constant dense<0.000000e+00> : vector<12xf32>
    %155 = vector.multi_reduction <add>, %154, %cst_70 [1] : vector<12x32xf32> to vector<12xf32>
    %156 = vector.shape_cast %155 : vector<12xf32> to vector<12x1xf32>
    %cst_71 = arith.constant dense<0xFF800000> : vector<1xf32>
    %157 = vector.multi_reduction <maximumf>, %156, %cst_71 [0] : vector<12x1xf32> to vector<1xf32>
    %158 = vector.shape_cast %157 : vector<1xf32> to vector<1x1xf32>
    %159 = vector.broadcast %158 : vector<1x1xf32> to vector<12x1xf32>
    %160 = arith.subf %156, %159 : vector<12x1xf32>
    %161 = math.exp %160 : vector<12x1xf32>
    %cst_72 = arith.constant dense<0.000000e+00> : vector<1xf32>
    %162 = vector.multi_reduction <add>, %161, %cst_72 [0] : vector<12x1xf32> to vector<1xf32>
    %163 = vector.shape_cast %162 : vector<1xf32> to vector<1x1xf32>
    %164 = tpu.reciprocal %163 {approx = true} : vector<1x1xf32> -> vector<1x1xf32>
    %165 = vector.broadcast %164 : vector<1x1xf32> to vector<12x1xf32>
    %166 = arith.mulf %161, %165 : vector<12x1xf32>
    %167 = vector.broadcast %166 : vector<12x1xf32> to vector<12x32xf32>
    %168 = arith.mulf %167, %151 : vector<12x32xf32>
    %cst_73 = arith.constant dense<0.000000e+00> : vector<32xf32>
    %169 = vector.multi_reduction <add>, %168, %cst_73 [0] : vector<12x32xf32> to vector<32xf32>
    %170 = vector.shape_cast %169 : vector<32xf32> to vector<1x32xf32>
    %171 = arith.truncf %170 : vector<1x32xf32> to vector<1x32xbf16>
    %c0_74 = arith.constant 0 : index
    %c0_75 = arith.constant 0 : index
    %172 = vector.load %arg46[%c0_74, %c0_75] : memref<96x32xbf16, #tpu.memory_space<vmem>>, vector<32x32xbf16>
    %cst_76 = arith.constant dense<0.000000e+00> : vector<1x32xf32>
    %173 = tpu.matmul %171, %172, %cst_76 {dimension_numbers = #tpu.dot_dimension_numbers<[1], [0], [0], [1], [0, 0, 1, 1], [], []>} : vector<1x32xbf16>, vector<32x32xbf16>, vector<1x32xf32> -> vector<1x32xf32>
    %174 = arith.addf %3, %173 : vector<1x32xf32>
    %c0_77 = arith.constant 0 : index
    %c0_78 = arith.constant 0 : index
    %c0_79 = arith.constant 0 : index
    %175 = vector.load %arg15[%c0_77, %c0_78, %c0_79] : memref<1x6x32xbf16, #tpu.memory_space<vmem>>, vector<1x6x32xbf16>
    %176 = vector.shape_cast %175 : vector<1x6x32xbf16> to vector<6x32xbf16>
    %c0_80 = arith.constant 0 : index
    %c0_81 = arith.constant 0 : index
    %177 = vector.load %arg16[%c0_80, %c0_81] : memref<32x32xbf16, #tpu.memory_space<vmem>>, vector<32x32xbf16>
    %c0_82 = arith.constant 0 : index
    %c0_83 = arith.constant 0 : index
    %178 = vector.load %arg17[%c0_82, %c0_83] : memref<1x32xf32, #tpu.memory_space<vmem>>, vector<1x32xf32>
    %c0_84 = arith.constant 0 : index
    %c0_85 = arith.constant 0 : index
    %179 = vector.load %arg18[%c0_84, %c0_85] : memref<1x32xf32, #tpu.memory_space<vmem>>, vector<1x32xf32>
    %c0_86 = arith.constant 0 : index
    %c0_87 = arith.constant 0 : index
    %180 = vector.load %arg19[%c0_86, %c0_87] : memref<12x6xbf16, #tpu.memory_space<vmem>>, vector<12x6xbf16>
    %c0_88 = arith.constant 0 : index
    %c0_89 = arith.constant 0 : index
    %181 = vector.load %arg20[%c0_88, %c0_89] : memref<12x1xf32, #tpu.memory_space<vmem>>, vector<12x1xf32>
    %c0_90 = arith.constant 0 : index
    %c0_91 = arith.constant 0 : index
    %182 = vector.load %arg21[%c0_90, %c0_91] : memref<6x12xbf16, #tpu.memory_space<vmem>>, vector<6x12xbf16>
    %c0_92 = arith.constant 0 : index
    %c0_93 = arith.constant 0 : index
    %183 = vector.load %arg22[%c0_92, %c0_93] : memref<6x1xf32, #tpu.memory_space<vmem>>, vector<6x1xf32>
    %c0_94 = arith.constant 0 : index
    %c0_95 = arith.constant 0 : index
    %184 = vector.load %arg23[%c0_94, %c0_95] : memref<32x64xbf16, #tpu.memory_space<vmem>>, vector<32x64xbf16>
    %c0_96 = arith.constant 0 : index
    %c0_97 = arith.constant 0 : index
    %185 = vector.load %arg24[%c0_96, %c0_97] : memref<1x64xf32, #tpu.memory_space<vmem>>, vector<1x64xf32>
    %c0_98 = arith.constant 0 : index
    %c0_99 = arith.constant 0 : index
    %186 = vector.load %arg25[%c0_98, %c0_99] : memref<64x32xbf16, #tpu.memory_space<vmem>>, vector<64x32xbf16>
    %c0_100 = arith.constant 0 : index
    %c0_101 = arith.constant 0 : index
    %187 = vector.load %arg26[%c0_100, %c0_101] : memref<1x32xf32, #tpu.memory_space<vmem>>, vector<1x32xf32>
    %c0_102 = arith.constant 0 : index
    %c0_103 = arith.constant 0 : index
    %188 = vector.load %arg27[%c0_102, %c0_103] : memref<6x32xf32, #tpu.memory_space<vmem>>, vector<6x32xf32>
    %c0_104 = arith.constant 0 : index
    %c0_105 = arith.constant 0 : index
    %189 = vector.load %arg28[%c0_104, %c0_105] : memref<6x32xf32, #tpu.memory_space<vmem>>, vector<6x32xf32>
    %cst_106 = arith.constant dense<0.000000e+00> : vector<6x32xf32>
    %190 = tpu.matmul %176, %177, %cst_106 {dimension_numbers = #tpu.dot_dimension_numbers<[1], [0], [0], [1], [0, 0, 1, 1], [], []>} : vector<6x32xbf16>, vector<32x32xbf16>, vector<6x32xf32> -> vector<6x32xf32>
    %cst_107 = arith.constant dense<0.000000e+00> : vector<6xf32>
    %191 = vector.multi_reduction <add>, %190, %cst_107 [1] : vector<6x32xf32> to vector<6xf32>
    %192 = vector.shape_cast %191 : vector<6xf32> to vector<6x1xf32>
    %cst_108 = arith.constant 3.200000e+01 : f32
    %193 = vector.broadcast %cst_108 : f32 to vector<6x1xf32>
    %194 = arith.divf %192, %193 : vector<6x1xf32>
    %195 = vector.broadcast %194 : vector<6x1xf32> to vector<6x32xf32>
    %196 = arith.subf %190, %195 : vector<6x32xf32>
    %197 = arith.mulf %196, %196 : vector<6x32xf32>
    %cst_109 = arith.constant dense<0.000000e+00> : vector<6xf32>
    %198 = vector.multi_reduction <add>, %197, %cst_109 [1] : vector<6x32xf32> to vector<6xf32>
    %199 = vector.shape_cast %198 : vector<6xf32> to vector<6x1xf32>
    %cst_110 = arith.constant 3.200000e+01 : f32
    %200 = vector.broadcast %cst_110 : f32 to vector<6x1xf32>
    %201 = arith.divf %199, %200 : vector<6x1xf32>
    %202 = vector.broadcast %194 : vector<6x1xf32> to vector<6x32xf32>
    %203 = arith.subf %190, %202 : vector<6x32xf32>
    %cst_111 = arith.constant 9.99999974E-6 : f32
    %204 = vector.broadcast %cst_111 : f32 to vector<6x1xf32>
    %205 = arith.addf %201, %204 : vector<6x1xf32>
    %206 = math.rsqrt %205 : vector<6x1xf32>
    %207 = vector.broadcast %206 : vector<6x1xf32> to vector<6x32xf32>
    %208 = arith.mulf %203, %207 : vector<6x32xf32>
    %209 = vector.broadcast %178 : vector<1x32xf32> to vector<6x32xf32>
    %210 = arith.mulf %208, %209 : vector<6x32xf32>
    %211 = vector.broadcast %179 : vector<1x32xf32> to vector<6x32xf32>
    %212 = arith.addf %210, %211 : vector<6x32xf32>
    %213 = arith.truncf %212 : vector<6x32xf32> to vector<6x32xbf16>
    %cst_112 = arith.constant dense<0.000000e+00> : vector<12x32xf32>
    %214 = tpu.matmul %180, %213, %cst_112 {dimension_numbers = #tpu.dot_dimension_numbers<[1], [0], [0], [1], [0, 0, 1, 1], [], []>} : vector<12x6xbf16>, vector<6x32xbf16>, vector<12x32xf32> -> vector<12x32xf32>
    %215 = vector.broadcast %181 : vector<12x1xf32> to vector<12x32xf32>
    %216 = arith.addf %214, %215 : vector<12x32xf32>
    %217 = arith.mulf %216, %216 : vector<12x32xf32>
    %218 = arith.mulf %216, %217 : vector<12x32xf32>
    %cst_113 = arith.constant 4.471500e-02 : f32
    %219 = vector.broadcast %cst_113 : f32 to vector<12x32xf32>
    %220 = arith.mulf %219, %218 : vector<12x32xf32>
    %221 = arith.addf %216, %220 : vector<12x32xf32>
    %cst_114 = arith.constant 0.797884583 : f32
    %222 = vector.broadcast %cst_114 : f32 to vector<12x32xf32>
    %223 = arith.mulf %222, %221 : vector<12x32xf32>
    %224 = math.tanh %223 : vector<12x32xf32>
    %cst_115 = arith.constant 1.000000e+00 : f32
    %225 = vector.broadcast %cst_115 : f32 to vector<12x32xf32>
    %226 = arith.addf %225, %224 : vector<12x32xf32>
    %cst_116 = arith.constant 5.000000e-01 : f32
    %227 = vector.broadcast %cst_116 : f32 to vector<12x32xf32>
    %228 = arith.mulf %227, %226 : vector<12x32xf32>
    %229 = arith.mulf %216, %228 : vector<12x32xf32>
    %230 = arith.truncf %229 : vector<12x32xf32> to vector<12x32xbf16>
    %cst_117 = arith.constant dense<0.000000e+00> : vector<6x32xf32>
    %231 = tpu.matmul %182, %230, %cst_117 {dimension_numbers = #tpu.dot_dimension_numbers<[1], [0], [0], [1], [0, 0, 1, 1], [], []>} : vector<6x12xbf16>, vector<12x32xbf16>, vector<6x32xf32> -> vector<6x32xf32>
    %232 = vector.broadcast %183 : vector<6x1xf32> to vector<6x32xf32>
    %233 = arith.addf %231, %232 : vector<6x32xf32>
    %234 = arith.addf %190, %233 : vector<6x32xf32>
    %cst_118 = arith.constant dense<0.000000e+00> : vector<6xf32>
    %235 = vector.multi_reduction <add>, %234, %cst_118 [1] : vector<6x32xf32> to vector<6xf32>
    %236 = vector.shape_cast %235 : vector<6xf32> to vector<6x1xf32>
    %cst_119 = arith.constant 3.200000e+01 : f32
    %237 = vector.broadcast %cst_119 : f32 to vector<6x1xf32>
    %238 = arith.divf %236, %237 : vector<6x1xf32>
    %239 = vector.broadcast %238 : vector<6x1xf32> to vector<6x32xf32>
    %240 = arith.subf %234, %239 : vector<6x32xf32>
    %241 = arith.mulf %240, %240 : vector<6x32xf32>
    %cst_120 = arith.constant dense<0.000000e+00> : vector<6xf32>
    %242 = vector.multi_reduction <add>, %241, %cst_120 [1] : vector<6x32xf32> to vector<6xf32>
    %243 = vector.shape_cast %242 : vector<6xf32> to vector<6x1xf32>
    %cst_121 = arith.constant 3.200000e+01 : f32
    %244 = vector.broadcast %cst_121 : f32 to vector<6x1xf32>
    %245 = arith.divf %243, %244 : vector<6x1xf32>
    %246 = vector.broadcast %238 : vector<6x1xf32> to vector<6x32xf32>
    %247 = arith.subf %234, %246 : vector<6x32xf32>
    %cst_122 = arith.constant 9.99999974E-6 : f32
    %248 = vector.broadcast %cst_122 : f32 to vector<6x1xf32>
    %249 = arith.addf %245, %248 : vector<6x1xf32>
    %250 = math.rsqrt %249 : vector<6x1xf32>
    %251 = vector.broadcast %250 : vector<6x1xf32> to vector<6x32xf32>
    %252 = arith.mulf %247, %251 : vector<6x32xf32>
    %253 = vector.broadcast %178 : vector<1x32xf32> to vector<6x32xf32>
    %254 = arith.mulf %252, %253 : vector<6x32xf32>
    %255 = vector.broadcast %179 : vector<1x32xf32> to vector<6x32xf32>
    %256 = arith.addf %254, %255 : vector<6x32xf32>
    %257 = arith.truncf %256 : vector<6x32xf32> to vector<6x32xbf16>
    %cst_123 = arith.constant dense<0.000000e+00> : vector<6x64xf32>
    %258 = tpu.matmul %257, %184, %cst_123 {dimension_numbers = #tpu.dot_dimension_numbers<[1], [0], [0], [1], [0, 0, 1, 1], [], []>} : vector<6x32xbf16>, vector<32x64xbf16>, vector<6x64xf32> -> vector<6x64xf32>
    %259 = vector.broadcast %185 : vector<1x64xf32> to vector<6x64xf32>
    %260 = arith.addf %258, %259 : vector<6x64xf32>
    %261 = arith.mulf %260, %260 : vector<6x64xf32>
    %262 = arith.mulf %260, %261 : vector<6x64xf32>
    %cst_124 = arith.constant 4.471500e-02 : f32
    %263 = vector.broadcast %cst_124 : f32 to vector<6x64xf32>
    %264 = arith.mulf %263, %262 : vector<6x64xf32>
    %265 = arith.addf %260, %264 : vector<6x64xf32>
    %cst_125 = arith.constant 0.797884583 : f32
    %266 = vector.broadcast %cst_125 : f32 to vector<6x64xf32>
    %267 = arith.mulf %266, %265 : vector<6x64xf32>
    %268 = math.tanh %267 : vector<6x64xf32>
    %cst_126 = arith.constant 1.000000e+00 : f32
    %269 = vector.broadcast %cst_126 : f32 to vector<6x64xf32>
    %270 = arith.addf %269, %268 : vector<6x64xf32>
    %cst_127 = arith.constant 5.000000e-01 : f32
    %271 = vector.broadcast %cst_127 : f32 to vector<6x64xf32>
    %272 = arith.mulf %271, %270 : vector<6x64xf32>
    %273 = arith.mulf %260, %272 : vector<6x64xf32>
    %274 = arith.truncf %273 : vector<6x64xf32> to vector<6x64xbf16>
    %cst_128 = arith.constant dense<0.000000e+00> : vector<6x32xf32>
    %275 = tpu.matmul %274, %186, %cst_128 {dimension_numbers = #tpu.dot_dimension_numbers<[1], [0], [0], [1], [0, 0, 1, 1], [], []>} : vector<6x64xbf16>, vector<64x32xbf16>, vector<6x32xf32> -> vector<6x32xf32>
    %276 = vector.broadcast %187 : vector<1x32xf32> to vector<6x32xf32>
    %277 = arith.addf %275, %276 : vector<6x32xf32>
    %278 = arith.addf %234, %277 : vector<6x32xf32>
    %cst_129 = arith.constant dense<0.000000e+00> : vector<6xf32>
    %279 = vector.multi_reduction <add>, %278, %cst_129 [1] : vector<6x32xf32> to vector<6xf32>
    %280 = vector.shape_cast %279 : vector<6xf32> to vector<6x1xf32>
    %cst_130 = arith.constant dense<0.000000e+00> : vector<1xf32>
    %281 = vector.multi_reduction <add>, %280, %cst_130 [0] : vector<6x1xf32> to vector<1xf32>
    %282 = vector.shape_cast %281 : vector<1xf32> to vector<1x1xf32>
    %cst_131 = arith.constant 1.920000e+02 : f32
    %283 = vector.broadcast %cst_131 : f32 to vector<1x1xf32>
    %284 = arith.divf %282, %283 : vector<1x1xf32>
    %285 = vector.broadcast %284 : vector<1x1xf32> to vector<6x32xf32>
    %286 = arith.subf %278, %285 : vector<6x32xf32>
    %287 = arith.mulf %286, %286 : vector<6x32xf32>
    %cst_132 = arith.constant dense<0.000000e+00> : vector<6xf32>
    %288 = vector.multi_reduction <add>, %287, %cst_132 [1] : vector<6x32xf32> to vector<6xf32>
    %289 = vector.shape_cast %288 : vector<6xf32> to vector<6x1xf32>
    %cst_133 = arith.constant dense<0.000000e+00> : vector<1xf32>
    %290 = vector.multi_reduction <add>, %289, %cst_133 [0] : vector<6x1xf32> to vector<1xf32>
    %291 = vector.shape_cast %290 : vector<1xf32> to vector<1x1xf32>
    %cst_134 = arith.constant 1.920000e+02 : f32
    %292 = vector.broadcast %cst_134 : f32 to vector<1x1xf32>
    %293 = arith.divf %291, %292 : vector<1x1xf32>
    %cst_135 = arith.constant 9.99999974E-6 : f32
    %294 = vector.broadcast %cst_135 : f32 to vector<1x1xf32>
    %295 = arith.addf %293, %294 : vector<1x1xf32>
    %296 = math.rsqrt %295 : vector<1x1xf32>
    %297 = vector.broadcast %296 : vector<1x1xf32> to vector<6x32xf32>
    %298 = arith.mulf %286, %297 : vector<6x32xf32>
    %299 = arith.mulf %298, %188 : vector<6x32xf32>
    %300 = arith.addf %299, %189 : vector<6x32xf32>
    %cst_136 = arith.constant dense<0.000000e+00> : vector<6xf32>
    %301 = vector.multi_reduction <add>, %300, %cst_136 [1] : vector<6x32xf32> to vector<6xf32>
    %302 = vector.shape_cast %301 : vector<6xf32> to vector<6x1xf32>
    %cst_137 = arith.constant 3.200000e+01 : f32
    %303 = vector.broadcast %cst_137 : f32 to vector<6x1xf32>
    %304 = arith.divf %302, %303 : vector<6x1xf32>
    %305 = vector.broadcast %304 : vector<6x1xf32> to vector<6x32xf32>
    %306 = arith.subf %300, %305 : vector<6x32xf32>
    %307 = arith.mulf %306, %306 : vector<6x32xf32>
    %cst_138 = arith.constant dense<0.000000e+00> : vector<6xf32>
    %308 = vector.multi_reduction <add>, %307, %cst_138 [1] : vector<6x32xf32> to vector<6xf32>
    %309 = vector.shape_cast %308 : vector<6xf32> to vector<6x1xf32>
    %cst_139 = arith.constant 3.200000e+01 : f32
    %310 = vector.broadcast %cst_139 : f32 to vector<6x1xf32>
    %311 = arith.divf %309, %310 : vector<6x1xf32>
    %312 = vector.broadcast %304 : vector<6x1xf32> to vector<6x32xf32>
    %313 = arith.subf %300, %312 : vector<6x32xf32>
    %cst_140 = arith.constant 9.99999974E-6 : f32
    %314 = vector.broadcast %cst_140 : f32 to vector<6x1xf32>
    %315 = arith.addf %311, %314 : vector<6x1xf32>
    %316 = math.rsqrt %315 : vector<6x1xf32>
    %317 = vector.broadcast %316 : vector<6x1xf32> to vector<6x32xf32>
    %318 = arith.mulf %313, %317 : vector<6x32xf32>
    %319 = vector.broadcast %0 : vector<1x32xf32> to vector<6x32xf32>
    %320 = arith.mulf %318, %319 : vector<6x32xf32>
    %321 = vector.broadcast %1 : vector<1x32xf32> to vector<6x32xf32>
    %322 = arith.addf %320, %321 : vector<6x32xf32>
    %323 = math.tanh %322 : vector<6x32xf32>
    %324 = vector.broadcast %2 : vector<1x32xf32> to vector<6x32xf32>
    %325 = arith.mulf %323, %324 : vector<6x32xf32>
    %cst_141 = arith.constant dense<0.000000e+00> : vector<6xf32>
    %326 = vector.multi_reduction <add>, %325, %cst_141 [1] : vector<6x32xf32> to vector<6xf32>
    %327 = vector.shape_cast %326 : vector<6xf32> to vector<6x1xf32>
    %cst_142 = arith.constant dense<0xFF800000> : vector<1xf32>
    %328 = vector.multi_reduction <maximumf>, %327, %cst_142 [0] : vector<6x1xf32> to vector<1xf32>
    %329 = vector.shape_cast %328 : vector<1xf32> to vector<1x1xf32>
    %330 = vector.broadcast %329 : vector<1x1xf32> to vector<6x1xf32>
    %331 = arith.subf %327, %330 : vector<6x1xf32>
    %332 = math.exp %331 : vector<6x1xf32>
    %cst_143 = arith.constant dense<0.000000e+00> : vector<1xf32>
    %333 = vector.multi_reduction <add>, %332, %cst_143 [0] : vector<6x1xf32> to vector<1xf32>
    %334 = vector.shape_cast %333 : vector<1xf32> to vector<1x1xf32>
    %335 = tpu.reciprocal %334 {approx = true} : vector<1x1xf32> -> vector<1x1xf32>
    %336 = vector.broadcast %335 : vector<1x1xf32> to vector<6x1xf32>
    %337 = arith.mulf %332, %336 : vector<6x1xf32>
    %338 = vector.broadcast %337 : vector<6x1xf32> to vector<6x32xf32>
    %339 = arith.mulf %338, %322 : vector<6x32xf32>
    %cst_144 = arith.constant dense<0.000000e+00> : vector<32xf32>
    %340 = vector.multi_reduction <add>, %339, %cst_144 [0] : vector<6x32xf32> to vector<32xf32>
    %341 = vector.shape_cast %340 : vector<32xf32> to vector<1x32xf32>
    %342 = arith.truncf %341 : vector<1x32xf32> to vector<1x32xbf16>
    %c32 = arith.constant 32 : index
    %c0_145 = arith.constant 0 : index
    %343 = vector.load %arg46[%c32, %c0_145] : memref<96x32xbf16, #tpu.memory_space<vmem>>, vector<32x32xbf16>
    %cst_146 = arith.constant dense<0.000000e+00> : vector<1x32xf32>
    %344 = tpu.matmul %342, %343, %cst_146 {dimension_numbers = #tpu.dot_dimension_numbers<[1], [0], [0], [1], [0, 0, 1, 1], [], []>} : vector<1x32xbf16>, vector<32x32xbf16>, vector<1x32xf32> -> vector<1x32xf32>
    %345 = arith.addf %174, %344 : vector<1x32xf32>
    %c0_147 = arith.constant 0 : index
    %c0_148 = arith.constant 0 : index
    %c0_149 = arith.constant 0 : index
    %346 = vector.load %arg29[%c0_147, %c0_148, %c0_149] : memref<1x3x64xbf16, #tpu.memory_space<vmem>>, vector<1x3x64xbf16>
    %347 = vector.shape_cast %346 : vector<1x3x64xbf16> to vector<3x64xbf16>
    %c0_150 = arith.constant 0 : index
    %c0_151 = arith.constant 0 : index
    %348 = vector.load %arg30[%c0_150, %c0_151] : memref<64x32xbf16, #tpu.memory_space<vmem>>, vector<64x32xbf16>
    %c0_152 = arith.constant 0 : index
    %c0_153 = arith.constant 0 : index
    %349 = vector.load %arg31[%c0_152, %c0_153] : memref<1x32xf32, #tpu.memory_space<vmem>>, vector<1x32xf32>
    %c0_154 = arith.constant 0 : index
    %c0_155 = arith.constant 0 : index
    %350 = vector.load %arg32[%c0_154, %c0_155] : memref<1x32xf32, #tpu.memory_space<vmem>>, vector<1x32xf32>
    %c0_156 = arith.constant 0 : index
    %c0_157 = arith.constant 0 : index
    %351 = vector.load %arg33[%c0_156, %c0_157] : memref<6x3xbf16, #tpu.memory_space<vmem>>, vector<6x3xbf16>
    %c0_158 = arith.constant 0 : index
    %c0_159 = arith.constant 0 : index
    %352 = vector.load %arg34[%c0_158, %c0_159] : memref<6x1xf32, #tpu.memory_space<vmem>>, vector<6x1xf32>
    %c0_160 = arith.constant 0 : index
    %c0_161 = arith.constant 0 : index
    %353 = vector.load %arg35[%c0_160, %c0_161] : memref<3x6xbf16, #tpu.memory_space<vmem>>, vector<3x6xbf16>
    %c0_162 = arith.constant 0 : index
    %c0_163 = arith.constant 0 : index
    %354 = vector.load %arg36[%c0_162, %c0_163] : memref<3x1xf32, #tpu.memory_space<vmem>>, vector<3x1xf32>
    %c0_164 = arith.constant 0 : index
    %c0_165 = arith.constant 0 : index
    %355 = vector.load %arg37[%c0_164, %c0_165] : memref<32x64xbf16, #tpu.memory_space<vmem>>, vector<32x64xbf16>
    %c0_166 = arith.constant 0 : index
    %c0_167 = arith.constant 0 : index
    %356 = vector.load %arg38[%c0_166, %c0_167] : memref<1x64xf32, #tpu.memory_space<vmem>>, vector<1x64xf32>
    %c0_168 = arith.constant 0 : index
    %c0_169 = arith.constant 0 : index
    %357 = vector.load %arg39[%c0_168, %c0_169] : memref<64x32xbf16, #tpu.memory_space<vmem>>, vector<64x32xbf16>
    %c0_170 = arith.constant 0 : index
    %c0_171 = arith.constant 0 : index
    %358 = vector.load %arg40[%c0_170, %c0_171] : memref<1x32xf32, #tpu.memory_space<vmem>>, vector<1x32xf32>
    %c0_172 = arith.constant 0 : index
    %c0_173 = arith.constant 0 : index
    %359 = vector.load %arg41[%c0_172, %c0_173] : memref<3x32xf32, #tpu.memory_space<vmem>>, vector<3x32xf32>
    %c0_174 = arith.constant 0 : index
    %c0_175 = arith.constant 0 : index
    %360 = vector.load %arg42[%c0_174, %c0_175] : memref<3x32xf32, #tpu.memory_space<vmem>>, vector<3x32xf32>
    %cst_176 = arith.constant dense<0.000000e+00> : vector<3x32xf32>
    %361 = tpu.matmul %347, %348, %cst_176 {dimension_numbers = #tpu.dot_dimension_numbers<[1], [0], [0], [1], [0, 0, 1, 1], [], []>} : vector<3x64xbf16>, vector<64x32xbf16>, vector<3x32xf32> -> vector<3x32xf32>
    %cst_177 = arith.constant dense<0.000000e+00> : vector<3xf32>
    %362 = vector.multi_reduction <add>, %361, %cst_177 [1] : vector<3x32xf32> to vector<3xf32>
    %363 = vector.shape_cast %362 : vector<3xf32> to vector<3x1xf32>
    %cst_178 = arith.constant 3.200000e+01 : f32
    %364 = vector.broadcast %cst_178 : f32 to vector<3x1xf32>
    %365 = arith.divf %363, %364 : vector<3x1xf32>
    %366 = vector.broadcast %365 : vector<3x1xf32> to vector<3x32xf32>
    %367 = arith.subf %361, %366 : vector<3x32xf32>
    %368 = arith.mulf %367, %367 : vector<3x32xf32>
    %cst_179 = arith.constant dense<0.000000e+00> : vector<3xf32>
    %369 = vector.multi_reduction <add>, %368, %cst_179 [1] : vector<3x32xf32> to vector<3xf32>
    %370 = vector.shape_cast %369 : vector<3xf32> to vector<3x1xf32>
    %cst_180 = arith.constant 3.200000e+01 : f32
    %371 = vector.broadcast %cst_180 : f32 to vector<3x1xf32>
    %372 = arith.divf %370, %371 : vector<3x1xf32>
    %373 = vector.broadcast %365 : vector<3x1xf32> to vector<3x32xf32>
    %374 = arith.subf %361, %373 : vector<3x32xf32>
    %cst_181 = arith.constant 9.99999974E-6 : f32
    %375 = vector.broadcast %cst_181 : f32 to vector<3x1xf32>
    %376 = arith.addf %372, %375 : vector<3x1xf32>
    %377 = math.rsqrt %376 : vector<3x1xf32>
    %378 = vector.broadcast %377 : vector<3x1xf32> to vector<3x32xf32>
    %379 = arith.mulf %374, %378 : vector<3x32xf32>
    %380 = vector.broadcast %349 : vector<1x32xf32> to vector<3x32xf32>
    %381 = arith.mulf %379, %380 : vector<3x32xf32>
    %382 = vector.broadcast %350 : vector<1x32xf32> to vector<3x32xf32>
    %383 = arith.addf %381, %382 : vector<3x32xf32>
    %384 = arith.truncf %383 : vector<3x32xf32> to vector<3x32xbf16>
    %cst_182 = arith.constant dense<0.000000e+00> : vector<6x32xf32>
    %385 = tpu.matmul %351, %384, %cst_182 {dimension_numbers = #tpu.dot_dimension_numbers<[1], [0], [0], [1], [0, 0, 1, 1], [], []>} : vector<6x3xbf16>, vector<3x32xbf16>, vector<6x32xf32> -> vector<6x32xf32>
    %386 = vector.broadcast %352 : vector<6x1xf32> to vector<6x32xf32>
    %387 = arith.addf %385, %386 : vector<6x32xf32>
    %388 = arith.mulf %387, %387 : vector<6x32xf32>
    %389 = arith.mulf %387, %388 : vector<6x32xf32>
    %cst_183 = arith.constant 4.471500e-02 : f32
    %390 = vector.broadcast %cst_183 : f32 to vector<6x32xf32>
    %391 = arith.mulf %390, %389 : vector<6x32xf32>
    %392 = arith.addf %387, %391 : vector<6x32xf32>
    %cst_184 = arith.constant 0.797884583 : f32
    %393 = vector.broadcast %cst_184 : f32 to vector<6x32xf32>
    %394 = arith.mulf %393, %392 : vector<6x32xf32>
    %395 = math.tanh %394 : vector<6x32xf32>
    %cst_185 = arith.constant 1.000000e+00 : f32
    %396 = vector.broadcast %cst_185 : f32 to vector<6x32xf32>
    %397 = arith.addf %396, %395 : vector<6x32xf32>
    %cst_186 = arith.constant 5.000000e-01 : f32
    %398 = vector.broadcast %cst_186 : f32 to vector<6x32xf32>
    %399 = arith.mulf %398, %397 : vector<6x32xf32>
    %400 = arith.mulf %387, %399 : vector<6x32xf32>
    %401 = arith.truncf %400 : vector<6x32xf32> to vector<6x32xbf16>
    %cst_187 = arith.constant dense<0.000000e+00> : vector<3x32xf32>
    %402 = tpu.matmul %353, %401, %cst_187 {dimension_numbers = #tpu.dot_dimension_numbers<[1], [0], [0], [1], [0, 0, 1, 1], [], []>} : vector<3x6xbf16>, vector<6x32xbf16>, vector<3x32xf32> -> vector<3x32xf32>
    %403 = vector.broadcast %354 : vector<3x1xf32> to vector<3x32xf32>
    %404 = arith.addf %402, %403 : vector<3x32xf32>
    %405 = arith.addf %361, %404 : vector<3x32xf32>
    %cst_188 = arith.constant dense<0.000000e+00> : vector<3xf32>
    %406 = vector.multi_reduction <add>, %405, %cst_188 [1] : vector<3x32xf32> to vector<3xf32>
    %407 = vector.shape_cast %406 : vector<3xf32> to vector<3x1xf32>
    %cst_189 = arith.constant 3.200000e+01 : f32
    %408 = vector.broadcast %cst_189 : f32 to vector<3x1xf32>
    %409 = arith.divf %407, %408 : vector<3x1xf32>
    %410 = vector.broadcast %409 : vector<3x1xf32> to vector<3x32xf32>
    %411 = arith.subf %405, %410 : vector<3x32xf32>
    %412 = arith.mulf %411, %411 : vector<3x32xf32>
    %cst_190 = arith.constant dense<0.000000e+00> : vector<3xf32>
    %413 = vector.multi_reduction <add>, %412, %cst_190 [1] : vector<3x32xf32> to vector<3xf32>
    %414 = vector.shape_cast %413 : vector<3xf32> to vector<3x1xf32>
    %cst_191 = arith.constant 3.200000e+01 : f32
    %415 = vector.broadcast %cst_191 : f32 to vector<3x1xf32>
    %416 = arith.divf %414, %415 : vector<3x1xf32>
    %417 = vector.broadcast %409 : vector<3x1xf32> to vector<3x32xf32>
    %418 = arith.subf %405, %417 : vector<3x32xf32>
    %cst_192 = arith.constant 9.99999974E-6 : f32
    %419 = vector.broadcast %cst_192 : f32 to vector<3x1xf32>
    %420 = arith.addf %416, %419 : vector<3x1xf32>
    %421 = math.rsqrt %420 : vector<3x1xf32>
    %422 = vector.broadcast %421 : vector<3x1xf32> to vector<3x32xf32>
    %423 = arith.mulf %418, %422 : vector<3x32xf32>
    %424 = vector.broadcast %349 : vector<1x32xf32> to vector<3x32xf32>
    %425 = arith.mulf %423, %424 : vector<3x32xf32>
    %426 = vector.broadcast %350 : vector<1x32xf32> to vector<3x32xf32>
    %427 = arith.addf %425, %426 : vector<3x32xf32>
    %428 = arith.truncf %427 : vector<3x32xf32> to vector<3x32xbf16>
    %cst_193 = arith.constant dense<0.000000e+00> : vector<3x64xf32>
    %429 = tpu.matmul %428, %355, %cst_193 {dimension_numbers = #tpu.dot_dimension_numbers<[1], [0], [0], [1], [0, 0, 1, 1], [], []>} : vector<3x32xbf16>, vector<32x64xbf16>, vector<3x64xf32> -> vector<3x64xf32>
    %430 = vector.broadcast %356 : vector<1x64xf32> to vector<3x64xf32>
    %431 = arith.addf %429, %430 : vector<3x64xf32>
    %432 = arith.mulf %431, %431 : vector<3x64xf32>
    %433 = arith.mulf %431, %432 : vector<3x64xf32>
    %cst_194 = arith.constant 4.471500e-02 : f32
    %434 = vector.broadcast %cst_194 : f32 to vector<3x64xf32>
    %435 = arith.mulf %434, %433 : vector<3x64xf32>
    %436 = arith.addf %431, %435 : vector<3x64xf32>
    %cst_195 = arith.constant 0.797884583 : f32
    %437 = vector.broadcast %cst_195 : f32 to vector<3x64xf32>
    %438 = arith.mulf %437, %436 : vector<3x64xf32>
    %439 = math.tanh %438 : vector<3x64xf32>
    %cst_196 = arith.constant 1.000000e+00 : f32
    %440 = vector.broadcast %cst_196 : f32 to vector<3x64xf32>
    %441 = arith.addf %440, %439 : vector<3x64xf32>
    %cst_197 = arith.constant 5.000000e-01 : f32
    %442 = vector.broadcast %cst_197 : f32 to vector<3x64xf32>
    %443 = arith.mulf %442, %441 : vector<3x64xf32>
    %444 = arith.mulf %431, %443 : vector<3x64xf32>
    %445 = arith.truncf %444 : vector<3x64xf32> to vector<3x64xbf16>
    %cst_198 = arith.constant dense<0.000000e+00> : vector<3x32xf32>
    %446 = tpu.matmul %445, %357, %cst_198 {dimension_numbers = #tpu.dot_dimension_numbers<[1], [0], [0], [1], [0, 0, 1, 1], [], []>} : vector<3x64xbf16>, vector<64x32xbf16>, vector<3x32xf32> -> vector<3x32xf32>
    %447 = vector.broadcast %358 : vector<1x32xf32> to vector<3x32xf32>
    %448 = arith.addf %446, %447 : vector<3x32xf32>
    %449 = arith.addf %405, %448 : vector<3x32xf32>
    %cst_199 = arith.constant dense<0.000000e+00> : vector<3xf32>
    %450 = vector.multi_reduction <add>, %449, %cst_199 [1] : vector<3x32xf32> to vector<3xf32>
    %451 = vector.shape_cast %450 : vector<3xf32> to vector<3x1xf32>
    %cst_200 = arith.constant dense<0.000000e+00> : vector<1xf32>
    %452 = vector.multi_reduction <add>, %451, %cst_200 [0] : vector<3x1xf32> to vector<1xf32>
    %453 = vector.shape_cast %452 : vector<1xf32> to vector<1x1xf32>
    %cst_201 = arith.constant 9.600000e+01 : f32
    %454 = vector.broadcast %cst_201 : f32 to vector<1x1xf32>
    %455 = arith.divf %453, %454 : vector<1x1xf32>
    %456 = vector.broadcast %455 : vector<1x1xf32> to vector<3x32xf32>
    %457 = arith.subf %449, %456 : vector<3x32xf32>
    %458 = arith.mulf %457, %457 : vector<3x32xf32>
    %cst_202 = arith.constant dense<0.000000e+00> : vector<3xf32>
    %459 = vector.multi_reduction <add>, %458, %cst_202 [1] : vector<3x32xf32> to vector<3xf32>
    %460 = vector.shape_cast %459 : vector<3xf32> to vector<3x1xf32>
    %cst_203 = arith.constant dense<0.000000e+00> : vector<1xf32>
    %461 = vector.multi_reduction <add>, %460, %cst_203 [0] : vector<3x1xf32> to vector<1xf32>
    %462 = vector.shape_cast %461 : vector<1xf32> to vector<1x1xf32>
    %cst_204 = arith.constant 9.600000e+01 : f32
    %463 = vector.broadcast %cst_204 : f32 to vector<1x1xf32>
    %464 = arith.divf %462, %463 : vector<1x1xf32>
    %cst_205 = arith.constant 9.99999974E-6 : f32
    %465 = vector.broadcast %cst_205 : f32 to vector<1x1xf32>
    %466 = arith.addf %464, %465 : vector<1x1xf32>
    %467 = math.rsqrt %466 : vector<1x1xf32>
    %468 = vector.broadcast %467 : vector<1x1xf32> to vector<3x32xf32>
    %469 = arith.mulf %457, %468 : vector<3x32xf32>
    %470 = arith.mulf %469, %359 : vector<3x32xf32>
    %471 = arith.addf %470, %360 : vector<3x32xf32>
    %cst_206 = arith.constant dense<0.000000e+00> : vector<3xf32>
    %472 = vector.multi_reduction <add>, %471, %cst_206 [1] : vector<3x32xf32> to vector<3xf32>
    %473 = vector.shape_cast %472 : vector<3xf32> to vector<3x1xf32>
    %cst_207 = arith.constant 3.200000e+01 : f32
    %474 = vector.broadcast %cst_207 : f32 to vector<3x1xf32>
    %475 = arith.divf %473, %474 : vector<3x1xf32>
    %476 = vector.broadcast %475 : vector<3x1xf32> to vector<3x32xf32>
    %477 = arith.subf %471, %476 : vector<3x32xf32>
    %478 = arith.mulf %477, %477 : vector<3x32xf32>
    %cst_208 = arith.constant dense<0.000000e+00> : vector<3xf32>
    %479 = vector.multi_reduction <add>, %478, %cst_208 [1] : vector<3x32xf32> to vector<3xf32>
    %480 = vector.shape_cast %479 : vector<3xf32> to vector<3x1xf32>
    %cst_209 = arith.constant 3.200000e+01 : f32
    %481 = vector.broadcast %cst_209 : f32 to vector<3x1xf32>
    %482 = arith.divf %480, %481 : vector<3x1xf32>
    %483 = vector.broadcast %475 : vector<3x1xf32> to vector<3x32xf32>
    %484 = arith.subf %471, %483 : vector<3x32xf32>
    %cst_210 = arith.constant 9.99999974E-6 : f32
    %485 = vector.broadcast %cst_210 : f32 to vector<3x1xf32>
    %486 = arith.addf %482, %485 : vector<3x1xf32>
    %487 = math.rsqrt %486 : vector<3x1xf32>
    %488 = vector.broadcast %487 : vector<3x1xf32> to vector<3x32xf32>
    %489 = arith.mulf %484, %488 : vector<3x32xf32>
    %490 = vector.broadcast %0 : vector<1x32xf32> to vector<3x32xf32>
    %491 = arith.mulf %489, %490 : vector<3x32xf32>
    %492 = vector.broadcast %1 : vector<1x32xf32> to vector<3x32xf32>
    %493 = arith.addf %491, %492 : vector<3x32xf32>
    %494 = math.tanh %493 : vector<3x32xf32>
    %495 = vector.broadcast %2 : vector<1x32xf32> to vector<3x32xf32>
    %496 = arith.mulf %494, %495 : vector<3x32xf32>
    %cst_211 = arith.constant dense<0.000000e+00> : vector<3xf32>
    %497 = vector.multi_reduction <add>, %496, %cst_211 [1] : vector<3x32xf32> to vector<3xf32>
    %498 = vector.shape_cast %497 : vector<3xf32> to vector<3x1xf32>
    %cst_212 = arith.constant dense<0xFF800000> : vector<1xf32>
    %499 = vector.multi_reduction <maximumf>, %498, %cst_212 [0] : vector<3x1xf32> to vector<1xf32>
    %500 = vector.shape_cast %499 : vector<1xf32> to vector<1x1xf32>
    %501 = vector.broadcast %500 : vector<1x1xf32> to vector<3x1xf32>
    %502 = arith.subf %498, %501 : vector<3x1xf32>
    %503 = math.exp %502 : vector<3x1xf32>
    %cst_213 = arith.constant dense<0.000000e+00> : vector<1xf32>
    %504 = vector.multi_reduction <add>, %503, %cst_213 [0] : vector<3x1xf32> to vector<1xf32>
    %505 = vector.shape_cast %504 : vector<1xf32> to vector<1x1xf32>
    %506 = tpu.reciprocal %505 {approx = true} : vector<1x1xf32> -> vector<1x1xf32>
    %507 = vector.broadcast %506 : vector<1x1xf32> to vector<3x1xf32>
    %508 = arith.mulf %503, %507 : vector<3x1xf32>
    %509 = vector.broadcast %508 : vector<3x1xf32> to vector<3x32xf32>
    %510 = arith.mulf %509, %493 : vector<3x32xf32>
    %cst_214 = arith.constant dense<0.000000e+00> : vector<32xf32>
    %511 = vector.multi_reduction <add>, %510, %cst_214 [0] : vector<3x32xf32> to vector<32xf32>
    %512 = vector.shape_cast %511 : vector<32xf32> to vector<1x32xf32>
    %513 = arith.truncf %512 : vector<1x32xf32> to vector<1x32xbf16>
    %c64 = arith.constant 64 : index
    %c0_215 = arith.constant 0 : index
    %514 = vector.load %arg46[%c64, %c0_215] : memref<96x32xbf16, #tpu.memory_space<vmem>>, vector<32x32xbf16>
    %cst_216 = arith.constant dense<0.000000e+00> : vector<1x32xf32>
    %515 = tpu.matmul %513, %514, %cst_216 {dimension_numbers = #tpu.dot_dimension_numbers<[1], [0], [0], [1], [0, 0, 1, 1], [], []>} : vector<1x32xbf16>, vector<32x32xbf16>, vector<1x32xf32> -> vector<1x32xf32>
    %516 = arith.addf %345, %515 : vector<1x32xf32>
    %517 = vector.shape_cast %516 : vector<1x32xf32> to vector<1x1x32xf32>
    %c0_217 = arith.constant 0 : index
    %c0_218 = arith.constant 0 : index
    %c0_219 = arith.constant 0 : index
    %518 = vector.load %arg48[%c0_217, %c0_218, %c0_219] : memref<1x1x32xf32, #tpu.memory_space<vmem>>, vector<1x1x32xf32>
    tpu.vector_store %arg48[%c0_217, %c0_218, %c0_219], %517 {strides = array<i32>} : memref<1x1x32xf32, #tpu.memory_space<vmem>>, vector<1x1x32xf32>,
    return
  }
  func.func @transform_0(%arg0: i32) -> (i32, i32, i32) {
    %c0_i32 = arith.constant 0 : i32
    %c0_i32_0 = arith.constant 0 : i32
    %c0_i32_1 = arith.constant 0 : i32
    return %arg0, %c0_i32, %c0_i32_0 : i32, i32, i32
  }
  func.func @transform_1(%arg0: i32) -> (i32, i32) {
    %c0_i32 = arith.constant 0 : i32
    %c0_i32_0 = arith.constant 0 : i32
    %c0_i32_1 = arith.constant 0 : i32
    return %c0_i32, %c0_i32_0 : i32, i32
  }
  func.func @transform_2(%arg0: i32) -> (i32, i32) {
    %c0_i32 = arith.constant 0 : i32
    %c0_i32_0 = arith.constant 0 : i32
    %c0_i32_1 = arith.constant 0 : i32
    return %c0_i32, %c0_i32_0 : i32, i32
  }
  func.func @transform_3(%arg0: i32) -> (i32, i32) {
    %c0_i32 = arith.constant 0 : i32
    %c0_i32_0 = arith.constant 0 : i32
    %c0_i32_1 = arith.constant 0 : i32
    return %c0_i32, %c0_i32_0 : i32, i32
  }
  func.func @transform_4(%arg0: i32) -> (i32, i32) {
    %c0_i32 = arith.constant 0 : i32
    %c0_i32_0 = arith.constant 0 : i32
    %c0_i32_1 = arith.constant 0 : i32
    return %c0_i32, %c0_i32_0 : i32, i32
  }
  func.func @transform_5(%arg0: i32) -> (i32, i32) {
    %c0_i32 = arith.constant 0 : i32
    %c0_i32_0 = arith.constant 0 : i32
    %c0_i32_1 = arith.constant 0 : i32
    return %c0_i32, %c0_i32_0 : i32, i32
  }
  func.func @transform_6(%arg0: i32) -> (i32, i32) {
    %c0_i32 = arith.constant 0 : i32
    %c0_i32_0 = arith.constant 0 : i32
    %c0_i32_1 = arith.constant 0 : i32
    return %c0_i32, %c0_i32_0 : i32, i32
  }
  func.func @transform_7(%arg0: i32) -> (i32, i32) {
    %c0_i32 = arith.constant 0 : i32
    %c0_i32_0 = arith.constant 0 : i32
    %c0_i32_1 = arith.constant 0 : i32
    return %c0_i32, %c0_i32_0 : i32, i32
  }
  func.func @transform_8(%arg0: i32) -> (i32, i32) {
    %c0_i32 = arith.constant 0 : i32
    %c0_i32_0 = arith.constant 0 : i32
    %c0_i32_1 = arith.constant 0 : i32
    return %c0_i32, %c0_i32_0 : i32, i32
  }
  func.func @transform_9(%arg0: i32) -> (i32, i32) {
    %c0_i32 = arith.constant 0 : i32
    %c0_i32_0 = arith.constant 0 : i32
    %c0_i32_1 = arith.constant 0 : i32
    return %c0_i32, %c0_i32_0 : i32, i32
  }
  func.func @transform_10(%arg0: i32) -> (i32, i32) {
    %c0_i32 = arith.constant 0 : i32
    %c0_i32_0 = arith.constant 0 : i32
    %c0_i32_1 = arith.constant 0 : i32
    return %c0_i32, %c0_i32_0 : i32, i32
  }
  func.func @transform_11(%arg0: i32) -> (i32, i32) {
    %c0_i32 = arith.constant 0 : i32
    %c0_i32_0 = arith.constant 0 : i32
    %c0_i32_1 = arith.constant 0 : i32
    return %c0_i32, %c0_i32_0 : i32, i32
  }
  func.func @transform_12(%arg0: i32) -> (i32, i32) {
    %c0_i32 = arith.constant 0 : i32
    %c0_i32_0 = arith.constant 0 : i32
    %c0_i32_1 = arith.constant 0 : i32
    return %c0_i32, %c0_i32_0 : i32, i32
  }
  func.func @transform_13(%arg0: i32) -> (i32, i32) {
    %c0_i32 = arith.constant 0 : i32
    %c0_i32_0 = arith.constant 0 : i32
    %c0_i32_1 = arith.constant 0 : i32
    return %c0_i32, %c0_i32_0 : i32, i32
  }
  func.func @transform_14(%arg0: i32) -> (i32, i32, i32) {
    %c0_i32 = arith.constant 0 : i32
    %c0_i32_0 = arith.constant 0 : i32
    %c0_i32_1 = arith.constant 0 : i32
    return %arg0, %c0_i32, %c0_i32_0 : i32, i32, i32
  }
  func.func @transform_15(%arg0: i32) -> (i32, i32) {
    %c0_i32 = arith.constant 0 : i32
    %c0_i32_0 = arith.constant 0 : i32
    %c0_i32_1 = arith.constant 0 : i32
    return %c0_i32, %c0_i32_0 : i32, i32
  }
  func.func @transform_16(%arg0: i32) -> (i32, i32) {
    %c0_i32 = arith.constant 0 : i32
    %c0_i32_0 = arith.constant 0 : i32
    %c0_i32_1 = arith.constant 0 : i32
    return %c0_i32, %c0_i32_0 : i32, i32
  }
  func.func @transform_17(%arg0: i32) -> (i32, i32) {
    %c0_i32 = arith.constant 0 : i32
    %c0_i32_0 = arith.constant 0 : i32
    %c0_i32_1 = arith.constant 0 : i32
    return %c0_i32, %c0_i32_0 : i32, i32
  }
  func.func @transform_18(%arg0: i32) -> (i32, i32) {
    %c0_i32 = arith.constant 0 : i32
    %c0_i32_0 = arith.constant 0 : i32
    %c0_i32_1 = arith.constant 0 : i32
    return %c0_i32, %c0_i32_0 : i32, i32
  }
  func.func @transform_19(%arg0: i32) -> (i32, i32) {
    %c0_i32 = arith.constant 0 : i32
    %c0_i32_0 = arith.constant 0 : i32
    %c0_i32_1 = arith.constant 0 : i32
    return %c0_i32, %c0_i32_0 : i32, i32
  }
  func.func @transform_20(%arg0: i32) -> (i32, i32) {
    %c0_i32 = arith.constant 0 : i32
    %c0_i32_0 = arith.constant 0 : i32
    %c0_i32_1 = arith.constant 0 : i32
    return %c0_i32, %c0_i32_0 : i32, i32
  }
  func.func @transform_21(%arg0: i32) -> (i32, i32) {
    %c0_i32 = arith.constant 0 : i32
    %c0_i32_0 = arith.constant 0 : i32
    %c0_i32_1 = arith.constant 0 : i32
    return %c0_i32, %c0_i32_0 : i32, i32
  }
  func.func @transform_22(%arg0: i32) -> (i32, i32) {
    %c0_i32 = arith.constant 0 : i32
    %c0_i32_0 = arith.constant 0 : i32
    %c0_i32_1 = arith.constant 0 : i32
    return %c0_i32, %c0_i32_0 : i32, i32
  }
  func.func @transform_23(%arg0: i32) -> (i32, i32) {
    %c0_i32 = arith.constant 0 : i32
    %c0_i32_0 = arith.constant 0 : i32
    %c0_i32_1 = arith.constant 0 : i32
    return %c0_i32, %c0_i32_0 : i32, i32
  }
  func.func @transform_24(%arg0: i32) -> (i32, i32) {
    %c0_i32 = arith.constant 0 : i32
    %c0_i32_0 = arith.constant 0 : i32
    %c0_i32_1 = arith.constant 0 : i32
    return %c0_i32, %c0_i32_0 : i32, i32
  }
  func.func @transform_25(%arg0: i32) -> (i32, i32) {
    %c0_i32 = arith.constant 0 : i32
    %c0_i32_0 = arith.constant 0 : i32
    %c0_i32_1 = arith.constant 0 : i32
    return %c0_i32, %c0_i32_0 : i32, i32
  }
  func.func @transform_26(%arg0: i32) -> (i32, i32) {
    %c0_i32 = arith.constant 0 : i32
    %c0_i32_0 = arith.constant 0 : i32
    %c0_i32_1 = arith.constant 0 : i32
    return %c0_i32, %c0_i32_0 : i32, i32
  }
  func.func @transform_27(%arg0: i32) -> (i32, i32) {
    %c0_i32 = arith.constant 0 : i32
    %c0_i32_0 = arith.constant 0 : i32
    %c0_i32_1 = arith.constant 0 : i32
    return %c0_i32, %c0_i32_0 : i32, i32
  }
  func.func @transform_28(%arg0: i32) -> (i32, i32, i32) {
    %c0_i32 = arith.constant 0 : i32
    %c0_i32_0 = arith.constant 0 : i32
    %c0_i32_1 = arith.constant 0 : i32
    return %arg0, %c0_i32, %c0_i32_0 : i32, i32, i32
  }
  func.func @transform_29(%arg0: i32) -> (i32, i32) {
    %c0_i32 = arith.constant 0 : i32
    %c0_i32_0 = arith.constant 0 : i32
    %c0_i32_1 = arith.constant 0 : i32
    return %c0_i32, %c0_i32_0 : i32, i32
  }
  func.func @transform_30(%arg0: i32) -> (i32, i32) {
    %c0_i32 = arith.constant 0 : i32
    %c0_i32_0 = arith.constant 0 : i32
    %c0_i32_1 = arith.constant 0 : i32
    return %c0_i32, %c0_i32_0 : i32, i32
  }
  func.func @transform_31(%arg0: i32) -> (i32, i32) {
    %c0_i32 = arith.constant 0 : i32
    %c0_i32_0 = arith.constant 0 : i32
    %c0_i32_1 = arith.constant 0 : i32
    return %c0_i32, %c0_i32_0 : i32, i32
  }
  func.func @transform_32(%arg0: i32) -> (i32, i32) {
    %c0_i32 = arith.constant 0 : i32
    %c0_i32_0 = arith.constant 0 : i32
    %c0_i32_1 = arith.constant 0 : i32
    return %c0_i32, %c0_i32_0 : i32, i32
  }
  func.func @transform_33(%arg0: i32) -> (i32, i32) {
    %c0_i32 = arith.constant 0 : i32
    %c0_i32_0 = arith.constant 0 : i32
    %c0_i32_1 = arith.constant 0 : i32
    return %c0_i32, %c0_i32_0 : i32, i32
  }
  func.func @transform_34(%arg0: i32) -> (i32, i32) {
    %c0_i32 = arith.constant 0 : i32
    %c0_i32_0 = arith.constant 0 : i32
    %c0_i32_1 = arith.constant 0 : i32
    return %c0_i32, %c0_i32_0 : i32, i32
  }
  func.func @transform_35(%arg0: i32) -> (i32, i32) {
    %c0_i32 = arith.constant 0 : i32
    %c0_i32_0 = arith.constant 0 : i32
    %c0_i32_1 = arith.constant 0 : i32
    return %c0_i32, %c0_i32_0 : i32, i32
  }
  func.func @transform_36(%arg0: i32) -> (i32, i32) {
    %c0_i32 = arith.constant 0 : i32
    %c0_i32_0 = arith.constant 0 : i32
    %c0_i32_1 = arith.constant 0 : i32
    return %c0_i32, %c0_i32_0 : i32, i32
  }
  func.func @transform_37(%arg0: i32) -> (i32, i32) {
    %c0_i32 = arith.constant 0 : i32
    %c0_i32_0 = arith.constant 0 : i32
    %c0_i32_1 = arith.constant 0 : i32
    return %c0_i32, %c0_i32_0 : i32, i32
  }
  func.func @transform_38(%arg0: i32) -> (i32, i32) {
    %c0_i32 = arith.constant 0 : i32
    %c0_i32_0 = arith.constant 0 : i32
    %c0_i32_1 = arith.constant 0 : i32
    return %c0_i32, %c0_i32_0 : i32, i32
  }
  func.func @transform_39(%arg0: i32) -> (i32, i32) {
    %c0_i32 = arith.constant 0 : i32
    %c0_i32_0 = arith.constant 0 : i32
    %c0_i32_1 = arith.constant 0 : i32
    return %c0_i32, %c0_i32_0 : i32, i32
  }
  func.func @transform_40(%arg0: i32) -> (i32, i32) {
    %c0_i32 = arith.constant 0 : i32
    %c0_i32_0 = arith.constant 0 : i32
    %c0_i32_1 = arith.constant 0 : i32
    return %c0_i32, %c0_i32_0 : i32, i32
  }
  func.func @transform_41(%arg0: i32) -> (i32, i32) {
    %c0_i32 = arith.constant 0 : i32
    %c0_i32_0 = arith.constant 0 : i32
    %c0_i32_1 = arith.constant 0 : i32
    return %c0_i32, %c0_i32_0 : i32, i32
  }
  func.func @transform_42(%arg0: i32) -> (i32, i32) {
    %c0_i32 = arith.constant 0 : i32
    %c0_i32_0 = arith.constant 0 : i32
    %c0_i32_1 = arith.constant 0 : i32
    return %c0_i32, %c0_i32_0 : i32, i32
  }
  func.func @transform_43(%arg0: i32) -> (i32, i32) {
    %c0_i32 = arith.constant 0 : i32
    %c0_i32_0 = arith.constant 0 : i32
    %c0_i32_1 = arith.constant 0 : i32
    return %c0_i32, %c0_i32_0 : i32, i32
  }
  func.func @transform_44(%arg0: i32) -> (i32, i32) {
    %c0_i32 = arith.constant 0 : i32
    %c0_i32_0 = arith.constant 0 : i32
    %c0_i32_1 = arith.constant 0 : i32
    return %c0_i32, %c0_i32_0 : i32, i32
  }
  func.func @transform_45(%arg0: i32) -> (i32, i32) {
    %c0_i32 = arith.constant 0 : i32
    %c0_i32_0 = arith.constant 0 : i32
    %c0_i32_1 = arith.constant 0 : i32
    return %c0_i32, %c0_i32_0 : i32, i32
  }
  func.func @transform_46(%arg0: i32) -> (i32, i32) {
    %c0_i32 = arith.constant 0 : i32
    %c0_i32_0 = arith.constant 0 : i32
    %c0_i32_1 = arith.constant 0 : i32
    return %c0_i32, %c0_i32_0 : i32, i32
  }
  func.func @transform_47(%arg0: i32) -> (i32, i32, i32) {
    %c0_i32 = arith.constant 0 : i32
    %c0_i32_0 = arith.constant 0 : i32
    %c0_i32_1 = arith.constant 0 : i32
    return %arg0, %c0_i32, %c0_i32_0 : i32, i32, i32
  }
}

</mosaic_0001>

<bundles_post_ra>
// kernel: multi_mlp_forward.1
= control target key start
LH: loop header
LB: loop body
LE: loop exit
PB: predicated region body
PF: predicated region fallthrough
CT: control target
= control target key end

     0   :  { %s3936_s6 = smov 1   ;;  %s3937_s10 = smov 2   ;;  %s4630_s0 = inlined_call_operand.smem [shape: u32[48], index: -1, kind: input, shape index: {}] }
   0x1   :  { %s3996_s5 = sld [smem:[%s4630_s0]]   ;;  %s3938_s14 = smov 3  }
   0x2   :  { %s4001_s9 = sld [smem:[%s4630_s0 + %s3936_s6]]   ;;  %s3939_s18 = smov 4  }
   0x3   :  { %s4006_s13 = sld [smem:[%s4630_s0 + %s3937_s10]]   ;;  %s3940_s22 = smov 5  }
   0x4   :  { %s4011_s17 = sld [smem:[%s4630_s0 + %s3938_s14]]   ;;  %s3941_s26 = smov 6  }
   0x5   :  { %s4016_s21 = sld [smem:[%s4630_s0 + %s3939_s18]]   ;;  %s3942_s30 = smov 7  }
   0x6   :  { %s4021_s25 = sld [smem:[%s4630_s0 + %s3940_s22]]   ;;  %s3943_s4 = smov 8  }
   0x7   :  { %4648 = sst [smem:[#allocation5_spill]] %s3996_s5  ;;  %s3944_s10 = smov 9  }
   0x8   :  { %4649 = sst [smem:[#allocation6_spill]] %s4001_s9  ;;  %s3945_s15 = smov 10  }
   0x9   :  { %s4026_s29 = sld [smem:[%s4630_s0 + %s3941_s26]]   ;;  %s3946_s20 = smov 11  }
   0xa   :  { %s4031_s3 = sld [smem:[%s4630_s0 + %s3942_s30]]   ;;  %s3947_s26 = smov 12  }
   0xb   :  { %s4036_s8 = sld [smem:[%s4630_s0 + %s3943_s4]]   ;;  %s3948_s1 = smov 13  }
   0xc   :  { %s4041_s14 = sld [smem:[%s4630_s0 + %s3944_s10]]   ;;  %s3949_s7 = smov 14  }
   0xd   :  { %s4046_s19 = sld [smem:[%s4630_s0 + %s3945_s15]]   ;;  %s3950_s15 = smov 15  }
   0xe   :  { %s4051_s24 = sld [smem:[%s4630_s0 + %s3946_s20]]   ;;  %s3951_s22 = smov 16  }
   0xf   :  { %s4056_s30 = sld [smem:[%s4630_s0 + %s3947_s26]]   ;;  %s3952_s28 = smov 17  }
  0x10   :  { %4650 = sst [smem:[#allocation7_spill]] %s4031_s3 }
  0x11   :  { %4651 = sst [smem:[#allocation8_spill]] %s4036_s8 }
  0x12   :  { %s4061_s6 = sld [smem:[%s4630_s0 + %s3948_s1]]  }
  0x13   :  { %s4066_s12 = sld [smem:[%s4630_s0 + %s3949_s7]]   ;;  %s3953_s7 = smov 18  }
  0x14   :  { %s4071_s20 = sld [smem:[%s4630_s0 + %s3950_s15]]   ;;  %s3954_s15 = smov 19  }
  0x15   :  { %s4076_s27 = sld [smem:[%s4630_s0 + %s3951_s22]]   ;;  %s3955_s22 = smov 20  }
  0x16   :  { %s4081_s4 = sld [smem:[%s4630_s0 + %s3952_s28]]   ;;  %s3956_s28 = smov 21  }
  0x18   :  { %4652 = sst [smem:[#allocation9_spill]] %s4061_s6 }
  0x19   :  { %4653 = sst [smem:[#allocation10_spill]] %s4066_s12 }
  0x1a   :  { %4654 = sst [smem:[#allocation11_spill]] %s4071_s20 }
  0x1b   :  { %4655 = sst [smem:[#allocation12_spill]] %s4076_s27 }
  0x1c   :  { %4656 = sst [smem:[#allocation13_spill]] %s4081_s4 }
  0x1d   :  { %s4086_s12 = sld [smem:[%s4630_s0 + %s3953_s7]]   ;;  %s3957_s7 = smov 22  }
  0x1e   :  { %s4091_s20 = sld [smem:[%s4630_s0 + %s3954_s15]]   ;;  %s3958_s15 = smov 23  }
  0x1f   :  { %s4096_s27 = sld [smem:[%s4630_s0 + %s3955_s22]]   ;;  %s3959_s22 = smov 24  }
  0x20   :  { %s4101_s4 = sld [smem:[%s4630_s0 + %s3956_s28]]   ;;  %s3960_s28 = smov 25  }
  0x23   :  { %4657 = sst [smem:[#allocation14_spill]] %s4086_s12 }
  0x24   :  { %4658 = sst [smem:[#allocation15_spill]] %s4091_s20 }
  0x25   :  { %4659 = sst [smem:[#allocation16_spill]] %s4096_s27 }
  0x26   :  { %4660 = sst [smem:[#allocation17_spill]] %s4101_s4 }
  0x27   :  { %s4106_s12 = sld [smem:[%s4630_s0 + %s3957_s7]]   ;;  %s3961_s7 = smov 26  }
  0x28   :  { %s4111_s20 = sld [smem:[%s4630_s0 + %s3958_s15]]   ;;  %s3962_s15 = smov 27  }
  0x29   :  { %s4116_s27 = sld [smem:[%s4630_s0 + %s3959_s22]]   ;;  %s3963_s22 = smov 28  }
  0x2a   :  { %s4121_s4 = sld [smem:[%s4630_s0 + %s3960_s28]]   ;;  %s3964_s28 = smov 29  }
  0x2d   :  { %4661 = sst [smem:[#allocation18_spill]] %s4106_s12 }
  0x2e   :  { %4662 = sst [smem:[#allocation19_spill]] %s4111_s20 }
  0x2f   :  { %4663 = sst [smem:[#allocation20_spill]] %s4116_s27 }
  0x30   :  { %4664 = sst [smem:[#allocation21_spill]] %s4121_s4 }
  0x31   :  { %s4126_s12 = sld [smem:[%s4630_s0 + %s3961_s7]]   ;;  %s3965_s7 = smov 30  }
  0x32   :  { %s4131_s20 = sld [smem:[%s4630_s0 + %s3962_s15]]   ;;  %s3966_s15 = smov 31  }
  0x33   :  { %s4136_s27 = sld [smem:[%s4630_s0 + %s3963_s22]]   ;;  %s3967_s22 = smov 32  }
  0x34   :  { %s4141_s4 = sld [smem:[%s4630_s0 + %s3964_s28]]   ;;  %s3968_s28 = smov 33  }
  0x37   :  { %4665 = sst [smem:[#allocation22_spill]] %s4126_s12 }
  0x38   :  { %4666 = sst [smem:[#allocation23_spill]] %s4131_s20 }
  0x39   :  { %4667 = sst [smem:[#allocation24_spill]] %s4136_s27 }
  0x3a   :  { %4668 = sst [smem:[#allocation25_spill]] %s4141_s4 }
  0x3b   :  { %s4146_s12 = sld [smem:[%s4630_s0 + %s3965_s7]]   ;;  %s3969_s7 = smov 34  }
  0x3c   :  { %s4151_s20 = sld [smem:[%s4630_s0 + %s3966_s15]]   ;;  %s3970_s15 = smov 35  }
  0x3d   :  { %s4156_s27 = sld [smem:[%s4630_s0 + %s3967_s22]]   ;;  %s3971_s22 = smov 36  }
  0x3e   :  { %s4161_s4 = sld [smem:[%s4630_s0 + %s3968_s28]]   ;;  %s3972_s28 = smov 37  }
  0x41   :  { %4669 = sst [smem:[#allocation26_spill]] %s4146_s12 }
  0x42   :  { %4670 = sst [smem:[#allocation27_spill]] %s4151_s20 }
  0x43   :  { %4671 = sst [smem:[#allocation28_spill]] %s4156_s27 }
  0x44   :  { %4672 = sst [smem:[#allocation29_spill]] %s4161_s4 }
  0x45   :  { %s4166_s12 = sld [smem:[%s4630_s0 + %s3969_s7]]   ;;  %s3973_s7 = smov 38  }
  0x46   :  { %s4171_s20 = sld [smem:[%s4630_s0 + %s3970_s15]]   ;;  %s3974_s15 = smov 39  }
  0x47   :  { %s4176_s27 = sld [smem:[%s4630_s0 + %s3971_s22]]   ;;  %s3975_s22 = smov 40  }
  0x48   :  { %s4181_s4 = sld [smem:[%s4630_s0 + %s3972_s28]]   ;;  %s3976_s28 = smov 41  }
  0x4b   :  { %4673 = sst [smem:[#allocation30_spill]] %s4166_s12 }
  0x4c   :  { %4674 = sst [smem:[#allocation31_spill]] %s4171_s20 }
  0x4d   :  { %4675 = sst [smem:[#allocation32_spill]] %s4176_s27 }
  0x4e   :  { %4676 = sst [smem:[#allocation33_spill]] %s4181_s4 }
  0x4f   :  { %s4186_s12 = sld [smem:[%s4630_s0 + %s3973_s7]]   ;;  %s3977_s7 = smov 42  }
  0x50   :  { %s4191_s20 = sld [smem:[%s4630_s0 + %s3974_s15]]   ;;  %s3978_s15 = smov 43  }
  0x51   :  { %s4196_s27 = sld [smem:[%s4630_s0 + %s3975_s22]]   ;;  %s3979_s22 = smov 44  }
  0x52   :  { %s4201_s4 = sld [smem:[%s4630_s0 + %s3976_s28]]   ;;  %s3980_s28 = smov 45  }
  0x55   :  { %4677 = sst [smem:[#allocation34_spill]] %s4186_s12 }
  0x56   :  { %4678 = sst [smem:[#allocation35_spill]] %s4191_s20 }
  0x57   :  { %4679 = sst [smem:[#allocation36_spill]] %s4196_s27 }
  0x58   :  { %4680 = sst [smem:[#allocation37_spill]] %s4201_s4 }
  0x59   :  { %s4206_s12 = sld [smem:[%s4630_s0 + %s3977_s7]]   ;;  %s3981_s7 = smov 46  }
  0x5a   :  { %s4211_s20 = sld [smem:[%s4630_s0 + %s3978_s15]]   ;;  %s3982_s15 = smov 47  }
  0x5b   :  { %s4216_s27 = sld [smem:[%s4630_s0 + %s3979_s22]]  }
  0x5c   :  { %s4221_s4 = sld [smem:[%s4630_s0 + %s3980_s28]]  }
  0x5f   :  { %4681 = sst [smem:[#allocation38_spill]] %s4206_s12 }
  0x60   :  { %4682 = sst [smem:[#allocation39_spill]] %s4211_s20 }
  0x61   :  { %s4226_s12 = sld [smem:[%s4630_s0 + %s3981_s7]]  }
  0x62   :  { %4683 = sst [smem:[#allocation40_spill]] %s4221_s4 }
  0x63   :  { %s4231_s20 = sld [smem:[%s4630_s0 + %s3982_s15]]  }
  0x64   :  { %100 = vsyncpa [#allocation3], 0 }
  0x65   :  { %102 = vsyncpa [#allocation3 + $0x1], 0  ;;  %s4233_s22 = smov 0   ;;  %s4235_s23 = smov 0  }
  0x66   :  { %s4237_s26 = smov 0   ;;  %s4239_s28 = smov 0  }
  0x67 LB: > { %s4684_s8 = sld [smem:[#allocation8_spill]]  ;;  %s4686_s6 = sld [smem:[#allocation9_spill]]  ;;  %s3934_s28 = sphi %s4239_s28, %s4725_s28   ;;  %s3930_s26 = sphi %s4237_s26, %s4724_s26   ;;  %s3926_s23 = sphi %s4235_s23, %s4723_s23   ;;  %s3922_s22 = sphi %s4233_s22, %s4722_s22  }
  0x68   : > { %s4685_s4 = sld [smem:[#allocation40_spill]]  ;;  %s4687_s3 = sld [smem:[#allocation7_spill]] }
  0x69   : > { %s4254_s0 = sadd.s32 4294967295, %s3934_s28   ;;  %s3375_s1 = sadd.s32 4294967294, %s3934_s28  }
  0x6a   : > { %s4258_s2 = sadd.s32 1, %s3934_s28   ;;  %s1117_s7 = sadd.s32 1, %s3930_s26 }
  0x6b   : > { %s1114_s10 = ssub.s32 %s3934_s28, %s4258_s2  ;;  %p1127_p0 = scmp.ne.s32.totalorder %s3930_s26, %s3926_s23 }
  0x6c   : > { %p1115_p1 = scmp.eq.s32.totalorder %s1114_s10, 0  ;;  %p1128_p2 = scmp.eq.s32.totalorder %s4254_s0, 1 }
  0x6d   : > { %p1133_p3 = scmp.ne.s32.totalorder %s3926_s23, %s3922_s22  ;;  %p1134_p4 = scmp.eq.s32.totalorder %s3375_s1, 1 }
  0x6e   : > { %s4269_s11 = scalar_select %p1115_p1, %s3930_s26, %s1117_s7  }
  0x6f   : > { %p4271_p5 = por %p1128_p2, %p1127_p0  ;;  %p4275_p6 = por %p1134_p4, %p1133_p3 }
  0x70   : > { %p3378_p7 = scmp.ge.s32.totalorder %s3934_s28, 1  ;;  %p1306_p8 = scmp.lt.s32.totalorder %s3934_s28, 3 }
  0x72   : > { %p1307_p9 = pnand %p3378_p7, %p1306_p8 }
  0x73   : > { %s4690_s9 = sld [smem:[#allocation6_spill]] (!%p1307_p9)  ;;  %s4691_s5 = sld [smem:[#allocation5_spill]] (!%p1307_p9)  ;;  %v3983_v1 = vmov (!%p1307_p9), 0.0   ;;  %vm3984_vm0 = vmmov (!%p1307_p9), 0   ;;  %vm1488_vm1 = vcmask (!%p1307_p9), 130048   ;;  %vm1533_vm2 = vcmask (!%p1307_p9), 261120  }
  0x74   : > { %1310 = sbr.rel (%p1307_p9) target bundleno = 7566 (0x1d8e), region = 208  ;;  %3514 = vmatprep.subr.bf16.mxu0 (!%p1307_p9), %v3983_v1  ;;  %p1425_p10 = scmp.lt.s32.totalorder (!%p1307_p9), %s4254_s0, 1  ;;  %3516 = vmatprep.mubr.msk.bf16.mxu0 (!%p1307_p9), %vm3984_vm0, %v3983_v1  ;;  %vm1537_vm3 = vcmask (!%p1307_p9), 257024   ;;  %v3766_v19 = vld [vmem:[%s4016_s21] sm:$0xff] (!%p1307_p9)   ;;  %vm1602_vm4 = vcmask (!%p1307_p9), 97280   ;;  %v1453_v20 = vld [vmem:[%s4021_s25 + $0x8] sm:$0xff] (!%p1307_p9) }
  0x75   : > { %3522 = vmatprep.mubr.msk.bf16.mxu1 (!%p1307_p9), %vm1602_vm4, %v3766_v19  ;;  %v3985_v21 = vmov (!%p1307_p9), 0   ;;  %v1452_v22 = vld [vmem:[%s4021_s25] sm:$0xff] (!%p1307_p9)  ;;  %v1454_v23 = vld [vmem:[%s4021_s25 + $0x10] sm:$0xff] (!%p1307_p9)  ;;  %v1458_v25 = vld [vmem:[%s4687_s3 + $0x8] sm:$0xf] (!%p1307_p9)  ;;  %vm1609_vm5 = vcmask (!%p1307_p9), 1045504  }
  0x76   : > { %3763 = vset.pattern.permute.xlu1 (!%p1307_p9), %v3985_v21  ;;  %3762 = vset.pattern.permute.xlu0 (!%p1307_p9), %v3985_v21  ;;  %v1457_v24 = vld [vmem:[%s4687_s3] sm:$0xff] (!%p1307_p9)  ;;  %v3767_v44 = vld [vmem:[%s4016_s21 + $0x8] ss:$0 sps:$4 sm:$0xff] (!%p1307_p9)   ;;  %vm1709_vm6 = vcmask (!%p1307_p9), 1043456   ;;  %vm1705_vm7 = vcmask (!%p1307_p9), 195584   ;;  %vm1898_vm8 = vcmask (!%p1307_p9), 523264  }
  0x77   : > { %v4314_v34 = vld [vmem:[%s4006_s13] ss:$0 sm:$0xff] (!%p1307_p9)  ;;  %s4692_s10 = sld [smem:[#allocation38_spill]] (!%p1307_p9)  ;;  %s4696_s3 = sld [smem:[#allocation15_spill]] (!%p1307_p9)  ;;  %vm2227_vm9 = vcmask (!%p1307_p9), 259072   ;;  %vm2275_vm10 = vcmask (!%p1307_p9), 1042432  }
  0x78   : > { %v4318_v38 = vld [vmem:[%s4011_s17] ss:$0 sm:$0xff] (!%p1307_p9)  ;;  %vm2271_vm11 = vcmask (!%p1307_p9), 48128   ;;  %vm2788_vm12 = vcmask (!%p1307_p9), 256000   ;;  %vm2826_vm13 = vcmask (!%p1307_p9), 1040384   ;;  %vm2827_vm14 = vcmask (!%p1307_p9), 1041408  }
  0x79   : > { %v3764_v0 = vld [vmem:[%s4690_s9] sm:$0xff] (!%p1307_p9)   ;;  %vm2822_vm15 = vcmask (!%p1307_p9), 23552  }
  0x7a   : > { %3515 = vmatpush3.bf16.msra.mxu0 (!%p1307_p9), %v3764_v0 }
  0x7b   : > { %s4287_s18 = scalar_select %p1425_p10, %s4254_s0, 1  ;;  %3526 = vmatprep.subr.bf16.mxu0 %v3983_v1 }
  0x7d   : > { %s3456_s1 = sshll.u32 %s4287_s18, 3 }
  0x7e   : > { %s1429_s7 = scalar_lea.vmem %s4691_s5, %s3456_s1  ;;  %s4693_s1 = sld [smem:[#allocation39_spill]] }
  0x7f   : > { %v3765_v2 = vld [vmem:[%s1429_s7] sm:$0x3f]   ;;  %s4694_s7 = sld [smem:[#allocation11_spill]]  ;;  %s4697_s5 = sld [smem:[#allocation17_spill]] }
  0x80   : > { %3517 = vmatmul.mubr.msk.bf16.vlgmr.msra.gmra.mrb[0].mxu0 %vm1488_vm1, %v3765_v2 }
  0x81   : > { %3530 = vmatprep.mubr.msk.bf16.mxu0 %vm3984_vm0, %v3983_v1 }
 0x153   : > { %v4294_v3 = vpop.f32.mrb[0].mxu0 }
 0x154   : > { %v3518_v4 = vpop.f32.mrb[1].mxu0  ;;  %v1534_v5 = vsel %vm1533_vm2, %v4294_v3, 0.0 }
 0x155   : > { %1535 = vadd.xlane.f32.xlu0 %v1534_v5  ;;  %v4298_v6 = vpop.f32.mrb[2].mxu0 }
 0x156   : > { %v3519_v7 = vpop.f32.mrb[3].mxu0  ;;  %v1538_v8 = vsel %vm1537_vm3, %v4298_v6, 0.0 }
 0x159   : > { %1539 = vadd.xlane.f32.xlu0 %v1538_v8 }
 0x16f   : > { %1581 = vperm.xlu0 %3762, %v1452_v22  }
 0x1e2   : > { %v1536_v9 = vpop.xlane.xlu0 %1535 }
 0x1e3   : > { %v1542_v10 = vmul.f32 0.03125, %v1536_v9 }
 0x1e5   : > { %v1544_v11 = vsub.f32 %v4294_v3, %v1542_v10 }
 0x1e6   : > { %v1540_v12 = vpop.xlane.xlu0 %1539 }
 0x1e7   : > { %v1543_v13 = vmul.f32 0.03125, %v1540_v12  ;;  %v1546_v14 = vmul.f32 %v1544_v11, %v1544_v11 }
 0x1e9   : > { %v1545_v15 = vsub.f32 %v4298_v6, %v1543_v13  ;;  %v1548_v16 = vsel %vm1533_vm2, %v1546_v14, 0.0 }
 0x1ea   : > { %1549 = vadd.xlane.f32.xlu1 %v1548_v16 }
 0x1eb   : > { %v1547_v17 = vmul.f32 %v1545_v15, %v1545_v15 }
 0x1ed   : > { %v1551_v18 = vsel %vm1537_vm3, %v1547_v17, 0.0 }
 0x1ee   : > { %1552 = vadd.xlane.f32.xlu1 %v1551_v18  ;;  %v1582_v46 = vpop.permute.xlu0 %1581 }
 0x1ff   : > { %1586 = vperm.xlu1 %3763, %v1453_v20  }
 0x203   : > { %1591 = vperm.xlu1 %3763, %v1454_v23  }
 0x207   : > { %1692 = vperm.xlu1 %3763, %v1457_v24   ;;  %v3768_v24 = vld [vmem:[%s4026_s29] sm:$0x3f]  }
 0x20b   : > { %1697 = vperm.xlu1 %3763, %v1458_v25  }
 0x277   : > { %v1550_v26 = vpop.xlane.xlu1 %1549 }
 0x278   : > { %v1554_v27 = vmul.f32 0.03125, %v1550_v26 }
 0x27a   : > { %v1556_v28 = vadd.f32 1e-05, %v1554_v27 }
 0x27b   : > { %v1553_v29 = vpop.xlane.xlu1 %1552 }
 0x27c   : > { %3800 = vrsqrt.f32 %v1556_v28  ;;  %v1555_v30 = vmul.f32 0.03125, %v1553_v29 }
 0x27e   : > { %v1557_v31 = vadd.f32 1e-05, %v1555_v30 }
 0x27f   : > { %v1587_v45 = vpop.permute.xlu1 %1586 }
 0x280   : > { %3802 = vrsqrt.f32 %v1557_v31 }
 0x283   : > { %v1592_v47 = vpop.permute.xlu1 %1591 }
 0x286   : > { %v3801_v32 = vpop.eup %3800 }
 0x287   : > { %v1560_v33 = vmul.f32 %v3801_v32, %v1544_v11  ;;  %v1693_v25 = vpop.permute.xlu1 %1692 }
 0x289   : > { %v1568_v37 = vmul.f32 %v4314_v34, %v1560_v33 }
 0x28a   : > { %v3803_v35 = vpop.eup %3802 }
 0x28b   : > { %v1561_v36 = vmul.f32 %v3803_v35, %v1545_v15  ;;  %v1576_v40 = vadd.f32 %v4318_v38, %v1568_v37  ;;  %v1698_v29 = vpop.permute.xlu1 %1697 }
 0x28d   : > { %v1569_v39 = vmul.f32 %v4314_v34, %v1561_v36 }
 0x28f   : > { %v1577_v41 = vadd.f32 %v4318_v38, %v1569_v39 }
 0x291   : > { %v1578_v42 = vpack.c.bf16 %v1577_v41, %v1576_v40 }
 0x293   : > { %3671 = vmatprep.subr.msk.bf16.mxu1 %vm1609_vm5, %v1578_v42  ;;  %v1611_v43 = vsel %vm1609_vm5, %v1578_v42, 0 }
 0x294   : > { %3521 = vmatpush3.bf16.msra.mxu1 %v1611_v43 }
 0x295   : > { %3554 = vmatprep.subr.bf16.mxu1 %v3983_v1 }
 0x297   : > { %3523 = vmatmul.mubr.msk.bf16.vlgmr.msra.gmra.mrb[0].mxu1 %vm1602_vm4, %v3767_v44 }
 0x298   : > { %3558 = vmatprep.mubr.msk.bf16.mxu1 %vm3984_vm0, %v3983_v1 }
 0x36a   : > { %v3524_v48 = vpop.f32.mrb[0].mxu1 }
 0x36b   : > { %v1656_v49 = vadd.f32 %v3524_v48, %v1592_v47  ;;  %v1647_v50 = vpop.f32.mrb[1].mxu1  ;;  %v3769_v47 = vld [vmem:[%s4684_s8] sm:$0xff]   ;;  %v3770_v48 = vld [vmem:[%s4684_s8 + $0x8] sm:$0xff]  }
 0x36c   : > { %v1648_v51 = vadd.f32 %v1647_v50, %v1582_v46  ;;  %v3525_v52 = vpop.f32.mrb[2].mxu1 }
 0x36d   : > { %v1663_v53 = vmul.f32 %v1656_v49, %v1656_v49  ;;  %v1650_v54 = vpop.f32.mrb[3].mxu1 }
 0x36e   : > { %v1661_v55 = vmul.f32 %v1648_v51, %v1648_v51  ;;  %v1651_v56 = vadd.f32 %v1650_v54, %v1587_v45 }
 0x36f   : > { %v1666_v57 = vmul.f32 %v1663_v53, %v1656_v49 }
 0x370   : > { %v1664_v58 = vmul.f32 %v1661_v55, %v1648_v51  ;;  %v1662_v59 = vmul.f32 %v1651_v56, %v1651_v56 }
 0x371   : > { %v1669_v60 = vmul.f32 0.044715, %v1666_v57 }
 0x372   : > { %v1667_v61 = vmul.f32 0.044715, %v1664_v58  ;;  %v1665_v62 = vmul.f32 %v1662_v59, %v1651_v56 }
 0x373   : > { %v1672_v63 = vadd.f32 %v1669_v60, %v1656_v49 }
 0x374   : > { %v1670_v0 = vadd.f32 %v1667_v61, %v1648_v51  ;;  %v1668_v2 = vmul.f32 0.044715, %v1665_v62 }
 0x375   : > { %v1675_v4 = vmul.f32 0.7978846, %v1672_v63 }
 0x376   : > { %v1673_v5 = vmul.f32 0.7978846, %v1670_v0  ;;  %v1671_v7 = vadd.f32 %v1668_v2, %v1651_v56  ;;  %v3771_v0 = vld [vmem:[%s4046_s19] sm:$0xff]   ;;  %v3772_v2 = vld [vmem:[%s4046_s19 + $0x8] sm:$0xff]  }
 0x377   : > { %3804 = vtanh.f32 %v1675_v4  ;;  %v3394_v4 = vld [vmem:[%s4041_s14] ss:$0 sm:$0xff] }
 0x378   : > { %3806 = vtanh.f32 %v1673_v5  ;;  %v1674_v8 = vmul.f32 0.7978846, %v1671_v7 }
 0x37a   : > { %3808 = vtanh.f32 %v1674_v8 }
 0x381   : > { %v3805_v9 = vpop.eup %3804 }
 0x382   : > { %v3807_v10 = vpop.eup %3806  ;;  %v1681_v11 = vadd.f32 1.0, %v3805_v9 }
 0x383   : > { %v1679_v12 = vadd.f32 1.0, %v3807_v10 }
 0x384   : > { %v3809_v13 = vpop.eup %3808  ;;  %v1684_v14 = vmul.f32 0.5, %v1681_v11 }
 0x385   : > { %v1682_v15 = vmul.f32 0.5, %v1679_v12  ;;  %v1680_v16 = vadd.f32 1.0, %v3809_v13 }
 0x386   : > { %v1687_v18 = vmul.f32 %v1684_v14, %v1656_v49 }
 0x387   : > { %v1683_v17 = vmul.f32 0.5, %v1680_v16  ;;  %v1685_v19 = vmul.f32 %v1682_v15, %v1648_v51 }
 0x388   : > { %v1689_v22 = vpack.c.bf16 %v1687_v18, %v1687_v18 }
 0x389   : > { %v1686_v20 = vmul.f32 %v1683_v17, %v1651_v56 }
 0x38a   : > { %v1711_v23 = vsel %vm1709_vm6, %v1689_v22, 0 }
 0x38b   : > { %v1688_v21 = vpack.c.bf16 %v1686_v20, %v1685_v19 }
 0x38d   : > { %3527 = vmatpush3.bf16.msra.mxu0 %v1688_v21 }
 0x38e   : > { %3528 = vmatprep.subr.bf16.mxu0 %v3983_v1 }
 0x391   : > { %3529 = vmatpush3.bf16.msra.mxu0 %v1711_v23 }
 0x392   : > { %3534 = vmatprep.subr.bf16.mxu0 %v3983_v1 }
 0x394   : > { %3531 = vmatmul.mubr.msk.bf16.vlgmr.msra.gmra.mrb[4].mxu0 %vm1705_vm7, %v3768_v24 }
 0x395   : > { %3538 = vmatprep.mubr.msk.bf16.mxu0 %vm3984_vm0, %v3983_v1  ;;  %3535 = vmatpush3.bf16.msra.mxu0 %v3769_v47 }
 0x396   : > { %3536 = vmatprep.subr.bf16.mxu0 %v3983_v1 }
 0x399   : > { %3537 = vmatpush3.bf16.msra.mxu0 %v3770_v48 }
 0x39a   : > { %3542 = vmatprep.subr.bf16.mxu0 %v3983_v1 }
 0x467   : > { %v1747_v26 = vpop.f32.mrb[4].mxu0 }
 0x468   : > { %v1748_v27 = vadd.f32 %v1747_v26, %v1693_v25  ;;  %v3532_v28 = vpop.f32.mrb[5].mxu0 }
 0x469   : > { %v1750_v30 = vpop.f32.mrb[6].mxu0 }
 0x46a   : > { %v4337_v31 = vadd.f32 %v1748_v27, %v4294_v3  ;;  %v1751_v32 = vadd.f32 %v1750_v30, %v1698_v29  ;;  %v3533_v33 = vpop.f32.mrb[7].mxu0 }
 0x46c   : > { %v4340_v35 = vadd.f32 %v1751_v32, %v4298_v6  ;;  %v1756_v36 = vsel %vm1533_vm2, %v4337_v31, 0.0  ;;  %v3398_v32 = vld [vmem:[%s4051_s24] ss:$0 sm:$0xff] }
 0x46d   : > { %1757 = vadd.xlane.f32.xlu1 %v1756_v36 }
 0x46e   : > { %v1759_v37 = vsel %vm1537_vm3, %v4340_v35, 0.0 }
 0x46f   : > { %1760 = vadd.xlane.f32.xlu0 %v1759_v37 }
 0x4fa   : > { %v1758_v39 = vpop.xlane.xlu1 %1757 }
 0x4fb   : > { %v1762_v40 = vmul.f32 0.03125, %v1758_v39 }
 0x4fc   : > { %v1761_v41 = vpop.xlane.xlu0 %1760 }
 0x4fd   : > { %v1764_v3 = vsub.f32 %v4337_v31, %v1762_v40  ;;  %v1763_v42 = vmul.f32 0.03125, %v1761_v41 }
 0x4ff   : > { %v1765_v43 = vsub.f32 %v4340_v35, %v1763_v42  ;;  %v1766_v6 = vmul.f32 %v1764_v3, %v1764_v3 }
 0x501   : > { %v1768_v44 = vsel %vm1533_vm2, %v1766_v6, 0.0  ;;  %v1767_v45 = vmul.f32 %v1765_v43, %v1765_v43 }
 0x502   : > { %1769 = vadd.xlane.f32.xlu1 %v1768_v44 }
 0x503   : > { %v1771_v46 = vsel %vm1537_vm3, %v1767_v45, 0.0 }
 0x506   : > { %1772 = vadd.xlane.f32.xlu1 %v1771_v46 }
 0x58f   : > { %v1770_v49 = vpop.xlane.xlu1 %1769 }
 0x590   : > { %v1774_v50 = vmul.f32 0.03125, %v1770_v49 }
 0x592   : > { %v1776_v51 = vadd.f32 1e-05, %v1774_v50 }
 0x593   : > { %v1773_v52 = vpop.xlane.xlu1 %1772 }
 0x594   : > { %3810 = vrsqrt.f32 %v1776_v51  ;;  %v1775_v53 = vmul.f32 0.03125, %v1773_v52 }
 0x596   : > { %v1777_v54 = vadd.f32 1e-05, %v1775_v53 }
 0x598   : > { %3812 = vrsqrt.f32 %v1777_v54 }
 0x59e   : > { %v3811_v55 = vpop.eup %3810 }
 0x59f   : > { %v1780_v56 = vmul.f32 %v3811_v55, %v1764_v3 }
 0x5a1   : > { %v1782_v58 = vmul.f32 %v4314_v34, %v1780_v56 }
 0x5a2   : > { %v3813_v57 = vpop.eup %3812 }
 0x5a3   : > { %v1781_v59 = vmul.f32 %v3813_v57, %v1765_v43  ;;  %v1784_v61 = vadd.f32 %v4318_v38, %v1782_v58 }
 0x5a5   : > { %v1783_v60 = vmul.f32 %v4314_v34, %v1781_v59  ;;  %v3773_v34 = vld [vmem:[%s4046_s19 + $0x10] sm:$0xff]  }
 0x5a7   : > { %v1785_v62 = vadd.f32 %v4318_v38, %v1783_v60  ;;  %v3774_v38 = vld [vmem:[%s4046_s19 + $0x18] sm:$0xff]  }
 0x5a9   : > { %v1786_v63 = vpack.c.bf16 %v1785_v62, %v1784_v61 }
 0x5ab   : > { %3539 = vmatmul.mubr.msk.bf16.vlgmr.msra.gmra.mrb[8].mxu0 %vm1533_vm2, %v1786_v63 }
 0x5ac   : > { %3550 = vmatprep.mubr.msk.bf16.mxu0 %vm3984_vm0, %v3983_v1  ;;  %3543 = vmatpush3.bf16.msra.mxu0 %v3771_v0 }
 0x5ad   : > { %3544 = vmatprep.subr.bf16.mxu0 %v3983_v1 }
 0x5b0   : > { %3545 = vmatpush3.bf16.msra.mxu0 %v3772_v2 }
 0x5b1   : > { %3546 = vmatprep.subr.bf16.mxu0 %v3983_v1 }
 0x5b4   : > { %3547 = vmatpush3.bf16.msra.mxu0 %v3773_v34 }
 0x5b5   : > { %3548 = vmatprep.subr.bf16.mxu0 %v3983_v1 }
 0x5b8   : > { %3549 = vmatpush3.bf16.msra.mxu0 %v3774_v38 }
 0x5b9   : > { %3570 = vmatprep.subr.bf16.mxu0 %v3983_v1 }
 0x67e   : > { %v1842_v5 = vpop.f32.mrb[8].mxu0 }
 0x67f   : > { %v1843_v7 = vadd.f32 %v3394_v4, %v1842_v5  ;;  %v3540_v8 = vpop.f32.mrb[9].mxu0 }
 0x680   : > { %v1845_v9 = vpop.f32.mrb[10].mxu0 }
 0x681   : > { %v1849_v10 = vmul.f32 %v1843_v7, %v1843_v7  ;;  %v1846_v11 = vadd.f32 %v3394_v4, %v1845_v9  ;;  %v3541_v12 = vpop.f32.mrb[11].mxu0  ;;  %v1474_v9 = vld [vmem:[%s4056_s30 + $0x8] sm:$0xf] }
 0x683   : > { %v1851_v13 = vmul.f32 %v1849_v10, %v1843_v7  ;;  %v1850_v14 = vmul.f32 %v1846_v11, %v1846_v11  ;;  %v1473_v10 = vld [vmem:[%s4056_s30] sm:$0xff] }
 0x685   : > { %v1853_v15 = vmul.f32 0.044715, %v1851_v13  ;;  %v1852_v16 = vmul.f32 %v1850_v14, %v1846_v11  ;;  %v1476_v13 = vld [vmem:[%s4686_s6 + $0x8] sm:$0xf]  ;;  %v1475_v14 = vld [vmem:[%s4686_s6] sm:$0xff] }
 0x687   : > { %v1855_v17 = vadd.f32 %v1853_v15, %v1843_v7  ;;  %v1854_v18 = vmul.f32 0.044715, %v1852_v16 }
 0x689   : > { %v1857_v19 = vmul.f32 0.7978846, %v1855_v17  ;;  %v1856_v20 = vadd.f32 %v1854_v18, %v1846_v11 }
 0x68b   : > { %3814 = vtanh.f32 %v1857_v19  ;;  %v1858_v21 = vmul.f32 0.7978846, %v1856_v20 }
 0x68d   : > { %3816 = vtanh.f32 %v1858_v21 }
 0x695   : > { %v3815_v22 = vpop.eup %3814 }
 0x696   : > { %v1861_v23 = vadd.f32 1.0, %v3815_v22 }
 0x697   : > { %v3817_v24 = vpop.eup %3816 }
 0x698   : > { %v1863_v25 = vmul.f32 0.5, %v1861_v23  ;;  %v1862_v26 = vadd.f32 1.0, %v3817_v24 }
 0x69a   : > { %v1864_v27 = vmul.f32 0.5, %v1862_v26  ;;  %v1865_v28 = vmul.f32 %v1863_v25, %v1843_v7 }
 0x69c   : > { %v1866_v29 = vmul.f32 %v1864_v27, %v1846_v11 }
 0x69e   : > { %v1867_v30 = vpack.c.bf16 %v1866_v29, %v1865_v28 }
 0x6a0   : > { %3551 = vmatmul.mubr.msk.bf16.vlgmr.msra.gmra.mrb[12].mxu0 %vm1898_vm8, %v1867_v30 }
 0x6a1   : > { %3572 = vmatprep.mubr.msk.bf16.mxu0 %vm3984_vm0, %v3983_v1 }
 0x773   : > { %v1936_v33 = vpop.f32.mrb[12].mxu0 }
 0x774   : > { %v1937_v36 = vadd.f32 %v3398_v32, %v1936_v33  ;;  %v3552_v37 = vpop.f32.mrb[13].mxu0 }
 0x775   : > { %v1939_v39 = vpop.f32.mrb[14].mxu0 }
 0x776   : > { %v1940_v40 = vadd.f32 %v3398_v32, %v1939_v39  ;;  %v3553_v41 = vpop.f32.mrb[15].mxu0  ;;  %v1943_v3 = vadd.f32 %v1937_v36, %v4337_v31 }
 0x778   : > { %v1945_v42 = vsel %vm1533_vm2, %v1943_v3, 0.0  ;;  %v1944_v43 = vadd.f32 %v1940_v40, %v4340_v35 }
 0x779   : > { %1946 = vadd.xlane.f32.xlu0 %v1945_v42 }
 0x77a   : > { %v1948_v6 = vsel %vm1537_vm3, %v1944_v43, 0.0 }
 0x77b   : > { %1949 = vadd.xlane.f32.xlu1 %v1948_v6 }
 0x806   : > { %v1947_v45 = vpop.xlane.xlu0 %1946 }
 0x808   : > { %v1950_v44 = vpop.xlane.xlu1 %1949 }
 0x809   : > { %v1951_v46 = vsel %vm1709_vm6, %v1950_v44, 0.0  ;;  %v4394_v44 = vld [vmem:[%s4693_s1] ss:$0 sm:$0xff]  ;;  %s3381_s1 = sshll.u32 %s4287_s18, 2 }
 0x80a   : > { %v1952_v47 = vadd.f32 %v1951_v46, %v1947_v45 }
 0x80c   : > { %v1953_v48 = vrot.slane %v1952_v47, 4 }
 0x80e   : > { %v1954_v49 = vadd.f32 %v1953_v48, %v1952_v47 }
 0x810   : > { %v1955_v50 = vrot.slane %v1954_v49, 2 }
 0x812   : > { %v1956_v51 = vadd.f32 %v1955_v50, %v1954_v49  ;;  %v4401_v49 = vld [vmem:[%s4216_s27] ss:$0 sm:$0xff] }
 0x814   : > { %v1957_v52 = vrot.slane %v1956_v51, 1 }
 0x816   : > { %v1958_v53 = vadd.f32 %v1957_v52, %v1956_v51 }
 0x818   : > { %v1960_v31 = vmul.f32 0.0026041667, %v1958_v53 }
 0x81a   : > { %v1962_v54 = vsub.f32 %v1944_v43, %v1960_v31  ;;  %v1961_v55 = vsub.f32 %v1943_v3, %v1960_v31  ;;  %v4391_v3 = vld [vmem:[%s4692_s10] ss:$0 sm:$0xff]  ;;  %s4695_s10 = sld [smem:[#allocation10_spill]] }
 0x81c   : > { %v1964_v56 = vmul.f32 %v1962_v54, %v1962_v54  ;;  %v1963_v35 = vmul.f32 %v1961_v55, %v1961_v55 }
 0x81e   : > { %v1968_v57 = vsel %vm1537_vm3, %v1964_v56, 0.0  ;;  %v1965_v58 = vsel %vm1533_vm2, %v1963_v35, 0.0  ;;  %v3776_v56 = vld [vmem:[%s4685_s4 + $0x8] sm:$0xff]  }
 0x81f   : > { %1969 = vadd.xlane.f32.xlu1 %v1968_v57  ;;  %1966 = vadd.xlane.f32.xlu0 %v1965_v58 }
 0x820   : > { %s1433_s6 = scalar_lea.vmem %s4695_s10, %s3381_s1  ;;  %s4699_s10 = sld [smem:[#allocation13_spill]] }
 0x821   : > { %s4700_s1 = sld [smem:[#allocation14_spill]] }
 0x8ac   : > { %v1970_v59 = vpop.xlane.xlu1 %1969  ;;  %v1967_v60 = vpop.xlane.xlu0 %1966 }
 0x8ad   : > { %v1971_v61 = vsel %vm1709_vm6, %v1970_v59, 0.0 }
 0x8ae   : > { %v1972_v62 = vadd.f32 %v1971_v61, %v1967_v60 }
 0x8b0   : > { %v1973_v63 = vrot.slane %v1972_v62, 4 }
 0x8b2   : > { %v1974_v0 = vadd.f32 %v1973_v63, %v1972_v62 }
 0x8b4   : > { %v1975_v2 = vrot.slane %v1974_v0, 2 }
 0x8b6   : > { %v1976_v34 = vadd.f32 %v1975_v2, %v1974_v0 }
 0x8b8   : > { %v1977_v38 = vrot.slane %v1976_v34, 1 }
 0x8ba   : > { %v1978_v4 = vadd.f32 %v1977_v38, %v1976_v34 }
 0x8bc   : > { %v1979_v5 = vmul.f32 0.0026041667, %v1978_v4 }
 0x8be   : > { %v1980_v7 = vadd.f32 1e-05, %v1979_v5 }
 0x8c0   : > { %3818 = vrsqrt.f32 %v1980_v7 }
 0x8ca   : > { %v3819_v8 = vpop.eup %3818 }
 0x8cb   : > { %v1983_v11 = vmul.f32 %v3819_v8, %v1962_v54  ;;  %v1982_v12 = vmul.f32 %v3819_v8, %v1961_v55  ;;  %v3775_v55 = vld [vmem:[%s4685_s4] sm:$0xff]  }
 0x8cc   : > { %3555 = vmatpush3.bf16.msra.mxu1 %v3775_v55 }
 0x8cd   : > { %v1985_v15 = vmul.f32 %v1983_v11, %v1474_v9  ;;  %v1984_v16 = vmul.f32 %v1982_v12, %v1473_v10  ;;  %3556 = vmatprep.subr.bf16.mxu1 %v3983_v1 }
 0x8cf   : > { %v1987_v17 = vadd.f32 %v1985_v15, %v1476_v13  ;;  %v1986_v18 = vadd.f32 %v1984_v16, %v1475_v14 }
 0x8d0   : > { %3557 = vmatpush3.bf16.msra.mxu1 %v3776_v56 }
 0x8d1   : > { %v1991_v19 = vsel %vm1537_vm3, %v1987_v17, 0.0  ;;  %v1988_v20 = vsel %vm1533_vm2, %v1986_v18, 0.0  ;;  %3562 = vmatprep.subr.bf16.mxu1 %v3983_v1 }
 0x8d2   : > { %1992 = vadd.xlane.f32.xlu1 %v1991_v19  ;;  %1989 = vadd.xlane.f32.xlu0 %v1988_v20 }
 0x95f   : > { %v1993_v21 = vpop.xlane.xlu1 %1992  ;;  %v1990_v22 = vpop.xlane.xlu0 %1989 }
 0x960   : > { %v1995_v23 = vmul.f32 0.03125, %v1993_v21  ;;  %v1994_v24 = vmul.f32 0.03125, %v1990_v22 }
 0x962   : > { %v1997_v25 = vsub.f32 %v1987_v17, %v1995_v23  ;;  %v1996_v26 = vsub.f32 %v1986_v18, %v1994_v24 }
 0x964   : > { %v1999_v27 = vmul.f32 %v1997_v25, %v1997_v25  ;;  %v1998_v28 = vmul.f32 %v1996_v26, %v1996_v26 }
 0x966   : > { %v2003_v29 = vsel %vm1537_vm3, %v1999_v27, 0.0  ;;  %v2000_v30 = vsel %vm1533_vm2, %v1998_v28, 0.0 }
 0x967   : > { %2004 = vadd.xlane.f32.xlu1 %v2003_v29  ;;  %2001 = vadd.xlane.f32.xlu0 %v2000_v30 }
 0x9f4   : > { %v2005_v32 = vpop.xlane.xlu1 %2004  ;;  %v2002_v33 = vpop.xlane.xlu0 %2001 }
 0x9f5   : > { %v2007_v36 = vmul.f32 0.03125, %v2005_v32  ;;  %v2006_v37 = vmul.f32 0.03125, %v2002_v33  ;;  %v3777_v32 = vld [vmem:[%s4694_s7] sm:$0xff]  }
 0x9f7   : > { %v2009_v39 = vadd.f32 1e-05, %v2007_v36  ;;  %v2008_v40 = vadd.f32 1e-05, %v2006_v37  ;;  %v3778_v36 = vld [vmem:[%s4694_s7 + $0x8] sm:$0xff]  }
 0x9f8   : > { %v2143_v37 = vld [vmem:[%s1433_s6] sm:$0x7]  ;;  %s4698_s6 = sld [smem:[#allocation12_spill]] }
 0x9f9   : > { %3820 = vrsqrt.f32 %v2009_v39 }
 0x9fa   : > { %3822 = vrsqrt.f32 %v2008_v40 }
 0x9fe   : > { %v4437_v56 = vld [vmem:[%s4698_s6] ss:$0 sm:$0xff]  ;;  %s4702_s6 = sld [smem:[#allocation18_spill]] }
 0xa03   : > { %v3821_v41 = vpop.eup %3820 }
 0xa04   : > { %v3823_v42 = vpop.eup %3822  ;;  %v2013_v43 = vmul.f32 %v3821_v41, %v1997_v25 }
 0xa05   : > { %v2012_v6 = vmul.f32 %v3823_v42, %v1996_v26 }
 0xa06   : > { %v2021_v45 = vmul.f32 %v4391_v3, %v2013_v43 }
 0xa07   : > { %v2020_v46 = vmul.f32 %v4391_v3, %v2012_v6  ;;  %v2152_v6 = vld [vmem:[%s4696_s3] sm:$0xff] }
 0xa08   : > { %v2029_v47 = vadd.f32 %v4394_v44, %v2021_v45  ;;  %v2155_v45 = vld [vmem:[%s4697_s5] sm:$0x3f]  ;;  %s4701_s5 = sld [smem:[#allocation16_spill]] }
 0xa09   : > { %v2028_v48 = vadd.f32 %v4394_v44, %v2020_v46 }
 0xa0a   : > { %3824 = vtanh.f32 %v2029_v47 }
 0xa0b   : > { %3826 = vtanh.f32 %v2028_v48 }
 0xa14   : > { %v3825_v50 = vpop.eup %3824 }
 0xa15   : > { %v3827_v51 = vpop.eup %3826  ;;  %v2039_v52 = vmul.f32 %v3825_v50, %v4401_v49 }
 0xa16   : > { %v2038_v53 = vmul.f32 %v3827_v51, %v4401_v49 }
 0xa17   : > { %v2043_v31 = vsel %vm1537_vm3, %v2039_v52, 0.0  ;;  %v2153_v52 = vld [vmem:[%s4696_s3 + $0x8] sm:$0xf]  ;;  %s4706_s3 = sld [smem:[#allocation19_spill]] }
 0xa18   : > { %2044 = vadd.xlane.f32.xlu1 %v2043_v31  ;;  %v2040_v54 = vsel %vm1533_vm2, %v2038_v53, 0.0 }
 0xa19   : > { %2041 = vadd.xlane.f32.xlu0 %v2040_v54 }
 0xaa5   : > { %v2045_v35 = vpop.xlane.xlu1 %2044 }
 0xaa6   : > { %v2046_v57 = vsel %vm1709_vm6, %v2045_v35, -inf  ;;  %v2042_v58 = vpop.xlane.xlu0 %2041 }
 0xaa7   : > { %v2047_v59 = vmax.f32 %v2042_v58, %v2046_v57  ;;  %v4440_v57 = vld [vmem:[%s4699_s10] ss:$0 sm:$0xff]  ;;  %s4703_s10 = sld [smem:[#allocation20_spill]] }
 0xaa9   : > { %v2048_v60 = vrot.slane %v2047_v59, 4 }
 0xaab   : > { %v2049_v61 = vmax.f32 %v2047_v59, %v2048_v60 }
 0xaad   : > { %v2050_v62 = vrot.slane %v2049_v61, 2 }
 0xaaf   : > { %v2051_v63 = vmax.f32 %v2049_v61, %v2050_v62  ;;  %v3779_v62 = vld [vmem:[%s4700_s1] sm:$0x3f]   ;;  %s4704_s1 = sld [smem:[#allocation25_spill]] }
 0xab1   : > { %v2052_v0 = vrot.slane %v2051_v63, 1 }
 0xab3   : > { %v2053_v2 = vmax.f32 %v2051_v63, %v2052_v0 }
 0xab5   : > { %v2054_v34 = vsub.f32 %v2042_v58, %v2053_v2  ;;  %v2055_v38 = vsub.f32 %v2045_v35, %v2053_v2 }
 0xab7   : > { %v2056_v4 = vmul.f32 1.442695, %v2054_v34  ;;  %v2058_v5 = vmul.f32 1.442695, %v2055_v38 }
 0xab9   : > { %3828 = vpow2.f32 %v2056_v4 }
 0xaba   : > { %3830 = vpow2.f32 %v2058_v5 }
 0xac3   : > { %v3829_v7 = vpop.eup %3828 }
 0xac4   : > { %v3831_v8 = vpop.eup %3830 }
 0xac5   : > { %v2060_v9 = vsel %vm1709_vm6, %v3831_v8, 0.0 }
 0xac6   : > { %v2061_v10 = vadd.f32 %v3829_v7, %v2060_v9 }
 0xac8   : > { %v2062_v11 = vrot.slane %v2061_v10, 4 }
 0xaca   : > { %v2063_v12 = vadd.f32 %v2062_v11, %v2061_v10 }
 0xacc   : > { %v2064_v13 = vrot.slane %v2063_v12, 2 }
 0xace   : > { %v2065_v14 = vadd.f32 %v2064_v13, %v2063_v12 }
 0xad0   : > { %v2066_v15 = vrot.slane %v2065_v14, 1 }
 0xad2   : > { %v2067_v16 = vadd.f32 %v2066_v15, %v2065_v14 }
 0xad4   : > { %3832 = vrcp.f32 %v2067_v16 }
 0xade   : > { %v3833_v17 = vpop.eup %3832 }
 0xadf   : > { %v2069_v18 = vmul.f32 %v3833_v17, %v3829_v7  ;;  %v2070_v19 = vmul.f32 %v3833_v17, %v3831_v8 }
 0xae1   : > { %v2071_v20 = vmul.f32 %v2069_v18, %v2028_v48  ;;  %v2072_v21 = vmul.f32 %v2070_v19, %v2029_v47 }
 0xae3   : > { %v2073_v22 = vsel %vm1533_vm2, %v2071_v20, 0.0  ;;  %v2074_v23 = vsel %vm1537_vm3, %v2072_v21, 0.0 }
 0xae4   : > { %v2075_v24 = vadd.f32 %v2074_v23, %v2073_v22 }
 0xae6   : > { %v2076_v25 = vrot.slane %v2075_v24, 4 }
 0xae8   : > { %v2077_v26 = vadd.f32 %v2076_v25, %v2075_v24 }
 0xaea   : > { %v2078_v27 = vrot.slane %v2077_v26, 2 }
 0xaec   : > { %v2079_v28 = vadd.f32 %v2078_v27, %v2077_v26 }
 0xaee   : > { %v2080_v29 = vrot.slane %v2079_v28, 1 }
 0xaf0   : > { %v2081_v30 = vadd.f32 %v2080_v29, %v2079_v28  ;;  %v2154_v28 = vld [vmem:[%s4701_s5] sm:$0x7]  ;;  %s4705_s5 = sld [smem:[#allocation24_spill]] }
 0xaf2   : > { %v2082_v33 = vpack.c.bf16 %v2081_v30, %v2081_v30 }
 0xaf4   : > { %3559 = vmatmul.mubr.msk.bf16.vlgmr.msra.gmra.mrb[4].mxu1 %vm1533_vm2, %v2082_v33 }
 0xaf5   : > { %3563 = vmatpush3.bf16.msra.mxu1 %v3777_v32  ;;  %3566 = vmatprep.mubr.msk.bf16.mxu1 %vm3984_vm0, %v3983_v1 }
 0xaf6   : > { %3564 = vmatprep.subr.bf16.mxu1 %v3983_v1 }
 0xaf9   : > { %3565 = vmatpush3.bf16.msra.mxu1 %v3778_v36 }
 0xafa   : > { %3576 = vmatprep.subr.bf16.mxu1 %v3983_v1 }
 0xafc   : > { %3567 = vmatmul.mubr.msk.bf16.vlgmr.msra.gmra.mrb[8].mxu1 %vm1533_vm2, %v2143_v37 }
 0xafd   : > { %3578 = vmatprep.mubr.msk.bf16.mxu1 %vm3984_vm0, %v3983_v1 }
 0xbcf   : > { %v4427_v39 = vpop.f32.mrb[8].mxu1 }
 0xbd0   : > { %v3568_v40 = vpop.f32.mrb[9].mxu1  ;;  %v2228_v41 = vsel %vm2227_vm9, %v4427_v39, 0.0 }
 0xbd1   : > { %2229 = vadd.xlane.f32.xlu1 %v2228_v41  ;;  %v2224_v42 = vpop.f32.mrb[10].mxu1 }
 0xbd2   : > { %v3569_v43 = vpop.f32.mrb[11].mxu1 }
 0xbe2   : > { %2258 = vperm.xlu1 %3763, %v2152_v6  }
 0xbe6   : > { %2341 = vperm.xlu1 %3763, %v2155_v45  }
 0xc5e   : > { %v2230_v46 = vpop.xlane.xlu1 %2229 }
 0xc5f   : > { %v2231_v47 = vmul.f32 0.03125, %v2230_v46 }
 0xc61   : > { %v2232_v48 = vsub.f32 %v4427_v39, %v2231_v47  ;;  %v3780_v47 = vld [vmem:[%s4702_s6] sm:$0xff]  }
 0xc62   : > { %v2259_v63 = vpop.permute.xlu1 %2258 }
 0xc63   : > { %v2233_v50 = vmul.f32 %v2232_v48, %v2232_v48 }
 0xc65   : > { %v2234_v51 = vsel %vm2227_vm9, %v2233_v50, 0.0 }
 0xc66   : > { %2235 = vadd.xlane.f32.xlu0 %v2234_v51  ;;  %v2342_v29 = vpop.permute.xlu1 %2341 }
 0xc7c   : > { %2263 = vperm.xlu0 %3762, %v2153_v52  }
 0xcf3   : > { %v2236_v53 = vpop.xlane.xlu0 %2235 }
 0xcf4   : > { %v2237_v31 = vmul.f32 0.03125, %v2236_v53 }
 0xcf6   : > { %v2238_v54 = vadd.f32 1e-05, %v2237_v31 }
 0xcf8   : > { %3834 = vrsqrt.f32 %v2238_v54 }
 0xcfb   : > { %v2264_v38 = vpop.permute.xlu0 %2263 }
 0xd02   : > { %v3835_v55 = vpop.eup %3834 }
 0xd03   : > { %v2240_v35 = vmul.f32 %v3835_v55, %v2232_v48  ;;  %v3781_v48 = vld [vmem:[%s4702_s6 + $0x8] sm:$0xff]   ;;  %s3382_s6 = sshll.u32 %s4287_s18, 1  ;;  %s4707_s18 = sld [smem:[#allocation21_spill]] }
 0xd04   : > { %s1437_s7 = scalar_lea.vmem %s4705_s5, %s3382_s6  ;;  %s4710_s6 = sld [smem:[#allocation22_spill]] }
 0xd05   : > { %v2247_v58 = vmul.f32 %v4437_v56, %v2240_v35  ;;  %v3782_v35 = vld [vmem:[%s4703_s10] sm:$0xff]   ;;  %s4711_s5 = sld [smem:[#allocation23_spill]] }
 0xd07   : > { %v2254_v59 = vadd.f32 %v4440_v57, %v2247_v58  ;;  %v3783_v58 = vld [vmem:[%s4703_s10 + $0x8] sm:$0xff]  }
 0xd09   : > { %v2255_v60 = vpack.c.bf16 %v2254_v59, %v2254_v59  ;;  %v3786_v59 = vld [vmem:[%s4704_s1] sm:$0xff]  }
 0xd0b   : > { %v2277_v61 = vsel %vm2275_vm10, %v2255_v60, 0  ;;  %v3787_v60 = vld [vmem:[%s4704_s1 + $0x8] sm:$0xff]  }
 0xd0c   : > { %3571 = vmatpush3.bf16.msra.mxu0 %v2277_v61  ;;  %v3788_v61 = vld [vmem:[%s4704_s1 + $0x10] sm:$0xff]  }
 0xd0d   : > { %3582 = vmatprep.subr.bf16.mxu0 %v3983_v1 }
 0xd0f   : > { %3573 = vmatmul.mubr.msk.bf16.vlgmr.msra.gmra.mrb[16].mxu0 %vm2271_vm11, %v3779_v62  ;;  %v3789_v62 = vld [vmem:[%s4704_s1 + $0x18] sm:$0xff]  }
 0xd10   : > { %3586 = vmatprep.mubr.msk.bf16.mxu0 %vm3984_vm0, %v3983_v1  ;;  %3583 = vmatpush3.bf16.msra.mxu0 %v3780_v47 }
 0xd11   : > { %3584 = vmatprep.subr.bf16.mxu0 %v3983_v1 }
 0xd14   : > { %3585 = vmatpush3.bf16.msra.mxu0 %v3781_v48 }
 0xd15   : > { %3610 = vmatprep.subr.bf16.mxu0 %v3983_v1 }
 0xde2   : > { %v2313_v0 = vpop.f32.mrb[16].mxu0 }
 0xde3   : > { %v2314_v2 = vadd.f32 %v2313_v0, %v2259_v63  ;;  %v3574_v34 = vpop.f32.mrb[17].mxu0  ;;  %v2690_v63 = vld [vmem:[%s1437_s7] sm:$0x3]  ;;  %s4709_s7 = sld [smem:[#allocation27_spill]] }
 0xde4   : > { %v2316_v4 = vpop.f32.mrb[18].mxu0  ;;  %v3418_v0 = vld [vmem:[%s4706_s3] ss:$0 sm:$0xff]  ;;  %s4708_s3 = sld [smem:[#allocation26_spill]] }
 0xde5   : > { %v2320_v5 = vmul.f32 %v2314_v2, %v2314_v2  ;;  %v2317_v7 = vadd.f32 %v2316_v4, %v2264_v38  ;;  %v3575_v8 = vpop.f32.mrb[19].mxu0 }
 0xde7   : > { %v2322_v9 = vmul.f32 %v2320_v5, %v2314_v2  ;;  %v2321_v10 = vmul.f32 %v2317_v7, %v2317_v7 }
 0xde9   : > { %v2324_v11 = vmul.f32 0.044715, %v2322_v9  ;;  %v2323_v12 = vmul.f32 %v2321_v10, %v2317_v7 }
 0xdeb   : > { %v2326_v13 = vadd.f32 %v2324_v11, %v2314_v2  ;;  %v2325_v14 = vmul.f32 0.044715, %v2323_v12 }
 0xded   : > { %v2328_v15 = vmul.f32 0.7978846, %v2326_v13  ;;  %v2327_v16 = vadd.f32 %v2325_v14, %v2317_v7 }
 0xdef   : > { %3836 = vtanh.f32 %v2328_v15  ;;  %v2329_v17 = vmul.f32 0.7978846, %v2327_v16 }
 0xdf1   : > { %3838 = vtanh.f32 %v2329_v17 }
 0xdf9   : > { %v3837_v18 = vpop.eup %3836 }
 0xdfa   : > { %v2332_v19 = vadd.f32 1.0, %v3837_v18 }
 0xdfb   : > { %v3839_v20 = vpop.eup %3838 }
 0xdfc   : > { %v2333_v21 = vadd.f32 1.0, %v3839_v20  ;;  %v2334_v22 = vmul.f32 0.5, %v2332_v19 }
 0xdfe   : > { %v2335_v23 = vmul.f32 0.5, %v2333_v21  ;;  %v2336_v24 = vmul.f32 %v2334_v22, %v2314_v2  ;;  %v3422_v21 = vld [vmem:[%s4707_s18] ss:$0 sm:$0xff]  ;;  %s4712_s18 = sld [smem:[#allocation28_spill]] }
 0xe00   : > { %v2337_v25 = vmul.f32 %v2335_v23, %v2317_v7 }
 0xe02   : > { %v2338_v26 = vpack.c.bf16 %v2337_v25, %v2336_v24 }
 0xe04   : > { %v2348_v27 = vsel %vm1609_vm5, %v2338_v26, 0 }
 0xe05   : > { %3577 = vmatpush3.bf16.msra.mxu1 %v2348_v27 }
 0xe06   : > { %3590 = vmatprep.subr.bf16.mxu1 %v3983_v1 }
 0xe08   : > { %3579 = vmatmul.mubr.msk.bf16.vlgmr.msra.gmra.mrb[12].mxu1 %vm1602_vm4, %v2154_v28 }
 0xe09   : > { %3598 = vmatprep.mubr.msk.bf16.mxu1 %vm3984_vm0, %v3983_v1  ;;  %3591 = vmatpush3.bf16.msra.mxu1 %v3782_v35 }
 0xe0a   : > { %3592 = vmatprep.subr.bf16.mxu1 %v3983_v1 }
 0xe0d   : > { %3593 = vmatpush3.bf16.msra.mxu1 %v3783_v58 }
 0xe0e   : > { %3594 = vmatprep.subr.bf16.mxu1 %v3983_v1 }
 0xedb   : > { %v2384_v30 = vpop.f32.mrb[12].mxu1 }
 0xedc   : > { %v2385_v32 = vadd.f32 %v2384_v30, %v2342_v29  ;;  %v3580_v33 = vpop.f32.mrb[13].mxu1 }
 0xedd   : > { %v2387_v36 = vpop.f32.mrb[14].mxu1 }
 0xede   : > { %v4457_v37 = vadd.f32 %v2385_v32, %v4427_v39  ;;  %v3581_v40 = vpop.f32.mrb[15].mxu1 }
 0xee0   : > { %v2391_v41 = vsel %vm2227_vm9, %v4457_v37, 0.0 }
 0xee1   : > { %2392 = vadd.xlane.f32.xlu1 %v2391_v41 }
 0xf6e   : > { %v2393_v42 = vpop.xlane.xlu1 %2392 }
 0xf6f   : > { %v2394_v43 = vmul.f32 0.03125, %v2393_v42 }
 0xf71   : > { %v2395_v6 = vsub.f32 %v4457_v37, %v2394_v43 }
 0xf73   : > { %v2396_v45 = vmul.f32 %v2395_v6, %v2395_v6 }
 0xf75   : > { %v2397_v46 = vsel %vm2227_vm9, %v2396_v45, 0.0 }
 0xf76   : > { %2398 = vadd.xlane.f32.xlu0 %v2397_v46 }
0x1003   : > { %v2399_v39 = vpop.xlane.xlu0 %2398 }
0x1004   : > { %v2400_v50 = vmul.f32 0.03125, %v2399_v39 }
0x1006   : > { %v2401_v51 = vadd.f32 1e-05, %v2400_v50 }
0x1008   : > { %3840 = vrsqrt.f32 %v2401_v51 }
0x1012   : > { %v3841_v52 = vpop.eup %3840 }
0x1013   : > { %v2403_v53 = vmul.f32 %v3841_v52, %v2395_v6 }
0x1015   : > { %v2404_v31 = vmul.f32 %v4437_v56, %v2403_v53  ;;  %v3784_v56 = vld [vmem:[%s4703_s10 + $0x10] sm:$0xff]  }
0x1016   : > { %3595 = vmatpush3.bf16.msra.mxu1 %v3784_v56 }
0x1017   : > { %v2405_v54 = vadd.f32 %v4440_v57, %v2404_v31  ;;  %3596 = vmatprep.subr.bf16.mxu1 %v3983_v1  ;;  %v3785_v57 = vld [vmem:[%s4703_s10 + $0x18] sm:$0xff]  }
0x1019   : > { %v2406_v55 = vpack.c.bf16 %v2405_v54, %v2405_v54 }
0x101a   : > { %3597 = vmatpush3.bf16.msra.mxu1 %v3785_v57 }
0x101b   : > { %3587 = vmatmul.mubr.msk.bf16.vlgmr.msra.gmra.mrb[20].mxu0 %vm1533_vm2, %v2406_v55  ;;  %3602 = vmatprep.subr.bf16.mxu1 %v3983_v1 }
0x101c   : > { %3618 = vmatprep.mubr.msk.bf16.mxu0 %vm3984_vm0, %v3983_v1  ;;  %3611 = vmatpush3.bf16.msra.mxu0 %v3786_v59 }
0x101d   : > { %3612 = vmatprep.subr.bf16.mxu0 %v3983_v1 }
0x1020   : > { %3613 = vmatpush3.bf16.msra.mxu0 %v3787_v60 }
0x1021   : > { %3614 = vmatprep.subr.bf16.mxu0 %v3983_v1 }
0x1024   : > { %3615 = vmatpush3.bf16.msra.mxu0 %v3788_v61 }
0x1025   : > { %3616 = vmatprep.subr.bf16.mxu0 %v3983_v1 }
0x1028   : > { %3617 = vmatpush3.bf16.msra.mxu0 %v3789_v62 }
0x1029   : > { %3622 = vmatprep.subr.bf16.mxu0 %v3983_v1 }
0x102b   : > { %3619 = vmatmul.mubr.msk.bf16.vlgmr.msra.gmra.mrb[24].mxu0 %vm1898_vm8, %v2690_v63 }
0x102c   : > { %3624 = vmatprep.mubr.msk.bf16.mxu0 %vm3984_vm0, %v3983_v1 }
0x10ee   : > { %v2462_v2 = vpop.f32.mrb[20].mxu0 }
0x10ef   : > { %v2463_v34 = vadd.f32 %v3418_v0, %v2462_v2  ;;  %v3588_v38 = vpop.f32.mrb[21].mxu0  ;;  %v4510_v0 = vld [vmem:[%s4708_s3] ss:$0 sm:$0xff]  ;;  %s4713_s3 = sld [smem:[#allocation29_spill]] }
0x10f0   : > { %v2465_v4 = vpop.f32.mrb[22].mxu0 }
0x10f1   : > { %v2468_v5 = vmul.f32 %v2463_v34, %v2463_v34  ;;  %v3589_v7 = vpop.f32.mrb[23].mxu0  ;;  %v3986_v4 = vmov 65535  }
0x10f3   : > { %v2469_v8 = vmul.f32 %v2468_v5, %v2463_v34  ;;  %v2828_v5 = vsel %vm2826_vm13, 4294967295, %v3986_v4 }
0x10f5   : > { %v2470_v9 = vmul.f32 0.044715, %v2469_v8  ;;  %v2829_v8 = vsel %vm2827_vm14, %v2828_v5, 0 }
0x10f7   : > { %v2471_v10 = vadd.f32 %v2470_v9, %v2463_v34 }
0x10f9   : > { %v2472_v11 = vmul.f32 0.7978846, %v2471_v10 }
0x10fb   : > { %3842 = vtanh.f32 %v2472_v11 }
0x10fe   : > { %v4497_v17 = vpop.f32.mrb[24].mxu0 }
0x10ff   : > { %v3620_v18 = vpop.f32.mrb[25].mxu0  ;;  %v2789_v29 = vsel %vm2788_vm12, %v4497_v17, 0.0 }
0x1100   : > { %v2785_v19 = vpop.f32.mrb[26].mxu0 }
0x1101   : > { %v3621_v20 = vpop.f32.mrb[27].mxu0 }
0x1105   : > { %v3843_v12 = vpop.eup %3842 }
0x1106   : > { %v2474_v13 = vadd.f32 1.0, %v3843_v12  ;;  %v2170_v12 = vld [vmem:[%s4710_s6] sm:$0x3f]  ;;  %s4715_s6 = sld [smem:[#allocation30_spill]] }
0x1108   : > { %v2475_v14 = vmul.f32 0.5, %v2474_v13 }
0x110a   : > { %v2476_v15 = vmul.f32 %v2475_v14, %v2463_v34  ;;  %v4513_v34 = vld [vmem:[%s4709_s7] ss:$0 sm:$0xff]  ;;  %s4714_s7 = sld [smem:[#allocation31_spill]] }
0x110b   : > { %v2171_v14 = vld [vmem:[%s4711_s5] sm:$0x3f]  ;;  %s4716_s5 = sld [smem:[#allocation32_spill]] }
0x110c   : > { %v2477_v16 = vpack.c.bf16 %v2476_v15, %v2476_v15  ;;  %v2701_v15 = vld [vmem:[%s4712_s18] sm:$0x7]  ;;  %s4717_s18 = sld [smem:[#allocation34_spill]] }
0x110e   : > { %3599 = vmatmul.mubr.msk.bf16.vlgmr.msra.gmra.mrb[16].mxu1 %vm1898_vm8, %v2477_v16 }
0x110f   : > { %3606 = vmatprep.mubr.msk.bf16.mxu1 %vm3984_vm0, %v3983_v1 }
0x11e1   : > { %v2545_v22 = vpop.f32.mrb[16].mxu1 }
0x11e2   : > { %v2546_v23 = vadd.f32 %v3422_v21, %v2545_v22  ;;  %v3600_v24 = vpop.f32.mrb[17].mxu1 }
0x11e3   : > { %v2548_v25 = vpop.f32.mrb[18].mxu1 }
0x11e4   : > { %v3601_v26 = vpop.f32.mrb[19].mxu1  ;;  %v2551_v27 = vadd.f32 %v2546_v23, %v4457_v37  ;;  %v2702_v25 = vld [vmem:[%s4713_s3] sm:$0x3f]  ;;  %s4718_s3 = sld [smem:[#allocation33_spill]] }
0x11e6   : > { %v2552_v28 = vsel %vm2227_vm9, %v2551_v27, 0.0 }
0x11e7   : > { %2553 = vadd.xlane.f32.xlu0 %v2552_v28 }
0x11eb   : > { %2790 = vadd.xlane.f32.xlu0 %v2789_v29 }
0x1274   : > { %v2554_v30 = vpop.xlane.xlu0 %2553 }
0x1275   : > { %v2555_v32 = vsel %vm1609_vm5, %v2554_v30, 0.0 }
0x1276   : > { %v2556_v33 = vrot.slane %v2555_v32, 4 }
0x1278   : > { %v2557_v36 = vadd.f32 %v2556_v33, %v2555_v32  ;;  %v2791_v41 = vpop.xlane.xlu0 %2790 }
0x1279   : > { %v2792_v6 = vmul.f32 0.03125, %v2791_v41 }
0x127a   : > { %v2558_v40 = vrot.slane %v2557_v36, 2 }
0x127b   : > { %v2793_v46 = vsub.f32 %v4497_v17, %v2792_v6 }
0x127c   : > { %v2559_v42 = vadd.f32 %v2558_v40, %v2557_v36 }
0x127d   : > { %v2794_v39 = vmul.f32 %v2793_v46, %v2793_v46 }
0x127e   : > { %v2560_v43 = vrot.slane %v2559_v42, 1 }
0x127f   : > { %v2795_v51 = vsel %vm2788_vm12, %v2794_v39, 0.0 }
0x1280   : > { %v2561_v45 = vadd.f32 %v2560_v43, %v2559_v42 }
0x1282   : > { %v2563_v37 = vmul.f32 0.0052083335, %v2561_v45 }
0x1284   : > { %v2564_v47 = vsub.f32 %v2551_v27, %v2563_v37  ;;  %v2704_v37 = vld [vmem:[%s4714_s7] sm:$0x7]  ;;  %s4719_s7 = sld [smem:[#allocation35_spill]] }
0x1286   : > { %v2565_v48 = vmul.f32 %v2564_v47, %v2564_v47 }
0x1288   : > { %v2566_v50 = vsel %vm2227_vm9, %v2565_v48, 0.0 }
0x1289   : > { %2567 = vadd.xlane.f32.xlu1 %v2566_v50 }
0x128d   : > { %2796 = vadd.xlane.f32.xlu1 %v2795_v51 }
0x1316   : > { %v2568_v52 = vpop.xlane.xlu1 %2567 }
0x1317   : > { %v2569_v53 = vsel %vm1609_vm5, %v2568_v52, 0.0 }
0x1318   : > { %v2570_v31 = vrot.slane %v2569_v53, 4 }
0x131a   : > { %v2571_v54 = vadd.f32 %v2570_v31, %v2569_v53  ;;  %v2797_v55 = vpop.xlane.xlu1 %2796 }
0x131b   : > { %v2798_v35 = vmul.f32 0.03125, %v2797_v55 }
0x131c   : > { %v2572_v58 = vrot.slane %v2571_v54, 2 }
0x131d   : > { %v2799_v56 = vadd.f32 1e-05, %v2798_v35 }
0x131e   : > { %v2573_v57 = vadd.f32 %v2572_v58, %v2571_v54 }
0x131f   : > { %3844 = vrsqrt.f32 %v2799_v56 }
0x1320   : > { %v2574_v59 = vrot.slane %v2573_v57, 1 }
0x1322   : > { %v2575_v60 = vadd.f32 %v2574_v59, %v2573_v57 }
0x1324   : > { %v2576_v61 = vmul.f32 0.0052083335, %v2575_v60 }
0x1326   : > { %v2577_v62 = vadd.f32 1e-05, %v2576_v61 }
0x1328   : > { %3846 = vrsqrt.f32 %v2577_v62 }
0x1329   : > { %v3845_v63 = vpop.eup %3844 }
0x132a   : > { %v2801_v2 = vmul.f32 %v3845_v63, %v2793_v46  ;;  %v3790_v46 = vld [vmem:[%s4685_s4 + $0x10] sm:$0xff]  }
0x132b   : > { %3603 = vmatpush3.bf16.msra.mxu1 %v3790_v46 }
0x132c   : > { %v2808_v38 = vmul.f32 %v4510_v0, %v2801_v2  ;;  %3604 = vmatprep.subr.bf16.mxu1 %v3983_v1 }
0x132e   : > { %v2815_v7 = vadd.f32 %v4513_v34, %v2808_v38 }
0x1330   : > { %v2816_v9 = vpack.c.bf16 %v2815_v7, %v2815_v7 }
0x1332   : > { %v3847_v10 = vpop.eup %3846  ;;  %v2831_v11 = vand.u32 %v2829_v8, %v2816_v9 }
0x1333   : > { %v2579_v13 = vmul.f32 %v3847_v10, %v2564_v47  ;;  %v3791_v47 = vld [vmem:[%s4685_s4 + $0x18] sm:$0xff]  }
0x1334   : > { %3623 = vmatpush3.bf16.msra.mxu0 %v2831_v11  ;;  %3605 = vmatpush3.bf16.msra.mxu1 %v3791_v47  ;;  %v3792_v47 = vld [vmem:[%s4716_s5] sm:$0xff]  }
0x1335   : > { %v2580_v16 = vmul.f32 %v2579_v13, %v2170_v12  ;;  %3634 = vmatprep.subr.bf16.mxu0 %v3983_v1  ;;  %3628 = vmatprep.subr.bf16.mxu1 %v3983_v1 }
0x1337   : > { %v2581_v18 = vadd.f32 %v2580_v16, %v2171_v14  ;;  %3625 = vmatmul.mubr.msk.bf16.vlgmr.msra.gmra.mrb[28].mxu0 %vm2822_vm15, %v2701_v15 }
0x1338   : > { %3638 = vmatprep.mubr.msk.bf16.mxu0 %vm3984_vm0, %v3983_v1  ;;  %3635 = vmatpush3.bf16.msra.mxu0 %v3792_v47 }
0x1339   : > { %v2582_v19 = vsel %vm2227_vm9, %v2581_v18, 0.0  ;;  %3636 = vmatprep.subr.bf16.mxu0 %v3983_v1 }
0x133a   : > { %2583 = vadd.xlane.f32.xlu0 %v2582_v19 }
0x13c7   : > { %v2584_v20 = vpop.xlane.xlu0 %2583 }
0x13c8   : > { %v2585_v21 = vmul.f32 0.03125, %v2584_v20 }
0x13ca   : > { %v2586_v22 = vsub.f32 %v2581_v18, %v2585_v21 }
0x13cc   : > { %v2587_v23 = vmul.f32 %v2586_v22, %v2586_v22 }
0x13ce   : > { %v2588_v24 = vsel %vm2227_vm9, %v2587_v23, 0.0 }
0x13cf   : > { %2589 = vadd.xlane.f32.xlu1 %v2588_v24 }
0x13e0   : > { %2819 = vperm.xlu1 %3763, %v2702_v25  }
0x140a   : > { %v2867_v26 = vpop.f32.mrb[28].mxu0 }
0x140b   : > { %v3626_v27 = vpop.f32.mrb[29].mxu0 }
0x140c   : > { %v2870_v28 = vpop.f32.mrb[30].mxu0 }
0x140d   : > { %v3627_v29 = vpop.f32.mrb[31].mxu0  ;;  %v2703_v28 = vld [vmem:[%s4715_s6] sm:$0x3]  ;;  %s4720_s6 = sld [smem:[#allocation36_spill]] }
0x145c   : > { %v2590_v30 = vpop.xlane.xlu1 %2589 }
0x145d   : > { %v2591_v32 = vmul.f32 0.03125, %v2590_v30 }
0x145f   : > { %v2592_v33 = vadd.f32 1e-05, %v2591_v32 }
0x1460   : > { %v2820_v35 = vpop.permute.xlu1 %2819 }
0x1461   : > { %3848 = vrsqrt.f32 %v2592_v33  ;;  %v2868_v56 = vadd.f32 %v2867_v26, %v2820_v35  ;;  %v3795_v35 = vld [vmem:[%s4717_s18 + $0x8] sm:$0xff]  }
0x1463   : > { %v2873_v57 = vmul.f32 %v2868_v56, %v2868_v56 }
0x1465   : > { %v2874_v59 = vmul.f32 %v2873_v57, %v2868_v56 }
0x1467   : > { %v2875_v63 = vmul.f32 0.044715, %v2874_v59 }
0x1469   : > { %v2876_v4 = vadd.f32 %v2875_v63, %v2868_v56 }
0x146b   : > { %v3849_v36 = vpop.eup %3848  ;;  %v2877_v8 = vmul.f32 0.7978846, %v2876_v4 }
0x146c   : > { %v2594_v40 = vmul.f32 %v3849_v36, %v2586_v22 }
0x146e   : > { %v2595_v41 = vmul.f32 %v4391_v3, %v2594_v40 }
0x1470   : > { %v2596_v42 = vadd.f32 %v4394_v44, %v2595_v41 }
0x1472   : > { %3850 = vtanh.f32 %v2596_v42 }
0x147c   : > { %v3851_v43 = vpop.eup %3850 }
0x147d   : > { %v2598_v6 = vmul.f32 %v3851_v43, %v4401_v49 }
0x147f   : > { %v2599_v45 = vsel %vm2227_vm9, %v2598_v6, 0.0 }
0x1480   : > { %2600 = vadd.xlane.f32.xlu0 %v2599_v45 }
0x1496   : > { %2885 = vperm.xlu0 %3762, %v2704_v37  }
0x150d   : > { %v2601_v48 = vpop.xlane.xlu0 %2600 }
0x150e   : > { %v2602_v39 = vsel %vm1609_vm5, %v2601_v48, -inf }
0x150f   : > { %v2603_v50 = vrot.slane %v2602_v39, 4 }
0x1511   : > { %v2604_v51 = vmax.f32 %v2602_v39, %v2603_v50 }
0x1513   : > { %v2605_v52 = vrot.slane %v2604_v51, 2 }
0x1515   : > { %v2606_v53 = vmax.f32 %v2604_v51, %v2605_v52  ;;  %v2886_v29 = vpop.permute.xlu0 %2885 }
0x1517   : > { %v2607_v31 = vrot.slane %v2606_v53, 1 }
0x1519   : > { %v2608_v54 = vmax.f32 %v2606_v53, %v2607_v31 }
0x151b   : > { %v2609_v55 = vsub.f32 %v2601_v48, %v2608_v54  ;;  %v3793_v48 = vld [vmem:[%s4716_s5 + $0x8] sm:$0xff]  }
0x151c   : > { %3637 = vmatpush3.bf16.msra.mxu0 %v3793_v48  ;;  %v2719_v48 = vld [vmem:[%s4720_s6] sm:$0x7]  ;;  %s3453_s6 = sshll.u32 %s4254_s0, 4  ;;  %s3987_s0 = smov [#allocation2]  }
0x151d   : > { %v2610_v58 = vmul.f32 1.442695, %v2609_v55  ;;  %v3794_v55 = vld [vmem:[%s4717_s18] sm:$0xff]   ;;  %s3876_s9 = sshll.u32 %s3987_s0, 4  ;;  %s3877_s9 = int_to_ptr.vmem [resolvable:$false] %s3876_s9 }
0x151e   : > { %s3878_s10 = scalar_lea.vmem %s3877_s9, 32 }
0x151f   : > { %3852 = vpow2.f32 %v2610_v58  ;;  %v3796_v58 = vld [vmem:[%s4717_s18 + $0x10] sm:$0xff]  }
0x1529   : > { %v3853_v60 = vpop.eup %3852 }
0x152a   : > { %v2612_v61 = vsel %vm1609_vm5, %v3853_v60, 0.0 }
0x152b   : > { %v2613_v62 = vrot.slane %v2612_v61, 4 }
0x152d   : > { %v2614_v2 = vadd.f32 %v2613_v62, %v2612_v61 }
0x152f   : > { %v2615_v38 = vrot.slane %v2614_v2, 2 }
0x1531   : > { %v2616_v5 = vadd.f32 %v2615_v38, %v2614_v2 }
0x1533   : > { %v2617_v7 = vrot.slane %v2616_v5, 1 }
0x1535   : > { %v2618_v9 = vadd.f32 %v2617_v7, %v2616_v5 }
0x1537   : > { %3854 = vrcp.f32 %v2618_v9 }
0x1538   : > { %3856 = vtanh.f32 %v2877_v8 }
0x1541   : > { %v3855_v10 = vpop.eup %3854 }
0x1542   : > { %v3857_v11 = vpop.eup %3856  ;;  %v2620_v12 = vmul.f32 %v3855_v10, %v3853_v60 }
0x1543   : > { %v2879_v14 = vadd.f32 1.0, %v3857_v11  ;;  %v3444_v11 = vld [vmem:[%s4719_s7] ss:$0 sm:$0xff]  ;;  %s1423_s7 = sand.u32 1, %s3926_s23  }
0x1544   : > { %v2621_v13 = vmul.f32 %v2620_v12, %v2596_v42  ;;  %s3237_s5 = scalar_lea.sflag [#allocation3], %s1423_s7 }
0x1545   : > { %v2880_v19 = vmul.f32 0.5, %v2879_v14 }
0x1546   : > { %v2622_v15 = vsel %vm2227_vm9, %v2621_v13, 0.0 }
0x1547   : > { %v2623_v16 = vrot.slane %v2622_v15, 4  ;;  %v2881_v22 = vmul.f32 %v2880_v19, %v2868_v56  ;;  %v3797_v56 = vld [vmem:[%s4717_s18 + $0x18] sm:$0xff]  }
0x1549   : > { %v2624_v18 = vadd.f32 %v2623_v16, %v2622_v15  ;;  %v2882_v25 = vpack.c.bf16 %v2881_v22, %v2881_v22 }
0x154b   : > { %v2625_v20 = vrot.slane %v2624_v18, 2  ;;  %v2892_v27 = vsel %vm2275_vm10, %v2882_v25, 0 }
0x154d   : > { %v2626_v21 = vadd.f32 %v2625_v20, %v2624_v18 }
0x154f   : > { %v2627_v23 = vrot.slane %v2626_v21, 1 }
0x1551   : > { %v2628_v24 = vadd.f32 %v2627_v23, %v2626_v21 }
0x1553   : > { %v2629_v26 = vpack.c.bf16 %v2628_v24, %v2628_v24 }
0x1555   : > { %3607 = vmatmul.mubr.msk.bf16.vlgmr.msra.gmra.mrb[4].mxu1 %vm1533_vm2, %v2629_v26 }
0x1556   : > { %3629 = vmatpush3.bf16.msra.mxu1 %v2892_v27  ;;  %3630 = vmatprep.mubr.msk.bf16.mxu1 %vm3984_vm0, %v3983_v1 }
0x1557   : > { %3642 = vmatprep.subr.bf16.mxu1 %v3983_v1 }
0x155d   : > { %3631 = vmatmul.mubr.msk.bf16.vlgmr.msra.gmra.mrb[20].mxu1 %vm2271_vm11, %v2703_v28 }
0x155e   : > { %3650 = vmatprep.mubr.msk.bf16.mxu1 %vm3984_vm0, %v3983_v1  ;;  %3643 = vmatpush3.bf16.msra.mxu1 %v3794_v55 }
0x155f   : > { %3644 = vmatprep.subr.bf16.mxu1 %v3983_v1 }
0x1562   : > { %3645 = vmatpush3.bf16.msra.mxu1 %v3795_v35 }
0x1563   : > { %3646 = vmatprep.subr.bf16.mxu1 %v3983_v1 }
0x1566   : > { %3647 = vmatpush3.bf16.msra.mxu1 %v3796_v58 }
0x1567   : > { %3648 = vmatprep.subr.bf16.mxu1 %v3983_v1 }
0x156a   : > { %3649 = vmatpush3.bf16.msra.mxu1 %v3797_v56 }
0x156b   : > { %3654 = vmatprep.subr.bf16.mxu1 %v3983_v1 }
0x1630   : > { %v2928_v30 = vpop.f32.mrb[20].mxu1 }
0x1631   : > { %v2929_v32 = vadd.f32 %v2928_v30, %v2886_v29  ;;  %v3632_v33 = vpop.f32.mrb[21].mxu1 }
0x1632   : > { %v2931_v36 = vpop.f32.mrb[22].mxu1 }
0x1633   : > { %v2934_v40 = vadd.f32 %v2929_v32, %v4497_v17  ;;  %v3633_v41 = vpop.f32.mrb[23].mxu1 }
0x1635   : > { %v2935_v42 = vsel %vm2788_vm12, %v2934_v40, 0.0 }
0x1636   : > { %2936 = vadd.xlane.f32.xlu1 %v2935_v42 }
0x16c3   : > { %v2937_v43 = vpop.xlane.xlu1 %2936 }
0x16c4   : > { %v2938_v6 = vmul.f32 0.03125, %v2937_v43 }
0x16c6   : > { %v2939_v45 = vsub.f32 %v2934_v40, %v2938_v6 }
0x16c8   : > { %v2940_v37 = vmul.f32 %v2939_v45, %v2939_v45 }
0x16ca   : > { %v2941_v46 = vsel %vm2788_vm12, %v2940_v37, 0.0 }
0x16cb   : > { %2942 = vadd.xlane.f32.xlu0 %v2941_v46 }
0x1758   : > { %v2943_v17 = vpop.xlane.xlu0 %2942 }
0x1759   : > { %v2944_v39 = vmul.f32 0.03125, %v2943_v17 }
0x175b   : > { %v2945_v50 = vadd.f32 1e-05, %v2944_v39 }
0x175d   : > { %3858 = vrsqrt.f32 %v2945_v50 }
0x1767   : > { %v3859_v51 = vpop.eup %3858 }
0x1768   : > { %v2947_v52 = vmul.f32 %v3859_v51, %v2939_v45 }
0x176a   : > { %v2948_v53 = vmul.f32 %v4510_v0, %v2947_v52  ;;  %v3440_v0 = vld [vmem:[%s4718_s3] ss:$0 sm:$0xff]  ;;  %s4721_s3 = sld [smem:[#allocation37_spill]] }
0x176c   : > { %v2949_v31 = vadd.f32 %v4513_v34, %v2948_v53 }
0x176e   : > { %v2950_v54 = vpack.c.bf16 %v2949_v31, %v2949_v31 }
0x1770   : > { %3639 = vmatmul.mubr.msk.bf16.vlgmr.msra.gmra.mrb[32].mxu0 %vm1533_vm2, %v2950_v54  ;;  %v2720_v39 = vld [vmem:[%s4721_s3] sm:$0x7]  ;;  %s1424_s3 = scalar_lea.vmem [#allocation2], %s1423_s7 }
0x1771   : > { %s3249_s1 = sshll.u32 %s1424_s3, 4  ;;  %s4594_s1 = int_to_ptr.vmem [resolvable:$true] %s3249_s1 }
0x1772   : > { %s3872_s8 = scalar_lea.vmem %s4594_s1, 16  ;;  %p3879_p0 = scmp.lt.s32.totalorder %s4594_s1, %s3877_s9 }
0x1773   : > { %p3873_p11 = scmp.ne.s32.totalorder %s4594_s1, %s3872_s8  ;;  %p3880_p1 = scmp.lt.s32.totalorder %s3878_s10, %s3872_s8 }
0x1775   : > { %p3874_p12 = pnand %p3873_p11, %p4271_p5  ;;  %p3881_p2 = por %p3880_p1, %p3879_p0 }
0x1777   : > { %p3875_p13 = pneg %p3874_p12 }
0x1779   : > { %p3882_p3 = pnand %p3881_p2, %p3875_p13 }
0x1843   : > { %v3006_v34 = vpop.f32.mrb[32].mxu0 }
0x1844   : > { %v3007_v57 = vadd.f32 %v3440_v0, %v3006_v34  ;;  %v3640_v59 = vpop.f32.mrb[33].mxu0 }
0x1845   : > { %v3009_v60 = vpop.f32.mrb[34].mxu0 }
0x1846   : > { %v3012_v61 = vmul.f32 %v3007_v57, %v3007_v57  ;;  %v3641_v62 = vpop.f32.mrb[35].mxu0 }
0x1848   : > { %v3013_v63 = vmul.f32 %v3012_v61, %v3007_v57 }
0x184a   : > { %v3014_v2 = vmul.f32 0.044715, %v3013_v63 }
0x184c   : > { %v3015_v38 = vadd.f32 %v3014_v2, %v3007_v57  ;;  %v3798_v2 = vld [vmem:[%s4685_s4 + $0x20] sm:$0xff]  }
0x184e   : > { %v3016_v4 = vmul.f32 0.7978846, %v3015_v38  ;;  %v3799_v38 = vld [vmem:[%s4685_s4 + $0x28] sm:$0xff]   ;;  %s4592_s4 = scalar_lea.hbm %s4231_s20, %s3453_s6 }
0x1850   : > { %3860 = vtanh.f32 %v3016_v4 }
0x185a   : > { %v3861_v5 = vpop.eup %3860 }
0x185b   : > { %v3018_v7 = vadd.f32 1.0, %v3861_v5 }
0x185d   : > { %v3019_v8 = vmul.f32 0.5, %v3018_v7 }
0x185f   : > { %v3020_v9 = vmul.f32 %v3019_v8, %v3007_v57 }
0x1861   : > { %v3021_v10 = vpack.c.bf16 %v3020_v9, %v3020_v9 }
0x1863   : > { %3651 = vmatmul.mubr.msk.bf16.vlgmr.msra.gmra.mrb[24].mxu1 %vm1898_vm8, %v3021_v10 }
0x1864   : > { %3658 = vmatprep.mubr.msk.bf16.mxu1 %vm3984_vm0, %v3983_v1  ;;  %3655 = vmatpush3.bf16.msra.mxu1 %v3798_v2  ;;  %vm3234_vm0 = vcmask 253952  }
0x1865   : > { %3656 = vmatprep.subr.bf16.mxu1 %v3983_v1 }
0x1868   : > { %3657 = vmatpush3.bf16.msra.mxu1 %v3799_v38 }
0x1936   : > { %v3089_v12 = vpop.f32.mrb[24].mxu1 }
0x1937   : > { %v3090_v13 = vadd.f32 %v3444_v11, %v3089_v12  ;;  %v3652_v14 = vpop.f32.mrb[25].mxu1 }
0x1938   : > { %v3092_v15 = vpop.f32.mrb[26].mxu1 }
0x1939   : > { %v3653_v16 = vpop.f32.mrb[27].mxu1  ;;  %v3095_v18 = vadd.f32 %v3090_v13, %v2934_v40 }
0x193b   : > { %v3096_v19 = vsel %vm2788_vm12, %v3095_v18, 0.0 }
0x193c   : > { %3097 = vadd.xlane.f32.xlu1 %v3096_v19 }
0x19c9   : > { %v3098_v20 = vpop.xlane.xlu1 %3097 }
0x19ca   : > { %v3099_v21 = vsel %vm2275_vm10, %v3098_v20, 0.0 }
0x19cb   : > { %v3100_v22 = vrot.slane %v3099_v21, 4 }
0x19cd   : > { %v3101_v23 = vadd.f32 %v3100_v22, %v3099_v21 }
0x19cf   : > { %v3102_v24 = vrot.slane %v3101_v23, 2 }
0x19d1   : > { %v3103_v25 = vadd.f32 %v3102_v24, %v3101_v23 }
0x19d3   : > { %v3104_v26 = vrot.slane %v3103_v25, 1 }
0x19d5   : > { %v3105_v27 = vadd.f32 %v3104_v26, %v3103_v25 }
0x19d7   : > { %v3107_v28 = vmul.f32 0.010416667, %v3105_v27 }
0x19d9   : > { %v3108_v29 = vsub.f32 %v3095_v18, %v3107_v28 }
0x19db   : > { %v3109_v30 = vmul.f32 %v3108_v29, %v3108_v29 }
0x19dd   : > { %v3110_v32 = vsel %vm2788_vm12, %v3109_v30, 0.0 }
0x19de   : > { %3111 = vadd.xlane.f32.xlu0 %v3110_v32  ;;  %v1442_v32 = vld [vmem:[%s4226_s12] sm:$0x1] }
0x1a6b   : > { %v3112_v33 = vpop.xlane.xlu0 %3111 }
0x1a6c   : > { %v3113_v36 = vsel %vm2275_vm10, %v3112_v33, 0.0 }
0x1a6d   : > { %v3114_v40 = vrot.slane %v3113_v36, 4 }
0x1a6f   : > { %v3115_v41 = vadd.f32 %v3114_v40, %v3113_v36 }
0x1a71   : > { %v3116_v42 = vrot.slane %v3115_v41, 2 }
0x1a73   : > { %v3117_v43 = vadd.f32 %v3116_v42, %v3115_v41 }
0x1a75   : > { %v3118_v6 = vrot.slane %v3117_v43, 1 }
0x1a77   : > { %v3119_v45 = vadd.f32 %v3118_v6, %v3117_v43 }
0x1a79   : > { %v3120_v37 = vmul.f32 0.010416667, %v3119_v45 }
0x1a7b   : > { %v3121_v46 = vadd.f32 1e-05, %v3120_v37 }
0x1a7d   : > { %3862 = vrsqrt.f32 %v3121_v46 }
0x1a87   : > { %v3863_v47 = vpop.eup %3862 }
0x1a88   : > { %v3123_v17 = vmul.f32 %v3863_v47, %v3108_v29 }
0x1a8a   : > { %v3124_v50 = vmul.f32 %v3123_v17, %v2719_v48 }
0x1a8c   : > { %v3125_v51 = vadd.f32 %v3124_v50, %v2720_v39 }
0x1a8e   : > { %v3126_v52 = vsel %vm2788_vm12, %v3125_v51, 0.0 }
0x1a8f   : > { %3127 = vadd.xlane.f32.xlu1 %v3126_v52 }
0x1b1c   : > { %v3128_v53 = vpop.xlane.xlu1 %3127 }
0x1b1d   : > { %v3129_v31 = vmul.f32 0.03125, %v3128_v53 }
0x1b1f   : > { %v3130_v54 = vsub.f32 %v3125_v51, %v3129_v31 }
0x1b21   : > { %v3131_v55 = vmul.f32 %v3130_v54, %v3130_v54 }
0x1b23   : > { %v3132_v35 = vsel %vm2788_vm12, %v3131_v55, 0.0 }
0x1b24   : > { %3133 = vadd.xlane.f32.xlu0 %v3132_v35 }
0x1bb1   : > { %v3134_v58 = vpop.xlane.xlu0 %3133 }
0x1bb2   : > { %v3135_v56 = vmul.f32 0.03125, %v3134_v58 }
0x1bb4   : > { %v3136_v0 = vadd.f32 1e-05, %v3135_v56 }
0x1bb6   : > { %3864 = vrsqrt.f32 %v3136_v0 }
0x1bc0   : > { %v3865_v34 = vpop.eup %3864 }
0x1bc1   : > { %v3138_v57 = vmul.f32 %v3865_v34, %v3130_v54 }
0x1bc3   : > { %v3139_v59 = vmul.f32 %v4391_v3, %v3138_v57 }
0x1bc5   : > { %v3140_v60 = vadd.f32 %v4394_v44, %v3139_v59 }
0x1bc7   : > { %3866 = vtanh.f32 %v3140_v60 }
0x1bd1   : > { %v3867_v61 = vpop.eup %3866 }
0x1bd2   : > { %v3142_v62 = vmul.f32 %v3867_v61, %v4401_v49 }
0x1bd4   : > { %v3143_v63 = vsel %vm2788_vm12, %v3142_v62, 0.0 }
0x1bd5   : > { %3144 = vadd.xlane.f32.xlu1 %v3143_v63 }
0x1c62   : > { %v3145_v4 = vpop.xlane.xlu1 %3144 }
0x1c63   : > { %v3146_v5 = vsel %vm2275_vm10, %v3145_v4, -inf }
0x1c64   : > { %v3147_v7 = vrot.slane %v3146_v5, 4 }
0x1c66   : > { %v3148_v3 = vmax.f32 %v3146_v5, %v3147_v7 }
0x1c68   : > { %v3149_v8 = vrot.slane %v3148_v3, 2 }
0x1c6a   : > { %v3150_v44 = vmax.f32 %v3148_v3, %v3149_v8 }
0x1c6c   : > { %v3151_v9 = vrot.slane %v3150_v44, 1 }
0x1c6e   : > { %v3152_v10 = vmax.f32 %v3150_v44, %v3151_v9 }
0x1c70   : > { %v3153_v11 = vsub.f32 %v3145_v4, %v3152_v10 }
0x1c72   : > { %v3154_v49 = vmul.f32 1.442695, %v3153_v11 }
0x1c74   : > { %3868 = vpow2.f32 %v3154_v49 }
0x1c7e   : > { %v3869_v12 = vpop.eup %3868 }
0x1c7f   : > { %v3156_v13 = vsel %vm2275_vm10, %v3869_v12, 0.0 }
0x1c80   : > { %v3157_v14 = vrot.slane %v3156_v13, 4 }
0x1c82   : > { %v3158_v15 = vadd.f32 %v3157_v14, %v3156_v13 }
0x1c84   : > { %v3159_v16 = vrot.slane %v3158_v15, 2 }
0x1c86   : > { %v3160_v1 = vadd.f32 %v3159_v16, %v3158_v15 }
0x1c88   : > { %v3161_v18 = vrot.slane %v3160_v1, 1 }
0x1c8a   : > { %v3162_v19 = vadd.f32 %v3161_v18, %v3160_v1 }
0x1c8c   : > { %3870 = vrcp.f32 %v3162_v19 }
0x1c96   : > { %v3871_v20 = vpop.eup %3870 }
0x1c97   : > { %v3164_v21 = vmul.f32 %v3871_v20, %v3869_v12 }
0x1c99   : > { %v3165_v22 = vmul.f32 %v3164_v21, %v3140_v60 }
0x1c9b   : > { %v3166_v23 = vsel %vm2788_vm12, %v3165_v22, 0.0 }
0x1c9c   : > { %v3167_v24 = vrot.slane %v3166_v23, 4 }
0x1c9e   : > { %v3168_v25 = vadd.f32 %v3167_v24, %v3166_v23 }
0x1ca0   : > { %v3169_v26 = vrot.slane %v3168_v25, 2 }
0x1ca2   : > { %v3170_v27 = vadd.f32 %v3169_v26, %v3168_v25 }
0x1ca4   : > { %v3171_v28 = vrot.slane %v3170_v27, 1 }
0x1ca6   : > { %v3172_v29 = vadd.f32 %v3171_v28, %v3170_v27 }
0x1ca8   : > { %v3173_v30 = vpack.c.bf16 %v3172_v29, %v3172_v29 }
0x1caa   : > { %3659 = vmatmul.mubr.msk.bf16.vlgmr.msra.gmra.mrb[4].mxu1 %vm1533_vm2, %v3173_v30 }
0x1d7d   : > { %v3227_v33 = vpop.f32.mrb[4].mxu1 }
0x1d7e   : > { %v3662_v36 = vadd.f32 %v3227_v33, %v1442_v32  ;;  %v3660_v40 = vpop.f32.mrb[5].mxu1 }
0x1d7f   : > { %v3230_v41 = vpop.f32.mrb[6].mxu1 }
0x1d80   : > { %v3661_v42 = vpop.f32.mrb[7].mxu1  ;;  %3235 = vst.msk [vmem:[%s1424_s3] sm:$0x1] %vm3234_vm0, %v3662_v36 }
0x1d81   : > { %3885 = shalt.err (!%p3882_p3)
}
0x1d82   : > { %s3886_s7 = scalar_lea.hbm %s4592_s4, 16  ;;  %s3890_s6 = scalar_lea.hbm %s4231_s20, 32 }
0x1d83   : > { %p3887_p4 = scmp.ne.s32.totalorder %s4592_s4, %s3886_s7  ;;  %p3891_p9 = scmp.lt.u32.totalorder %s4592_s4, %s4231_s20 }
0x1d84   : > { %p3892_p10 = scmp.lt.u32.totalorder %s3890_s6, %s3886_s7  ;;  %p3894_p12 = scmp.lt.u32.totalorder %s3886_s7, %s4592_s4 }
0x1d85   : > { %p3888_p7 = pnand %p3887_p4, %p4271_p5 }
0x1d86   : > { %p3893_p11 = por %p3892_p10, %p3891_p9 }
0x1d87   : > { %p3889_p8 = pneg %p3888_p7 }
0x1d88   : > { %p3895_p0 = por %p3894_p12, %p3893_p11 }
0x1d8a   : > { %p3896_p13 = pnand %p3895_p0, %p3889_p8 }
0x1d8c   : > { %3899 = shalt.err (!%p3896_p13)
}
0x1d8d   : > { %3672 = dma.vmem_to_hbm [thread:$0]  (%p4271_p5), %s4594_s1, 16, %s4592_s4, %s3237_s5  }
0x1d8e PF: > { %p3678_p1 = scmp.ge.s32.totalorder %s3934_s28, 2  ;;  %s3261_s9 = sand.u32 1, %s3922_s22  }
0x1d8f   : > { %s3262_s8 = scalar_lea.sflag [#allocation3], %s3261_s9 }
0x1d90   : > { %p3675_p2 = pnand %p3678_p1, %p4275_p6 }
0x1d92   : > { %3917 = dma.done.wait (!%p3675_p2), %s3262_s8, 16  }
0x1d93   : > { %3919 = vsyncadd (!%p3675_p2), %s3262_s8, 4294967280  ;;  %p105_p3 = scmp.ge.s32.totalorder %s4258_s2, 4   ;;  %s4722_s22 = smov %s3926_s23 }
0x1d94   : > { %s4723_s23 = smov %s3930_s26  ;;  %s4724_s26 = smov %s4269_s11 }
0x1d95   : > { %s4725_s28 = smov %s4258_s2  ;;  %107 = sbr.rel (!%p105_p3) target bundleno = 103 (0x67), region = 296 }
0x1d9c   :  { %3266 = vsyncpa [#allocation3], 1 }
0x1d9d   :  { %3268 = vsyncpa [#allocation3 + $0x1], 1 }

</bundles_post_ra>
